<compile_context>
chip_gen: v7x
topology: tpu7x:2x2x1
jax: 0.10.0
libtpu: 0.0.40
codegen_flags: <defaults>
</compile_context>

<pallas_src>
import functools
import math

import jax
import jax.numpy as jnp
from jax.experimental import pallas as pl
from jax.experimental.pallas import tpu as pltpu


def deformer2_kernel(in_ref, A_ref, wfr_ref, bfr_ref, wp_ref, bp_ref,
                     w01_ref, b01_ref, ldw_ref, ldb_ref, wf_ref, bf_ref,
                     out_ref, *, depth, Fp, Dp, num_nodes, block_b,
                     block_diag_a, precision):
    N, Bt = num_nodes, block_b
    M = Bt * N

    # TODO(synk): pass precision=jax.lax.Precision.HIGHEST for exact fp32
    # PyTorch parity (costs extra MXU passes).
    dot = lambda a, b: jnp.dot(a, b, preferred_element_type=jnp.float32,
                               precision=precision)

    # Flatten (Bt, N, W) -> (Bt*N, W) — layout preserving (N % 8 == 0 or Bt==1).
    packed = in_ref[...].reshape(M, 2 * Fp + Dp)
    xp = packed[:, :Fp]          # x_prev (zero-padded to Fp lanes)
    sc = packed[:, Fp:]          # (s_prev | c_prev), contiguous lane-aligned slice
    cp = packed[:, 2 * Fp:]      # c_prev alone (for the final residual)

    if block_diag_a:
        # One [M, M] block-diagonal A over the Bt graphs -> one big MXU pass.
        A = A_ref[0]
        spmm = lambda h: dot(A, h.astype(A.dtype))
    else:
        A = A_ref[...]           # [Bt, N, N]

        def spmm(h):
            h3 = h.reshape(Bt, N, Fp).astype(A.dtype)
            return jnp.einsum('bij,bjf->bif', A, h3,
                              preferred_element_type=jnp.float32,
                              precision=precision).reshape(M, Fp)

    # Front end: one block-diagonal matmul -> (s_f | c_f), then W_p.
    sc_f = jnp.tanh(dot(sc, wfr_ref[...]) + bfr_ref[...])       # [M, 2Fp]
    ffs = jnp.tanh(dot(sc_f, wp_ref[...]) + bp_ref[...])        # [M, Fp]

    # x = tanh(L0(cat(ffs, x_prev)) + A @ L1(cat(ffs, x_prev)))
    fx = jnp.concatenate([ffs, xp], axis=-1)                    # [M, 2Fp] (lane-aligned)
    h01 = dot(fx, w01_ref[...]) + b01_ref[...]                  # [M, 2Fp]
    x = jnp.tanh(h01[:, :Fp] + spmm(h01[:, Fp:]))

    def pair_block(x, w, b):
        g01 = dot(x, w) + b                                     # fused (L_2k | L_2k+1)
        return jnp.tanh(g01[:, :Fp] + spmm(g01[:, Fp:]) + x)

    if depth <= 4:
        for k in range(depth):                                  # small depth: static unroll
            x = pair_block(x, ldw_ref[k], ldb_ref[k])
    else:
        # production depth: visible loop bounds live ranges / vreg pressure
        x = jax.lax.fori_loop(
            0, depth, lambda k, xc: pair_block(xc, ldw_ref[k], ldb_ref[k]),
            x, unroll=2)

    # c = tanh(W_final(x)) + c_prev ; (s is an identity pass-through -> wrapper)
    c = jnp.tanh(dot(x, wf_ref[...]) + bf_ref[...]) + cp

    # Single lane-dense output slab (Fp + Dp is a multiple of 128).
    out_ref[...] = jnp.concatenate([x, c], axis=-1).reshape(
        Bt, N, Fp + Dp).astype(out_ref.dtype)


def _round_up(v, m):
    return ((v + m - 1) // m) * m


def _pick_block_b(B, N, target_rows=512):
    """Largest divisor of B with block_b*N ~<= target_rows, keeping nb >= 2
    grid steps (megacore sharding on v7x) and requiring N % 8 == 0 so the
    (Bt, N, C) -> (Bt*N, C) flatten stays layout-preserving."""
    if N % 8 != 0 or B == 1:
        return 1
    bt = max(1, min(B, target_rows // max(N, 1)))
    bt = min(bt, max(B // 2, 1))
    while B % bt:
        bt -= 1
    return max(bt, 1)


def deformer2_forward(x_prev, s_prev, c_prev, A, params, *, depth,
                      block_b=None, a_dtype=jnp.bfloat16, block_diag_a=None,
                      precision=None, vmem_limit_bytes=None,
                      single_buffer_weights=True):
    B, N, F = x_prev.shape
    D = c_prev.shape[-1]
    Fp = _round_up(F, 128)
    Dp = _round_up(D, 128)
    Win = 2 * Fp + Dp
    Wout = Fp + Dp

    if block_b is None:
        block_b = _pick_block_b(B, N)
    assert B % block_b == 0, "block_b must divide the batch size"
    assert block_b == 1 or N % 8 == 0, "flattening (Bt, N) needs N % 8 == 0"
    nb = B // block_b
    M = block_b * N

    if block_diag_a is None:
        block_diag_a = (N < 128) and (M <= 2048)

    (l0_w, l0_b, l1_w, l1_b, ld_w, ld_b,
     wpc_w, wpc_b, wps_w, wps_b, wp_w, wp_b, wf_w, wf_b) = params
    f32 = jnp.float32

    # ---- fused / zero-padded weights (pad rows/cols are exact zeros, so the
    # padded lanes stay identically zero through the whole network) ----------
    # front end: (s | c) @ blockdiag(W_p_s, W_p_c) -> (s_f | c_f)
    w_front = jnp.zeros((Fp + Dp, 2 * Fp), f32)
    w_front = w_front.at[:F, :F].set(wps_w)
    w_front = w_front.at[Fp:Fp + D, Fp:Fp + F].set(wpc_w)
    b_front = jnp.zeros((1, 2 * Fp), f32).at[:, :F].set(wps_b)
    b_front = b_front.at[:, Fp:Fp + F].set(wpc_b)
    # W_p with rows reordered for the (s_f | c_f) operand ordering
    wp2 = jnp.zeros((2 * Fp, Fp), f32)
    wp2 = wp2.at[:F, :F].set(wp_w[F:])          # s_f rows
    wp2 = wp2.at[Fp:Fp + F, :F].set(wp_w[:F])   # c_f rows
    wp2_b = jnp.zeros((1, Fp), f32).at[:, :F].set(wp_b)
    # layers[0] | layers[1] fused along the output (lane) dim
    w01 = jnp.zeros((2 * Fp, 2 * Fp), f32)
    w01 = w01.at[:F, :F].set(l0_w[:F]).at[Fp:Fp + F, :F].set(l0_w[F:])
    w01 = w01.at[:F, Fp:Fp + F].set(l1_w[:F]).at[Fp:Fp + F, Fp:Fp + F].set(l1_w[F:])
    b01 = jnp.zeros((1, 2 * Fp), f32).at[:, :F].set(l0_b).at[:, Fp:Fp + F].set(l1_b)
    # deep pairs (layers[2k] | layers[2k+1])
    ldw_f = jnp.zeros((depth, Fp, 2 * Fp), f32)
    ldw_f = ldw_f.at[:, :F, :F].set(ld_w[0::2]).at[:, :F, Fp:Fp + F].set(ld_w[1::2])
    ldb_f = jnp.zeros((depth, 1, 2 * Fp), f32)
    ldb_f = ldb_f.at[:, :, :F].set(ld_b[0::2]).at[:, :, Fp:Fp + F].set(ld_b[1::2])
    # W_final
    wf_p = jnp.zeros((Fp, Dp), f32).at[:F, :D].set(wf_w)
    wfb_p = jnp.zeros((1, Dp), f32).at[:, :D].set(wf_b)

    # ---- lane-dense packed input slab (x | s | c), each padded to 128 ------
    x_pad = jnp.pad(x_prev, ((0, 0), (0, 0), (0, Fp - F)))
    s_pad = jnp.pad(s_prev, ((0, 0), (0, 0), (0, Fp - F)))
    c_pad = jnp.pad(c_prev, ((0, 0), (0, 0), (0, Dp - D)))
    packed_in = jnp.concatenate([x_pad, s_pad, c_pad], axis=-1)   # [B, N, Win]

    # ---- A: the only N^2 object; bf16 + f32 accumulation by default --------
    A_q = A.astype(a_dtype)
    if block_diag_a:
        eye = jnp.eye(block_b, dtype=A_q.dtype)
        A_in = jnp.einsum('gbij,bc->gbicj', A_q.reshape(nb, block_b, N, N),
                          eye).reshape(nb, M, M)
        a_spec = pl.BlockSpec((1, M, M), lambda b: (b, 0, 0))
        a_block_bytes = M * M * jnp.dtype(a_dtype).itemsize
    else:
        A_in = A_q
        a_spec = pl.BlockSpec((block_b, N, N), lambda b: (b, 0, 0))
        a_block_bytes = block_b * N * N * jnp.dtype(a_dtype).itemsize

    if vmem_limit_bytes is None:
        weight_bytes = 4 * sum(int(w.size) for w in
                               (w_front, b_front, wp2, wp2_b, w01, b01,
                                ldw_f, ldb_f, wf_p, wfb_p))
        io_bytes = block_b * N * (Win + Wout) * 4
        est = 2 * (io_bytes + a_block_bytes) + 2 * weight_bytes + (4 << 20)
        vmem_limit_bytes = int(min(max(est, 32 << 20), 48 << 20))

    kernel = functools.partial(
        deformer2_kernel, depth=depth, Fp=Fp, Dp=Dp, num_nodes=N,
        block_b=block_b, block_diag_a=block_diag_a, precision=precision)

    def run(weight_mode):
        def const_spec(shape):
            idx = lambda b, _n=len(shape): (0,) * _n
            if weight_mode is None:
                return pl.BlockSpec(shape, idx)
            return pl.BlockSpec(shape, idx, pipeline_mode=weight_mode)

        in_specs = [
            pl.BlockSpec((block_b, N, Win), lambda b: (b, 0, 0)),    # packed x|s|c
            a_spec,                                                   # A
            const_spec((Fp + Dp, 2 * Fp)), const_spec((1, 2 * Fp)),   # fused W_p_s|W_p_c
            const_spec((2 * Fp, Fp)), const_spec((1, Fp)),            # W_p
            const_spec((2 * Fp, 2 * Fp)), const_spec((1, 2 * Fp)),    # fused layers[0:2]
            const_spec((depth, Fp, 2 * Fp)), const_spec((depth, 1, 2 * Fp)),
            const_spec((Fp, Dp)), const_spec((1, Dp)),                # W_final
        ]
        out_spec = pl.BlockSpec((block_b, N, Wout), lambda b: (b, 0, 0))
        return pl.pallas_call(
            kernel,
            out_shape=jax.ShapeDtypeStruct((B, N, Wout), jnp.float32),
            grid=(nb,),
            in_specs=in_specs,
            out_specs=out_spec,
            compiler_params=pltpu.CompilerParams(
                dimension_semantics=("parallel",),
                vmem_limit_bytes=vmem_limit_bytes),
        )(packed_in, A_in, w_front, b_front, wp2, wp2_b, w01, b01,
          ldw_f, ldb_f, wf_p, wfb_p)

    if single_buffer_weights:
        try:
            out = run(pl.Buffered(1))       # single-buffer constant-index weights
        except Exception:
            out = run(None)                 # fallback: default double buffering
    else:
        out = run(None)

    # s is an identity pass-through in the module; no kernel work needed.
    return out[..., :F], s_prev, out[..., Fp:Fp + D]


def init_params(key, F, D, depth, *, zero_reinit=True):
    """Parameter init mirroring the PyTorch module:
    - layers[*].weight: xavier_uniform
    - W_p_c / W_p_s / W_p / W_final weights: zeros when zero_reinit (reinit())
    - all biases: PyTorch Linear default uniform(-1/sqrt(fan_in), 1/sqrt(fan_in))
    Weights stored as [in, out] (transposed vs torch's [out, in])."""
    keys = iter(jax.random.split(key, 64))

    def xavier(fan_in, fan_out):
        bound = math.sqrt(6.0 / (fan_in + fan_out))
        return jax.random.uniform(next(keys), (fan_in, fan_out), jnp.float32,
                                  -bound, bound)

    def bias(fan_in, out):
        bound = 1.0 / math.sqrt(fan_in)
        return jax.random.uniform(next(keys), (1, out), jnp.float32, -bound, bound)

    def maybe_zero(fan_in, fan_out):
        if zero_reinit:
            return jnp.zeros((fan_in, fan_out), jnp.float32)
        return xavier(fan_in, fan_out)

    l0_w = xavier(2 * F, F); l0_b = bias(2 * F, F)
    l1_w = xavier(2 * F, F); l1_b = bias(2 * F, F)
    ld_w = jnp.stack([xavier(F, F) for _ in range(2 * depth)])
    ld_b = jnp.stack([bias(F, F) for _ in range(2 * depth)])
    wpc_w = maybe_zero(D, F); wpc_b = bias(D, F)
    wps_w = maybe_zero(F, F); wps_b = bias(F, F)
    wp_w = maybe_zero(2 * F, F); wp_b = bias(2 * F, F)
    wf_w = maybe_zero(F, D); wf_b = bias(F, D)
    # NOTE: W_c and W_ic exist in the module but are unused in forward(); omitted.
    return (l0_w, l0_b, l1_w, l1_b, ld_w, ld_b,
            wpc_w, wpc_b, wps_w, wps_b, wp_w, wp_b, wf_w, wf_b)


def reference_forward(x_prev, s_prev, c_prev, A, params, depth):
    """Pure-JAX f32 port of the PyTorch forward (source of truth)."""
    (l0_w, l0_b, l1_w, l1_b, ld_w, ld_b,
     wpc_w, wpc_b, wps_w, wps_b, wp_w, wp_b, wf_w, wf_b) = params
    lin = lambda x, w, b: jnp.einsum('bnf,fo->bno', x, w) + b
    bmm = lambda a, x: jnp.einsum('bij,bjf->bif', a, x)
    c_f = jnp.tanh(lin(c_prev, wpc_w, wpc_b))
    s_f = jnp.tanh(lin(s_prev, wps_w, wps_b))
    ffs = jnp.tanh(lin(jnp.concatenate([c_f, s_f], axis=2), wp_w, wp_b))
    x = jnp.concatenate([ffs, x_prev], axis=2)
    x = jnp.tanh(lin(x, l0_w, l0_b) + bmm(A, lin(x, l1_w, l1_b)))
    for k in range(depth):
        x = jnp.tanh(lin(x, ld_w[2 * k], ld_b[2 * k])
                     + bmm(A, lin(x, ld_w[2 * k + 1], ld_b[2 * k + 1])) + x)
    c = jnp.tanh(lin(x, wf_w, wf_b)) + c_prev
    return x, s_prev, c


if __name__ == "__main__":
    B, N, F, D, depth = 4, 8, 32, 4, 2

    key = jax.random.PRNGKey(0)
    k_p0, k_p1, k_x, k_s, k_c, k_a = jax.random.split(key, 6)

    x_prev = jax.random.normal(k_x, (B, N, F), jnp.float32)
    s_prev = jax.random.normal(k_s, (B, N, F), jnp.float32)
    c_prev = jax.random.normal(k_c, (B, N, D), jnp.float32)
    # row-normalized random adjacency (stands in for the numpy A the module gets)
    A_raw = jax.random.uniform(k_a, (B, N, N), jnp.float32)
    A = A_raw / jnp.sum(A_raw, axis=-1, keepdims=True)

    def run_and_check(params, tol, **kw):
        x_o, s_o, c_o = deformer2_forward(x_prev, s_prev, c_prev, A, params,
                                          depth=depth, **kw)
        jax.block_until_ready((x_o, s_o, c_o))
        x_r, s_r, c_r = reference_forward(x_prev, s_prev, c_prev, A, params, depth)
        assert x_o.shape == x_r.shape and c_o.shape == c_r.shape
        assert jnp.allclose(x_o, x_r, atol=tol, rtol=tol)
        assert jnp.allclose(s_o, s_r, atol=tol, rtol=tol)
        assert jnp.allclose(c_o, c_r, atol=tol, rtol=tol)

    params_module = init_params(k_p0, F, D, depth, zero_reinit=True)   # faithful init
    params_random = init_params(k_p1, F, D, depth, zero_reinit=False)  # all paths live

    # Exact-ish f32 A path (validates fusion / padding / block-diag A / packing).
    run_and_check(params_module, 2e-4, block_b=2, a_dtype=jnp.float32)
    run_and_check(params_random, 2e-4, block_b=2, a_dtype=jnp.float32)
    # Default fast path: bf16 A + block-diagonal A over the per-step batch.
    run_and_check(params_random, 5e-2)
    # Batched-einsum A path (used when N >= 128) with bf16 A.
    run_and_check(params_random, 5e-2, block_b=2, block_diag_a=False)

    print("KERNEL_OK")
</pallas_src>

<mosaic_0001>
module attributes {stable_mosaic.version = 11 : i64} {
  func.func @deformer2_kernel(%arg0: i32, %arg1: memref<2x8x384xf32, #tpu.memory_space<vmem>>, %arg2: memref<1x16x16xf32, #tpu.memory_space<vmem>>, %arg3: memref<256x256xf32, #tpu.memory_space<vmem>>, %arg4: memref<1x256xf32, #tpu.memory_space<vmem>>, %arg5: memref<256x128xf32, #tpu.memory_space<vmem>>, %arg6: memref<1x128xf32, #tpu.memory_space<vmem>>, %arg7: memref<256x256xf32, #tpu.memory_space<vmem>>, %arg8: memref<1x256xf32, #tpu.memory_space<vmem>>, %arg9: memref<2x128x256xf32, #tpu.memory_space<vmem>>, %arg10: memref<2x1x256xf32, #tpu.memory_space<vmem>>, %arg11: memref<128x128xf32, #tpu.memory_space<vmem>>, %arg12: memref<1x128xf32, #tpu.memory_space<vmem>>, %arg13: memref<2x8x256xf32, #tpu.memory_space<vmem>>) attributes {dimension_semantics = [#tpu.dimension_semantics<parallel>], iteration_bounds = array<i64: 2>, scalar_prefetch = 0 : i64, scratch_operands = 0 : i64, tpu.core_type = #tpu.core_type<tc>, window_params = [{transform_indices = @transform_0, window_bounds = array<i64: 2, 8, 384>}, {transform_indices = @transform_1, window_bounds = array<i64: 1, 16, 16>}, {pipeline_mode = #tpu.pipeline_mode<synchronous>, transform_indices = @transform_2, window_bounds = array<i64: 256, 256>}, {pipeline_mode = #tpu.pipeline_mode<synchronous>, transform_indices = @transform_3, window_bounds = array<i64: 1, 256>}, {pipeline_mode = #tpu.pipeline_mode<synchronous>, transform_indices = @transform_4, window_bounds = array<i64: 256, 128>}, {pipeline_mode = #tpu.pipeline_mode<synchronous>, transform_indices = @transform_5, window_bounds = array<i64: 1, 128>}, {pipeline_mode = #tpu.pipeline_mode<synchronous>, transform_indices = @transform_6, window_bounds = array<i64: 256, 256>}, {pipeline_mode = #tpu.pipeline_mode<synchronous>, transform_indices = @transform_7, window_bounds = array<i64: 1, 256>}, {pipeline_mode = #tpu.pipeline_mode<synchronous>, transform_indices = @transform_8, window_bounds = array<i64: 2, 128, 256>}, {pipeline_mode = #tpu.pipeline_mode<synchronous>, transform_indices = @transform_9, window_bounds = array<i64: 2, 1, 256>}, {pipeline_mode = #tpu.pipeline_mode<synchronous>, transform_indices = @transform_10, window_bounds = array<i64: 128, 128>}, {pipeline_mode = #tpu.pipeline_mode<synchronous>, transform_indices = @transform_11, window_bounds = array<i64: 1, 128>}, {transform_indices = @transform_12, window_bounds = array<i64: 2, 8, 256>}]} {
    %c0 = arith.constant 0 : index
    %c0_0 = arith.constant 0 : index
    %c0_1 = arith.constant 0 : index
    %0 = vector.load %arg1[%c0, %c0_0, %c0_1] : memref<2x8x384xf32, #tpu.memory_space<vmem>>, vector<2x8x384xf32>
    %1 = vector.shape_cast %0 : vector<2x8x384xf32> to vector<16x384xf32>
    %2 = vector.extract_strided_slice %1 {offsets = [0, 0], sizes = [16, 128], strides = [1, 1]} : vector<16x384xf32> to vector<16x128xf32>
    %3 = vector.extract_strided_slice %1 {offsets = [0, 128], sizes = [16, 256], strides = [1, 1]} : vector<16x384xf32> to vector<16x256xf32>
    %4 = vector.extract_strided_slice %1 {offsets = [0, 256], sizes = [16, 128], strides = [1, 1]} : vector<16x384xf32> to vector<16x128xf32>
    %c0_2 = arith.constant 0 : index
    %c0_3 = arith.constant 0 : index
    %c0_4 = arith.constant 0 : index
    %5 = vector.load %arg2[%c0_2, %c0_3, %c0_4] : memref<1x16x16xf32, #tpu.memory_space<vmem>>, vector<1x16x16xf32>
    %6 = vector.shape_cast %5 : vector<1x16x16xf32> to vector<16x16xf32>
    %c0_5 = arith.constant 0 : index
    %c0_6 = arith.constant 0 : index
    %7 = vector.load %arg3[%c0_5, %c0_6] : memref<256x256xf32, #tpu.memory_space<vmem>>, vector<256x256xf32>
    %cst = arith.constant dense<0.000000e+00> : vector<16x256xf32>
    %8 = tpu.matmul %3, %7, %cst {dimension_numbers = #tpu.dot_dimension_numbers<[1], [0], [0], [1], [0, 0, 1, 1], [], []>} : vector<16x256xf32>, vector<256x256xf32>, vector<16x256xf32> -> vector<16x256xf32>
    %c0_7 = arith.constant 0 : index
    %c0_8 = arith.constant 0 : index
    %9 = vector.load %arg4[%c0_7, %c0_8] : memref<1x256xf32, #tpu.memory_space<vmem>>, vector<1x256xf32>
    %10 = vector.broadcast %9 : vector<1x256xf32> to vector<16x256xf32>
    %11 = arith.addf %8, %10 : vector<16x256xf32>
    %12 = math.tanh %11 : vector<16x256xf32>
    %c0_9 = arith.constant 0 : index
    %c0_10 = arith.constant 0 : index
    %13 = vector.load %arg5[%c0_9, %c0_10] : memref<256x128xf32, #tpu.memory_space<vmem>>, vector<256x128xf32>
    %cst_11 = arith.constant dense<0.000000e+00> : vector<16x128xf32>
    %14 = tpu.matmul %12, %13, %cst_11 {dimension_numbers = #tpu.dot_dimension_numbers<[1], [0], [0], [1], [0, 0, 1, 1], [], []>} : vector<16x256xf32>, vector<256x128xf32>, vector<16x128xf32> -> vector<16x128xf32>
    %c0_12 = arith.constant 0 : index
    %c0_13 = arith.constant 0 : index
    %15 = vector.load %arg6[%c0_12, %c0_13] : memref<1x128xf32, #tpu.memory_space<vmem>>, vector<1x128xf32>
    %16 = vector.broadcast %15 : vector<1x128xf32> to vector<16x128xf32>
    %17 = arith.addf %14, %16 : vector<16x128xf32>
    %18 = math.tanh %17 : vector<16x128xf32>
    %19 = tpu.concatenate %18, %2 in 1 : vector<16x128xf32>, vector<16x128xf32> -> vector<16x256xf32>
    %c0_14 = arith.constant 0 : index
    %c0_15 = arith.constant 0 : index
    %20 = vector.load %arg7[%c0_14, %c0_15] : memref<256x256xf32, #tpu.memory_space<vmem>>, vector<256x256xf32>
    %cst_16 = arith.constant dense<0.000000e+00> : vector<16x256xf32>
    %21 = tpu.matmul %19, %20, %cst_16 {dimension_numbers = #tpu.dot_dimension_numbers<[1], [0], [0], [1], [0, 0, 1, 1], [], []>} : vector<16x256xf32>, vector<256x256xf32>, vector<16x256xf32> -> vector<16x256xf32>
    %c0_17 = arith.constant 0 : index
    %c0_18 = arith.constant 0 : index
    %22 = vector.load %arg8[%c0_17, %c0_18] : memref<1x256xf32, #tpu.memory_space<vmem>>, vector<1x256xf32>
    %23 = vector.broadcast %22 : vector<1x256xf32> to vector<16x256xf32>
    %24 = arith.addf %21, %23 : vector<16x256xf32>
    %25 = vector.extract_strided_slice %24 {offsets = [0, 0], sizes = [16, 128], strides = [1, 1]} : vector<16x256xf32> to vector<16x128xf32>
    %26 = vector.extract_strided_slice %24 {offsets = [0, 128], sizes = [16, 128], strides = [1, 1]} : vector<16x256xf32> to vector<16x128xf32>
    %cst_19 = arith.constant dense<0.000000e+00> : vector<16x128xf32>
    %27 = tpu.matmul %6, %26, %cst_19 {dimension_numbers = #tpu.dot_dimension_numbers<[1], [0], [0], [1], [0, 0, 1, 1], [], []>} : vector<16x16xf32>, vector<16x128xf32>, vector<16x128xf32> -> vector<16x128xf32>
    %28 = arith.addf %25, %27 : vector<16x128xf32>
    %29 = math.tanh %28 : vector<16x128xf32>
    %c0_20 = arith.constant 0 : index
    %c0_21 = arith.constant 0 : index
    %c0_22 = arith.constant 0 : index
    %30 = vector.load %arg9[%c0_20, %c0_21, %c0_22] : memref<2x128x256xf32, #tpu.memory_space<vmem>>, vector<1x128x256xf32>
    %31 = vector.shape_cast %30 : vector<1x128x256xf32> to vector<128x256xf32>
    %c0_23 = arith.constant 0 : index
    %c0_24 = arith.constant 0 : index
    %c0_25 = arith.constant 0 : index
    %32 = vector.load %arg10[%c0_23, %c0_24, %c0_25] : memref<2x1x256xf32, #tpu.memory_space<vmem>>, vector<1x1x256xf32>
    %33 = vector.shape_cast %32 : vector<1x1x256xf32> to vector<1x256xf32>
    %cst_26 = arith.constant dense<0.000000e+00> : vector<16x256xf32>
    %34 = tpu.matmul %29, %31, %cst_26 {dimension_numbers = #tpu.dot_dimension_numbers<[1], [0], [0], [1], [0, 0, 1, 1], [], []>} : vector<16x128xf32>, vector<128x256xf32>, vector<16x256xf32> -> vector<16x256xf32>
    %35 = vector.broadcast %33 : vector<1x256xf32> to vector<16x256xf32>
    %36 = arith.addf %34, %35 : vector<16x256xf32>
    %37 = vector.extract_strided_slice %36 {offsets = [0, 0], sizes = [16, 128], strides = [1, 1]} : vector<16x256xf32> to vector<16x128xf32>
    %38 = vector.extract_strided_slice %36 {offsets = [0, 128], sizes = [16, 128], strides = [1, 1]} : vector<16x256xf32> to vector<16x128xf32>
    %cst_27 = arith.constant dense<0.000000e+00> : vector<16x128xf32>
    %39 = tpu.matmul %6, %38, %cst_27 {dimension_numbers = #tpu.dot_dimension_numbers<[1], [0], [0], [1], [0, 0, 1, 1], [], []>} : vector<16x16xf32>, vector<16x128xf32>, vector<16x128xf32> -> vector<16x128xf32>
    %40 = arith.addf %37, %39 : vector<16x128xf32>
    %41 = arith.addf %40, %29 : vector<16x128xf32>
    %42 = math.tanh %41 : vector<16x128xf32>
    %c1 = arith.constant 1 : index
    %c0_28 = arith.constant 0 : index
    %c0_29 = arith.constant 0 : index
    %43 = vector.load %arg9[%c1, %c0_28, %c0_29] : memref<2x128x256xf32, #tpu.memory_space<vmem>>, vector<1x128x256xf32>
    %44 = vector.shape_cast %43 : vector<1x128x256xf32> to vector<128x256xf32>
    %c1_30 = arith.constant 1 : index
    %c0_31 = arith.constant 0 : index
    %c0_32 = arith.constant 0 : index
    %45 = vector.load %arg10[%c1_30, %c0_31, %c0_32] : memref<2x1x256xf32, #tpu.memory_space<vmem>>, vector<1x1x256xf32>
    %46 = vector.shape_cast %45 : vector<1x1x256xf32> to vector<1x256xf32>
    %cst_33 = arith.constant dense<0.000000e+00> : vector<16x256xf32>
    %47 = tpu.matmul %42, %44, %cst_33 {dimension_numbers = #tpu.dot_dimension_numbers<[1], [0], [0], [1], [0, 0, 1, 1], [], []>} : vector<16x128xf32>, vector<128x256xf32>, vector<16x256xf32> -> vector<16x256xf32>
    %48 = vector.broadcast %46 : vector<1x256xf32> to vector<16x256xf32>
    %49 = arith.addf %47, %48 : vector<16x256xf32>
    %50 = vector.extract_strided_slice %49 {offsets = [0, 0], sizes = [16, 128], strides = [1, 1]} : vector<16x256xf32> to vector<16x128xf32>
    %51 = vector.extract_strided_slice %49 {offsets = [0, 128], sizes = [16, 128], strides = [1, 1]} : vector<16x256xf32> to vector<16x128xf32>
    %cst_34 = arith.constant dense<0.000000e+00> : vector<16x128xf32>
    %52 = tpu.matmul %6, %51, %cst_34 {dimension_numbers = #tpu.dot_dimension_numbers<[1], [0], [0], [1], [0, 0, 1, 1], [], []>} : vector<16x16xf32>, vector<16x128xf32>, vector<16x128xf32> -> vector<16x128xf32>
    %53 = arith.addf %50, %52 : vector<16x128xf32>
    %54 = arith.addf %53, %42 : vector<16x128xf32>
    %55 = math.tanh %54 : vector<16x128xf32>
    %c0_35 = arith.constant 0 : index
    %c0_36 = arith.constant 0 : index
    %56 = vector.load %arg11[%c0_35, %c0_36] : memref<128x128xf32, #tpu.memory_space<vmem>>, vector<128x128xf32>
    %cst_37 = arith.constant dense<0.000000e+00> : vector<16x128xf32>
    %57 = tpu.matmul %55, %56, %cst_37 {dimension_numbers = #tpu.dot_dimension_numbers<[1], [0], [0], [1], [0, 0, 1, 1], [], []>} : vector<16x128xf32>, vector<128x128xf32>, vector<16x128xf32> -> vector<16x128xf32>
    %c0_38 = arith.constant 0 : index
    %c0_39 = arith.constant 0 : index
    %58 = vector.load %arg12[%c0_38, %c0_39] : memref<1x128xf32, #tpu.memory_space<vmem>>, vector<1x128xf32>
    %59 = vector.broadcast %58 : vector<1x128xf32> to vector<16x128xf32>
    %60 = arith.addf %57, %59 : vector<16x128xf32>
    %61 = math.tanh %60 : vector<16x128xf32>
    %62 = arith.addf %61, %4 : vector<16x128xf32>
    %63 = tpu.concatenate %55, %62 in 1 : vector<16x128xf32>, vector<16x128xf32> -> vector<16x256xf32>
    %64 = vector.shape_cast %63 : vector<16x256xf32> to vector<2x8x256xf32>
    %c0_40 = arith.constant 0 : index
    %c0_41 = arith.constant 0 : index
    %c0_42 = arith.constant 0 : index
    %65 = vector.load %arg13[%c0_40, %c0_41, %c0_42] : memref<2x8x256xf32, #tpu.memory_space<vmem>>, vector<2x8x256xf32>
    tpu.vector_store %arg13[%c0_40, %c0_41, %c0_42], %64 {strides = array<i32>} : memref<2x8x256xf32, #tpu.memory_space<vmem>>, vector<2x8x256xf32>,
    return
  }
  func.func @transform_0(%arg0: i32) -> (i32, i32, i32) {
    %c0_i32 = arith.constant 0 : i32
    %c0_i32_0 = arith.constant 0 : i32
    %c0_i32_1 = arith.constant 0 : i32
    return %arg0, %c0_i32, %c0_i32_0 : i32, i32, i32
  }
  func.func @transform_1(%arg0: i32) -> (i32, i32, i32) {
    %c0_i32 = arith.constant 0 : i32
    %c0_i32_0 = arith.constant 0 : i32
    %c0_i32_1 = arith.constant 0 : i32
    return %arg0, %c0_i32, %c0_i32_0 : i32, i32, i32
  }
  func.func @transform_2(%arg0: i32) -> (i32, i32) {
    %c0_i32 = arith.constant 0 : i32
    %c0_i32_0 = arith.constant 0 : i32
    %c0_i32_1 = arith.constant 0 : i32
    return %c0_i32, %c0_i32_0 : i32, i32
  }
  func.func @transform_3(%arg0: i32) -> (i32, i32) {
    %c0_i32 = arith.constant 0 : i32
    %c0_i32_0 = arith.constant 0 : i32
    %c0_i32_1 = arith.constant 0 : i32
    return %c0_i32, %c0_i32_0 : i32, i32
  }
  func.func @transform_4(%arg0: i32) -> (i32, i32) {
    %c0_i32 = arith.constant 0 : i32
    %c0_i32_0 = arith.constant 0 : i32
    %c0_i32_1 = arith.constant 0 : i32
    return %c0_i32, %c0_i32_0 : i32, i32
  }
  func.func @transform_5(%arg0: i32) -> (i32, i32) {
    %c0_i32 = arith.constant 0 : i32
    %c0_i32_0 = arith.constant 0 : i32
    %c0_i32_1 = arith.constant 0 : i32
    return %c0_i32, %c0_i32_0 : i32, i32
  }
  func.func @transform_6(%arg0: i32) -> (i32, i32) {
    %c0_i32 = arith.constant 0 : i32
    %c0_i32_0 = arith.constant 0 : i32
    %c0_i32_1 = arith.constant 0 : i32
    return %c0_i32, %c0_i32_0 : i32, i32
  }
  func.func @transform_7(%arg0: i32) -> (i32, i32) {
    %c0_i32 = arith.constant 0 : i32
    %c0_i32_0 = arith.constant 0 : i32
    %c0_i32_1 = arith.constant 0 : i32
    return %c0_i32, %c0_i32_0 : i32, i32
  }
  func.func @transform_8(%arg0: i32) -> (i32, i32, i32) {
    %c0_i32 = arith.constant 0 : i32
    %c0_i32_0 = arith.constant 0 : i32
    %c0_i32_1 = arith.constant 0 : i32
    %c0_i32_2 = arith.constant 0 : i32
    return %c0_i32, %c0_i32_0, %c0_i32_1 : i32, i32, i32
  }
  func.func @transform_9(%arg0: i32) -> (i32, i32, i32) {
    %c0_i32 = arith.constant 0 : i32
    %c0_i32_0 = arith.constant 0 : i32
    %c0_i32_1 = arith.constant 0 : i32
    %c0_i32_2 = arith.constant 0 : i32
    return %c0_i32, %c0_i32_0, %c0_i32_1 : i32, i32, i32
  }
  func.func @transform_10(%arg0: i32) -> (i32, i32) {
    %c0_i32 = arith.constant 0 : i32
    %c0_i32_0 = arith.constant 0 : i32
    %c0_i32_1 = arith.constant 0 : i32
    return %c0_i32, %c0_i32_0 : i32, i32
  }
  func.func @transform_11(%arg0: i32) -> (i32, i32) {
    %c0_i32 = arith.constant 0 : i32
    %c0_i32_0 = arith.constant 0 : i32
    %c0_i32_1 = arith.constant 0 : i32
    return %c0_i32, %c0_i32_0 : i32, i32
  }
  func.func @transform_12(%arg0: i32) -> (i32, i32, i32) {
    %c0_i32 = arith.constant 0 : i32
    %c0_i32_0 = arith.constant 0 : i32
    %c0_i32_1 = arith.constant 0 : i32
    return %arg0, %c0_i32, %c0_i32_0 : i32, i32, i32
  }
}

module attributes {stable_mosaic.version = 11 : i64} {
  func.func @deformer2_kernel(%arg0: i32, %arg1: memref<2x8x384xf32, #tpu.memory_space<vmem>>, %arg2: memref<1x16x16xf32, #tpu.memory_space<vmem>>, %arg3: memref<256x256xf32, #tpu.memory_space<vmem>>, %arg4: memref<1x256xf32, #tpu.memory_space<vmem>>, %arg5: memref<256x128xf32, #tpu.memory_space<vmem>>, %arg6: memref<1x128xf32, #tpu.memory_space<vmem>>, %arg7: memref<256x256xf32, #tpu.memory_space<vmem>>, %arg8: memref<1x256xf32, #tpu.memory_space<vmem>>, %arg9: memref<2x128x256xf32, #tpu.memory_space<vmem>>, %arg10: memref<2x1x256xf32, #tpu.memory_space<vmem>>, %arg11: memref<128x128xf32, #tpu.memory_space<vmem>>, %arg12: memref<1x128xf32, #tpu.memory_space<vmem>>, %arg13: memref<2x8x256xf32, #tpu.memory_space<vmem>>) attributes {dimension_semantics = [#tpu.dimension_semantics<parallel>], iteration_bounds = array<i64: 2>, scalar_prefetch = 0 : i64, scratch_operands = 0 : i64, tpu.core_type = #tpu.core_type<tc>, window_params = [{transform_indices = @transform_0, window_bounds = array<i64: 2, 8, 384>}, {transform_indices = @transform_1, window_bounds = array<i64: 1, 16, 16>}, {pipeline_mode = #tpu.pipeline_mode<synchronous>, transform_indices = @transform_2, window_bounds = array<i64: 256, 256>}, {pipeline_mode = #tpu.pipeline_mode<synchronous>, transform_indices = @transform_3, window_bounds = array<i64: 1, 256>}, {pipeline_mode = #tpu.pipeline_mode<synchronous>, transform_indices = @transform_4, window_bounds = array<i64: 256, 128>}, {pipeline_mode = #tpu.pipeline_mode<synchronous>, transform_indices = @transform_5, window_bounds = array<i64: 1, 128>}, {pipeline_mode = #tpu.pipeline_mode<synchronous>, transform_indices = @transform_6, window_bounds = array<i64: 256, 256>}, {pipeline_mode = #tpu.pipeline_mode<synchronous>, transform_indices = @transform_7, window_bounds = array<i64: 1, 256>}, {pipeline_mode = #tpu.pipeline_mode<synchronous>, transform_indices = @transform_8, window_bounds = array<i64: 2, 128, 256>}, {pipeline_mode = #tpu.pipeline_mode<synchronous>, transform_indices = @transform_9, window_bounds = array<i64: 2, 1, 256>}, {pipeline_mode = #tpu.pipeline_mode<synchronous>, transform_indices = @transform_10, window_bounds = array<i64: 128, 128>}, {pipeline_mode = #tpu.pipeline_mode<synchronous>, transform_indices = @transform_11, window_bounds = array<i64: 1, 128>}, {transform_indices = @transform_12, window_bounds = array<i64: 2, 8, 256>}]} {
    %c0 = arith.constant 0 : index
    %c0_0 = arith.constant 0 : index
    %c0_1 = arith.constant 0 : index
    %0 = vector.load %arg1[%c0, %c0_0, %c0_1] : memref<2x8x384xf32, #tpu.memory_space<vmem>>, vector<2x8x384xf32>
    %1 = vector.shape_cast %0 : vector<2x8x384xf32> to vector<16x384xf32>
    %2 = vector.extract_strided_slice %1 {offsets = [0, 0], sizes = [16, 128], strides = [1, 1]} : vector<16x384xf32> to vector<16x128xf32>
    %3 = vector.extract_strided_slice %1 {offsets = [0, 128], sizes = [16, 256], strides = [1, 1]} : vector<16x384xf32> to vector<16x256xf32>
    %4 = vector.extract_strided_slice %1 {offsets = [0, 256], sizes = [16, 128], strides = [1, 1]} : vector<16x384xf32> to vector<16x128xf32>
    %c0_2 = arith.constant 0 : index
    %c0_3 = arith.constant 0 : index
    %c0_4 = arith.constant 0 : index
    %5 = vector.load %arg2[%c0_2, %c0_3, %c0_4] : memref<1x16x16xf32, #tpu.memory_space<vmem>>, vector<1x16x16xf32>
    %6 = vector.shape_cast %5 : vector<1x16x16xf32> to vector<16x16xf32>
    %c0_5 = arith.constant 0 : index
    %c0_6 = arith.constant 0 : index
    %7 = vector.load %arg3[%c0_5, %c0_6] : memref<256x256xf32, #tpu.memory_space<vmem>>, vector<256x256xf32>
    %cst = arith.constant dense<0.000000e+00> : vector<16x256xf32>
    %8 = tpu.matmul %3, %7, %cst {dimension_numbers = #tpu.dot_dimension_numbers<[1], [0], [0], [1], [0, 0, 1, 1], [], []>} : vector<16x256xf32>, vector<256x256xf32>, vector<16x256xf32> -> vector<16x256xf32>
    %c0_7 = arith.constant 0 : index
    %c0_8 = arith.constant 0 : index
    %9 = vector.load %arg4[%c0_7, %c0_8] : memref<1x256xf32, #tpu.memory_space<vmem>>, vector<1x256xf32>
    %10 = vector.broadcast %9 : vector<1x256xf32> to vector<16x256xf32>
    %11 = arith.addf %8, %10 : vector<16x256xf32>
    %12 = math.tanh %11 : vector<16x256xf32>
    %c0_9 = arith.constant 0 : index
    %c0_10 = arith.constant 0 : index
    %13 = vector.load %arg5[%c0_9, %c0_10] : memref<256x128xf32, #tpu.memory_space<vmem>>, vector<256x128xf32>
    %cst_11 = arith.constant dense<0.000000e+00> : vector<16x128xf32>
    %14 = tpu.matmul %12, %13, %cst_11 {dimension_numbers = #tpu.dot_dimension_numbers<[1], [0], [0], [1], [0, 0, 1, 1], [], []>} : vector<16x256xf32>, vector<256x128xf32>, vector<16x128xf32> -> vector<16x128xf32>
    %c0_12 = arith.constant 0 : index
    %c0_13 = arith.constant 0 : index
    %15 = vector.load %arg6[%c0_12, %c0_13] : memref<1x128xf32, #tpu.memory_space<vmem>>, vector<1x128xf32>
    %16 = vector.broadcast %15 : vector<1x128xf32> to vector<16x128xf32>
    %17 = arith.addf %14, %16 : vector<16x128xf32>
    %18 = math.tanh %17 : vector<16x128xf32>
    %19 = tpu.concatenate %18, %2 in 1 : vector<16x128xf32>, vector<16x128xf32> -> vector<16x256xf32>
    %c0_14 = arith.constant 0 : index
    %c0_15 = arith.constant 0 : index
    %20 = vector.load %arg7[%c0_14, %c0_15] : memref<256x256xf32, #tpu.memory_space<vmem>>, vector<256x256xf32>
    %cst_16 = arith.constant dense<0.000000e+00> : vector<16x256xf32>
    %21 = tpu.matmul %19, %20, %cst_16 {dimension_numbers = #tpu.dot_dimension_numbers<[1], [0], [0], [1], [0, 0, 1, 1], [], []>} : vector<16x256xf32>, vector<256x256xf32>, vector<16x256xf32> -> vector<16x256xf32>
    %c0_17 = arith.constant 0 : index
    %c0_18 = arith.constant 0 : index
    %22 = vector.load %arg8[%c0_17, %c0_18] : memref<1x256xf32, #tpu.memory_space<vmem>>, vector<1x256xf32>
    %23 = vector.broadcast %22 : vector<1x256xf32> to vector<16x256xf32>
    %24 = arith.addf %21, %23 : vector<16x256xf32>
    %25 = vector.extract_strided_slice %24 {offsets = [0, 0], sizes = [16, 128], strides = [1, 1]} : vector<16x256xf32> to vector<16x128xf32>
    %26 = vector.extract_strided_slice %24 {offsets = [0, 128], sizes = [16, 128], strides = [1, 1]} : vector<16x256xf32> to vector<16x128xf32>
    %cst_19 = arith.constant dense<0.000000e+00> : vector<16x128xf32>
    %27 = tpu.matmul %6, %26, %cst_19 {dimension_numbers = #tpu.dot_dimension_numbers<[1], [0], [0], [1], [0, 0, 1, 1], [], []>} : vector<16x16xf32>, vector<16x128xf32>, vector<16x128xf32> -> vector<16x128xf32>
    %28 = arith.addf %25, %27 : vector<16x128xf32>
    %29 = math.tanh %28 : vector<16x128xf32>
    %c0_20 = arith.constant 0 : index
    %c0_21 = arith.constant 0 : index
    %c0_22 = arith.constant 0 : index
    %30 = vector.load %arg9[%c0_20, %c0_21, %c0_22] : memref<2x128x256xf32, #tpu.memory_space<vmem>>, vector<1x128x256xf32>
    %31 = vector.shape_cast %30 : vector<1x128x256xf32> to vector<128x256xf32>
    %c0_23 = arith.constant 0 : index
    %c0_24 = arith.constant 0 : index
    %c0_25 = arith.constant 0 : index
    %32 = vector.load %arg10[%c0_23, %c0_24, %c0_25] : memref<2x1x256xf32, #tpu.memory_space<vmem>>, vector<1x1x256xf32>
    %33 = vector.shape_cast %32 : vector<1x1x256xf32> to vector<1x256xf32>
    %cst_26 = arith.constant dense<0.000000e+00> : vector<16x256xf32>
    %34 = tpu.matmul %29, %31, %cst_26 {dimension_numbers = #tpu.dot_dimension_numbers<[1], [0], [0], [1], [0, 0, 1, 1], [], []>} : vector<16x128xf32>, vector<128x256xf32>, vector<16x256xf32> -> vector<16x256xf32>
    %35 = vector.broadcast %33 : vector<1x256xf32> to vector<16x256xf32>
    %36 = arith.addf %34, %35 : vector<16x256xf32>
    %37 = vector.extract_strided_slice %36 {offsets = [0, 0], sizes = [16, 128], strides = [1, 1]} : vector<16x256xf32> to vector<16x128xf32>
    %38 = vector.extract_strided_slice %36 {offsets = [0, 128], sizes = [16, 128], strides = [1, 1]} : vector<16x256xf32> to vector<16x128xf32>
    %cst_27 = arith.constant dense<0.000000e+00> : vector<16x128xf32>
    %39 = tpu.matmul %6, %38, %cst_27 {dimension_numbers = #tpu.dot_dimension_numbers<[1], [0], [0], [1], [0, 0, 1, 1], [], []>} : vector<16x16xf32>, vector<16x128xf32>, vector<16x128xf32> -> vector<16x128xf32>
    %40 = arith.addf %37, %39 : vector<16x128xf32>
    %41 = arith.addf %40, %29 : vector<16x128xf32>
    %42 = math.tanh %41 : vector<16x128xf32>
    %c1 = arith.constant 1 : index
    %c0_28 = arith.constant 0 : index
    %c0_29 = arith.constant 0 : index
    %43 = vector.load %arg9[%c1, %c0_28, %c0_29] : memref<2x128x256xf32, #tpu.memory_space<vmem>>, vector<1x128x256xf32>
    %44 = vector.shape_cast %43 : vector<1x128x256xf32> to vector<128x256xf32>
    %c1_30 = arith.constant 1 : index
    %c0_31 = arith.constant 0 : index
    %c0_32 = arith.constant 0 : index
    %45 = vector.load %arg10[%c1_30, %c0_31, %c0_32] : memref<2x1x256xf32, #tpu.memory_space<vmem>>, vector<1x1x256xf32>
    %46 = vector.shape_cast %45 : vector<1x1x256xf32> to vector<1x256xf32>
    %cst_33 = arith.constant dense<0.000000e+00> : vector<16x256xf32>
    %47 = tpu.matmul %42, %44, %cst_33 {dimension_numbers = #tpu.dot_dimension_numbers<[1], [0], [0], [1], [0, 0, 1, 1], [], []>} : vector<16x128xf32>, vector<128x256xf32>, vector<16x256xf32> -> vector<16x256xf32>
    %48 = vector.broadcast %46 : vector<1x256xf32> to vector<16x256xf32>
    %49 = arith.addf %47, %48 : vector<16x256xf32>
    %50 = vector.extract_strided_slice %49 {offsets = [0, 0], sizes = [16, 128], strides = [1, 1]} : vector<16x256xf32> to vector<16x128xf32>
    %51 = vector.extract_strided_slice %49 {offsets = [0, 128], sizes = [16, 128], strides = [1, 1]} : vector<16x256xf32> to vector<16x128xf32>
    %cst_34 = arith.constant dense<0.000000e+00> : vector<16x128xf32>
    %52 = tpu.matmul %6, %51, %cst_34 {dimension_numbers = #tpu.dot_dimension_numbers<[1], [0], [0], [1], [0, 0, 1, 1], [], []>} : vector<16x16xf32>, vector<16x128xf32>, vector<16x128xf32> -> vector<16x128xf32>
    %53 = arith.addf %50, %52 : vector<16x128xf32>
    %54 = arith.addf %53, %42 : vector<16x128xf32>
    %55 = math.tanh %54 : vector<16x128xf32>
    %c0_35 = arith.constant 0 : index
    %c0_36 = arith.constant 0 : index
    %56 = vector.load %arg11[%c0_35, %c0_36] : memref<128x128xf32, #tpu.memory_space<vmem>>, vector<128x128xf32>
    %cst_37 = arith.constant dense<0.000000e+00> : vector<16x128xf32>
    %57 = tpu.matmul %55, %56, %cst_37 {dimension_numbers = #tpu.dot_dimension_numbers<[1], [0], [0], [1], [0, 0, 1, 1], [], []>} : vector<16x128xf32>, vector<128x128xf32>, vector<16x128xf32> -> vector<16x128xf32>
    %c0_38 = arith.constant 0 : index
    %c0_39 = arith.constant 0 : index
    %58 = vector.load %arg12[%c0_38, %c0_39] : memref<1x128xf32, #tpu.memory_space<vmem>>, vector<1x128xf32>
    %59 = vector.broadcast %58 : vector<1x128xf32> to vector<16x128xf32>
    %60 = arith.addf %57, %59 : vector<16x128xf32>
    %61 = math.tanh %60 : vector<16x128xf32>
    %62 = arith.addf %61, %4 : vector<16x128xf32>
    %63 = tpu.concatenate %55, %62 in 1 : vector<16x128xf32>, vector<16x128xf32> -> vector<16x256xf32>
    %64 = vector.shape_cast %63 : vector<16x256xf32> to vector<2x8x256xf32>
    %c0_40 = arith.constant 0 : index
    %c0_41 = arith.constant 0 : index
    %c0_42 = arith.constant 0 : index
    %65 = vector.load %arg13[%c0_40, %c0_41, %c0_42] : memref<2x8x256xf32, #tpu.memory_space<vmem>>, vector<2x8x256xf32>
    tpu.vector_store %arg13[%c0_40, %c0_41, %c0_42], %64 {strides = array<i32>} : memref<2x8x256xf32, #tpu.memory_space<vmem>>, vector<2x8x256xf32>,
    return
  }
  func.func @transform_0(%arg0: i32) -> (i32, i32, i32) {
    %c0_i32 = arith.constant 0 : i32
    %c0_i32_0 = arith.constant 0 : i32
    %c0_i32_1 = arith.constant 0 : i32
    return %arg0, %c0_i32, %c0_i32_0 : i32, i32, i32
  }
  func.func @transform_1(%arg0: i32) -> (i32, i32, i32) {
    %c0_i32 = arith.constant 0 : i32
    %c0_i32_0 = arith.constant 0 : i32
    %c0_i32_1 = arith.constant 0 : i32
    return %arg0, %c0_i32, %c0_i32_0 : i32, i32, i32
  }
  func.func @transform_2(%arg0: i32) -> (i32, i32) {
    %c0_i32 = arith.constant 0 : i32
    %c0_i32_0 = arith.constant 0 : i32
    %c0_i32_1 = arith.constant 0 : i32
    return %c0_i32, %c0_i32_0 : i32, i32
  }
  func.func @transform_3(%arg0: i32) -> (i32, i32) {
    %c0_i32 = arith.constant 0 : i32
    %c0_i32_0 = arith.constant 0 : i32
    %c0_i32_1 = arith.constant 0 : i32
    return %c0_i32, %c0_i32_0 : i32, i32
  }
  func.func @transform_4(%arg0: i32) -> (i32, i32) {
    %c0_i32 = arith.constant 0 : i32
    %c0_i32_0 = arith.constant 0 : i32
    %c0_i32_1 = arith.constant 0 : i32
    return %c0_i32, %c0_i32_0 : i32, i32
  }
  func.func @transform_5(%arg0: i32) -> (i32, i32) {
    %c0_i32 = arith.constant 0 : i32
    %c0_i32_0 = arith.constant 0 : i32
    %c0_i32_1 = arith.constant 0 : i32
    return %c0_i32, %c0_i32_0 : i32, i32
  }
  func.func @transform_6(%arg0: i32) -> (i32, i32) {
    %c0_i32 = arith.constant 0 : i32
    %c0_i32_0 = arith.constant 0 : i32
    %c0_i32_1 = arith.constant 0 : i32
    return %c0_i32, %c0_i32_0 : i32, i32
  }
  func.func @transform_7(%arg0: i32) -> (i32, i32) {
    %c0_i32 = arith.constant 0 : i32
    %c0_i32_0 = arith.constant 0 : i32
    %c0_i32_1 = arith.constant 0 : i32
    return %c0_i32, %c0_i32_0 : i32, i32
  }
  func.func @transform_8(%arg0: i32) -> (i32, i32, i32) {
    %c0_i32 = arith.constant 0 : i32
    %c0_i32_0 = arith.constant 0 : i32
    %c0_i32_1 = arith.constant 0 : i32
    %c0_i32_2 = arith.constant 0 : i32
    return %c0_i32, %c0_i32_0, %c0_i32_1 : i32, i32, i32
  }
  func.func @transform_9(%arg0: i32) -> (i32, i32, i32) {
    %c0_i32 = arith.constant 0 : i32
    %c0_i32_0 = arith.constant 0 : i32
    %c0_i32_1 = arith.constant 0 : i32
    %c0_i32_2 = arith.constant 0 : i32
    return %c0_i32, %c0_i32_0, %c0_i32_1 : i32, i32, i32
  }
  func.func @transform_10(%arg0: i32) -> (i32, i32) {
    %c0_i32 = arith.constant 0 : i32
    %c0_i32_0 = arith.constant 0 : i32
    %c0_i32_1 = arith.constant 0 : i32
    return %c0_i32, %c0_i32_0 : i32, i32
  }
  func.func @transform_11(%arg0: i32) -> (i32, i32) {
    %c0_i32 = arith.constant 0 : i32
    %c0_i32_0 = arith.constant 0 : i32
    %c0_i32_1 = arith.constant 0 : i32
    return %c0_i32, %c0_i32_0 : i32, i32
  }
  func.func @transform_12(%arg0: i32) -> (i32, i32, i32) {
    %c0_i32 = arith.constant 0 : i32
    %c0_i32_0 = arith.constant 0 : i32
    %c0_i32_1 = arith.constant 0 : i32
    return %arg0, %c0_i32, %c0_i32_0 : i32, i32, i32
  }
}

</mosaic_0001>

<bundles_post_ra>
// kernel: tpu_custom_call.1
= control target key start
LH: loop header
LB: loop body
LE: loop exit
PB: predicated region body
PF: predicated region fallthrough
CT: control target
= control target key end

     0   :  { %s3128_s0 = inlined_call_operand.hbm [shape: f32[4,8,384], index: 0, kind: input, shape index: {}]   ;;  %s3129_s1 = inlined_call_operand.hbm [shape: f32[2,16,16], index: 1, kind: input, shape index: {}]   ;;  %s3130_s2 = inlined_call_operand.hbm [shape: f32[256,256], index: 2, kind: input, shape index: {}]   ;;  %s3131_s3 = inlined_call_operand.vmem [shape: f32[1,256], index: 3, kind: input, shape index: {}]   ;;  %s3132_s4 = inlined_call_operand.hbm [shape: f32[256,128], index: 4, kind: input, shape index: {}]   ;;  %s3133_s5 = inlined_call_operand.vmem [shape: f32[1,128], index: 5, kind: input, shape index: {}]   ;;  %s3134_s6 = inlined_call_operand.hbm [shape: f32[256,256], index: 6, kind: input, shape index: {}]   ;;  %s3135_s7 = inlined_call_operand.vmem [shape: f32[1,256], index: 7, kind: input, shape index: {}]   ;;  %s3136_s8 = inlined_call_operand.hbm [shape: f32[2,128,256], index: 8, kind: input, shape index: {}]   ;;  %s3137_s9 = inlined_call_operand.vmem [shape: f32[2,1,256], index: 9, kind: input, shape index: {}]   ;;  %s3138_s10 = inlined_call_operand.hbm [shape: f32[128,128], index: 10, kind: input, shape index: {}]   ;;  %s3139_s11 = inlined_call_operand.vmem [shape: f32[1,128], index: 11, kind: input, shape index: {}]   ;;  %s3140_s12 = inlined_call_operand.hbm [shape: f32[4,8,256], index: 12, kind: output, shape index: {}]  }
   0x1   :  { %3153 = sst [smem:[#allocation23_spill]] %s3128_s0 }
   0x2   :  { %3154 = sst [smem:[#allocation24_spill]] %s3130_s2 }
   0x3   :  { %3155 = sst [smem:[#allocation25_spill]] %s3132_s4 }
   0x4   :  { %3156 = sst [smem:[#allocation26_spill]] %s3134_s6 }
   0x5   :  { %3157 = sst [smem:[#allocation27_spill]] %s3135_s7 }
   0x6   :  { %3158 = sst [smem:[#allocation28_spill]] %s3136_s8 }
   0x7   :  { %3159 = sst [smem:[#allocation29_spill]] %s3137_s9 }
   0x8   :  { %3160 = sst [smem:[#allocation30_spill]] %s3138_s10 }
   0x9   :  { %3161 = sst [smem:[#allocation31_spill]] %s3139_s11 }
   0xa   :  { %3162 = sst [smem:[#allocation32_spill]] %s3140_s12 }
   0xb   :  { %17 = vsyncpa [#allocation3], 0 }
   0xc   :  { %19 = vsyncpa [#allocation3 + $0x1], 0 }
   0xd   :  { %20 = vsyncpa [#allocation6], 0 }
   0xe   :  { %22 = vsyncpa [#allocation6 + $0x1], 0 }
   0xf   :  { %23 = vsyncpa [#allocation9], 0 }
  0x10   :  { %24 = vsyncpa [#allocation12], 0 }
  0x11   :  { %25 = vsyncpa [#allocation4], 0 }
  0x12   :  { %27 = vsyncpa [#allocation4 + $0x1], 0  ;;  %s2678_s21 = smov 0   ;;  %s2680_s22 = smov 0  }
  0x13   :  { %s2682_s23 = smov 0   ;;  %s2684_s24 = smov 0  }
  0x14 LB: > { %3163 = sst [smem:[#allocation21_spill]] %s2590_s23  ;;  %s2596_s25 = smov [#allocation7]   ;;  %s2594_s24 = sphi %s2684_s24, %s3200_s24   ;;  %s2590_s23 = sphi %s2682_s23, %s3197_s23   ;;  %s2586_s22 = sphi %s2680_s22, %s3199_s22   ;;  %s2582_s21 = sphi %s2678_s21, %s3198_s21  }
  0x15   : > { %s338_s26 = sshll.u32 %s2596_s25, 4  ;;  %s2699_s27 = sadd.s32 4294967295, %s2594_s24   ;;  %s2704_s26 = int_to_ptr.vmem [resolvable:$true] %s338_s26 }
  0x16   : > { %p1738_p0 = scmp.ge.s32.totalorder %s2594_s24, 1  ;;  %p3145_p1 = scmp.eq.s32.totalorder %s2699_s27, 0 }
  0x17   : > { %p326_p2 = scmp.lt.s32.totalorder %s2594_s24, 3  ;;  %s2597_s29 = smov [#allocation8]  }
  0x18   : > { %s354_s30 = sshll.u32 %s2597_s29, 4  ;;  %s2598_s14 = smov [#allocation11]   ;;  %s2719_s30 = int_to_ptr.vmem [resolvable:$true] %s354_s30 }
  0x19   : > { %p2706_p3 = pnand %p1738_p0, %p326_p2  ;;  %s2721_s15 = sshll.u32 %s2598_s14, 4  ;;  %s387_s15 = int_to_ptr.vmem [resolvable:$true] %s2721_s15 }
  0x1a   : > { %s3166_s2 = sld [smem:[#allocation24_spill]] }
  0x1b   : > { %s3164_s28 = scalar_select %p2706_p3, 1, 0 }
  0x1c   : > { %p2198_p5 = pneg %p2706_p3 }
  0x1e   : > { %p2715_p6 = pnand %p2198_p5, %p3145_p1 }
  0x20   : > { %s2312_s18 = scalar_lea.hbm %s3166_s2, 8192  ;;  %p2731_p8 = pneg %p2715_p6 }
  0x21   : > { %p2313_p7 = scmp.ne.s32.totalorder %s3166_s2, %s2312_s18  ;;  %p2319_p11 = scmp.lt.u32.totalorder %s2312_s18, %s3166_s2 }
  0x23   : > { %p2315_p9 = pnand %p2731_p8, %p2313_p7 }
  0x25   : > { %p2316_p10 = pneg %p2315_p9 }
  0x27   : > { %p2321_p12 = pnand %p2319_p11, %p2316_p10 }
  0x29   : > { %2324 = shalt.err (!%p2321_p12)
}
  0x2a   : > { %s2325_s16 = scalar_lea.vmem %s2704_s26, 8192  ;;  %p2333_p5 = scmp.lt.s32.totalorder %s2704_s26, %s2704_s26 }
  0x2b   : > { %p2326_p13 = scmp.ne.s32.totalorder %s2704_s26, %s2325_s16  ;;  %p2334_p4 = scmp.lt.s32.totalorder %s2325_s16, %s2325_s16 }
  0x2d   : > { %p2328_p0 = pnand %p2326_p13, %p2731_p8  ;;  %p2335_p7 = por %p2334_p4, %p2333_p5 }
  0x2f   : > { %p2329_p2 = pneg %p2328_p0 }
  0x31   : > { %p2336_p9 = pnand %p2335_p7, %p2329_p2 }
  0x33   : > { %2339 = shalt.err (!%p2336_p9)
}
  0x34   : > { %s3143_s17 = smov 256   ;;  %s2600_s18 = smov 16  }
  0x35   : > { %2201 = dma.hbm_to_vmem [thread:$0]  (!%p2715_p6), %s3166_s2, 8192, %s2704_s26, [#allocation6], %s3143_s17, %s3143_s17, %s2600_s18  }
  0x36   : > { %s3168_s4 = sld [smem:[#allocation25_spill]] }
  0x3c   : > { %s2340_s16 = scalar_lea.hbm %s3168_s4, 4096 }
  0x3d   : > { %p2341_p4 = scmp.ne.s32.totalorder %s3168_s4, %s2340_s16  ;;  %p2347_p12 = scmp.lt.u32.totalorder %s2340_s16, %s3168_s4 }
  0x3f   : > { %p2343_p10 = pnand %p2341_p4, %p2731_p8 }
  0x41   : > { %p2344_p11 = pneg %p2343_p10 }
  0x43   : > { %p2349_p13 = pnand %p2347_p12, %p2344_p11 }
  0x45   : > { %2352 = shalt.err (!%p2349_p13)
}
  0x46   : > { %s2353_s26 = scalar_lea.vmem %s2719_s30, 4096  ;;  %p2361_p7 = scmp.lt.s32.totalorder %s2719_s30, %s2719_s30 }
  0x47   : > { %p2354_p0 = scmp.ne.s32.totalorder %s2719_s30, %s2353_s26  ;;  %p2362_p9 = scmp.lt.s32.totalorder %s2353_s26, %s2353_s26 }
  0x49   : > { %p2356_p2 = pnand %p2354_p0, %p2731_p8  ;;  %p2363_p4 = por %p2362_p9, %p2361_p7 }
  0x4b   : > { %p2357_p5 = pneg %p2356_p2 }
  0x4d   : > { %p2364_p10 = pnand %p2363_p4, %p2357_p5 }
  0x4f   : > { %2367 = shalt.err (!%p2364_p10)
}
  0x50   : > { %s3147_s11 = smov 128   ;;  %s3149_s7 = smov 8  }
  0x51   : > { %2204 = dma.hbm_to_vmem [thread:$0]  (!%p2715_p6), %s3168_s4, 4096, %s2719_s30, [#allocation9], %s3147_s11, %s3147_s11, %s3149_s7  }
  0x52   : > { %s3169_s8 = sld [smem:[#allocation28_spill]] }
  0x58   : > { %s2368_s29 = scalar_lea.hbm %s3169_s8, 8192 }
  0x59   : > { %p2369_p11 = scmp.ne.s32.totalorder %s3169_s8, %s2368_s29  ;;  %p2375_p0 = scmp.lt.u32.totalorder %s2368_s29, %s3169_s8 }
  0x5b   : > { %p2371_p12 = pnand %p2369_p11, %p2731_p8 }
  0x5d   : > { %p2372_p13 = pneg %p2371_p12 }
  0x5f   : > { %p2377_p2 = pnand %p2375_p0, %p2372_p13 }
  0x61   : > { %2380 = shalt.err (!%p2377_p2)
}
  0x62   : > { %s2381_s9 = scalar_lea.vmem %s387_s15, 8192  ;;  %p2389_p4 = scmp.lt.s32.totalorder %s387_s15, %s387_s15 }
  0x63   : > { %p2382_p5 = scmp.ne.s32.totalorder %s387_s15, %s2381_s9  ;;  %p2390_p10 = scmp.lt.s32.totalorder %s2381_s9, %s2381_s9 }
  0x65   : > { %p2384_p7 = pnand %p2382_p5, %p2731_p8  ;;  %p2391_p1 = por %p2390_p10, %p2389_p4 }
  0x67   : > { %p2385_p9 = pneg %p2384_p7 }
  0x69   : > { %p2392_p3 = pnand %p2391_p1, %p2385_p9 }
  0x6b   : > { %2395 = shalt.err (!%p2392_p3)
}
  0x6c   : > { %s3170_s30 = smov 256   ;;  %s2603_s19 = smov [#allocation10]  }
  0x6d   : > { %2210 = dma.hbm_to_vmem [thread:$0]  (!%p2715_p6), %s3169_s8, 8192, %s387_s15, [#allocation12], %s3170_s30, %s3170_s30, %s2600_s18  }
  0x6e   : > { %s370_s20 = sshll.u32 %s2603_s19, 4  ;;  %s2604_s29 = smov [#allocation13]   ;;  %s371_s20 = int_to_ptr.vmem [resolvable:$true] %s370_s20 }
  0x6f   : > { %s402_s14 = sshll.u32 %s2604_s29, 4  ;;  %s3171_s6 = sld [smem:[#allocation26_spill]]  ;;  %s403_s14 = int_to_ptr.vmem [resolvable:$true] %s402_s14 }
  0x75   : > { %s2396_s9 = scalar_lea.hbm %s3171_s6, 8192 }
  0x76   : > { %p2397_p1 = scmp.ne.s32.totalorder %s3171_s6, %s2396_s9  ;;  %p2403_p12 = scmp.lt.u32.totalorder %s2396_s9, %s3171_s6 }
  0x78   : > { %p2399_p3 = pnand %p2397_p1, %p2731_p8 }
  0x7a   : > { %p2400_p11 = pneg %p2399_p3 }
  0x7c   : > { %p2405_p13 = pnand %p2403_p12, %p2400_p11 }
  0x7e   : > { %2408 = shalt.err (!%p2405_p13)
}
  0x7f   : > { %s2409_s15 = scalar_lea.vmem %s371_s20, 8192  ;;  %p2417_p7 = scmp.lt.s32.totalorder %s371_s20, %s371_s20 }
  0x80   : > { %p2410_p0 = scmp.ne.s32.totalorder %s371_s20, %s2409_s15  ;;  %p2418_p9 = scmp.lt.s32.totalorder %s2409_s15, %s2409_s15 }
  0x82   : > { %p2412_p2 = pnand %p2410_p0, %p2731_p8  ;;  %p2419_p4 = por %p2418_p9, %p2417_p7 }
  0x84   : > { %p2413_p5 = pneg %p2412_p2 }
  0x86   : > { %p2420_p10 = pnand %p2419_p4, %p2413_p5 }
  0x88   : > { %2423 = shalt.err (!%p2420_p10)
}
  0x89   : > { %2207 = dma.hbm_to_vmem [thread:$0]  (!%p2715_p6), %s3171_s6, 8192, %s371_s20, [#allocation9], %s3170_s30, %s3170_s30, %s2600_s18  }
  0x8a   : > { %s3172_s10 = sld [smem:[#allocation30_spill]] }
  0x90   : > { %s2424_s19 = scalar_lea.hbm %s3172_s10, 2048 }
  0x91   : > { %p2425_p1 = scmp.ne.s32.totalorder %s3172_s10, %s2424_s19  ;;  %p2431_p12 = scmp.lt.u32.totalorder %s2424_s19, %s3172_s10 }
  0x93   : > { %p2427_p3 = pnand %p2425_p1, %p2731_p8 }
  0x95   : > { %p2428_p11 = pneg %p2427_p3 }
  0x97   : > { %p2433_p13 = pnand %p2431_p12, %p2428_p11 }
  0x99   : > { %2436 = shalt.err (!%p2433_p13)
}
  0x9a   : > { %s2437_s17 = scalar_lea.vmem %s403_s14, 2048  ;;  %p2445_p7 = scmp.lt.s32.totalorder %s403_s14, %s403_s14 }
  0x9b   : > { %p2438_p0 = scmp.ne.s32.totalorder %s403_s14, %s2437_s17  ;;  %p2446_p9 = scmp.lt.s32.totalorder %s2437_s17, %s2437_s17 }
  0x9d   : > { %p2440_p2 = pnand %p2438_p0, %p2731_p8  ;;  %p2447_p4 = por %p2446_p9, %p2445_p7 }
  0x9f   : > { %p2441_p5 = pneg %p2440_p2 }
  0xa1   : > { %p2448_p10 = pnand %p2447_p4, %p2441_p5 }
  0xa3   : > { %2451 = shalt.err (!%p2448_p10)
}
  0xa4   : > { %s3173_s18 = smov 8   ;;  %s3174_s30 = smov 128  }
  0xa5   : > { %2213 = dma.hbm_to_vmem [thread:$0]  (!%p2715_p6), %s3172_s10, 2048, %s403_s14, [#allocation12], %s3174_s30, %s3174_s30, %s3173_s18  }
  0xa6   : > { %s1737_s13 = sadd.s32 4294967294, %s2594_s24   ;;  %s2847_s25 = sadd.s32 1, %s2594_s24  }
  0xa7   : > { %s40_s2 = sadd.s32 1, %s2590_s23  ;;  %s37_s11 = ssub.s32 %s2594_s24, %s2847_s25 }
  0xa8   : > { %p47_p8 = scmp.ne.s32.totalorder %s2590_s23, %s2586_s22  ;;  %p38_p1 = scmp.eq.s32.totalorder %s37_s11, 0 }
  0xa9   : > { %p48_p3 = scmp.eq.s32.totalorder %s2594_s24, 0  ;;  %p53_p11 = scmp.ne.s32.totalorder %s2586_s22, %s2582_s21 }
  0xaa   : > { %p313_p12 = scmp.eq.s32.totalorder %s2699_s27, 1  ;;  %p3176_p0 = scmp.eq.s32.totalorder %s2699_s27, 0 }
  0xab   : > { %s2859_s7 = scalar_select %p38_p1, %s2590_s23, %s40_s2  }
  0xac   : > { %p49_p13 = por %p48_p3, %p47_p8  ;;  %p2863_p2 = por %p3176_p0, %p53_p11 }
  0xad   : > { %3175 = sst [smem:[#allocation22_spill]] %s2859_s7  ;;  %p2867_p6 = por %p313_p12, %p47_p8 }
  0xae   : > { %p319_p5 = scmp.eq.s32.totalorder %s1737_s13, 1  ;;  %p2230_p7 = scmp.lt.s32.totalorder %s2594_s24, 2 }
  0xaf   : > { %s3178_s14 = scalar_select %p2867_p6, 1, 0 }
  0xb0   : > { %s2873_s19 = sand.u32 1, %s2590_s23   ;;  %p2875_p9 = por %p319_p5, %p53_p11 }
  0xb1   : > { %s2169_s16 = smul.u32 48, %s2873_s19  ;;  %p2880_p4 = pnand %p2230_p7, %p49_p13 }
  0xb2   : > { %s3179_s29 = scalar_select %p2875_p9, 1, 0 }
  0xb3   : > { %s2170_s9 = smul.u32 768, %s2594_s24  ;;  %s3181_s0 = sld [smem:[#allocation23_spill]] }
  0xb4   : > { %s423_s13 = scalar_lea.vmem [#allocation2], %s2169_s16  ;;  %s420_s11 = scalar_lea.sflag [#allocation3], %s2873_s19 }
  0xb5   : > { %s431_s2 = sshll.u32 %s423_s13, 4  ;;  %p2454_p8 = pneg %p2880_p4  ;;  %s2890_s2 = int_to_ptr.vmem [resolvable:$true] %s431_s2 }
  0xb9   : > { %s2888_s15 = scalar_lea.hbm %s3181_s0, %s2170_s9  ;;  %s2457_s20 = scalar_lea.hbm %s3181_s0, 1536 }
  0xba   : > { %s2452_s4 = scalar_lea.hbm %s2888_s15, 768  ;;  %p2458_p11 = scmp.lt.u32.totalorder %s2888_s15, %s3181_s0 }
  0xbb   : > { %p2453_p10 = scmp.ne.s32.totalorder %s2888_s15, %s2452_s4  ;;  %p2459_p12 = scmp.lt.u32.totalorder %s2457_s20, %s2452_s4 }
  0xbc   : > { %p2461_p0 = scmp.lt.u32.totalorder %s2452_s4, %s2888_s15 }
  0xbd   : > { %p2455_p1 = pnand %p2454_p8, %p2453_p10  ;;  %p2460_p13 = por %p2459_p12, %p2458_p11 }
  0xbf   : > { %p2456_p3 = pneg %p2455_p1  ;;  %p2462_p5 = por %p2461_p0, %p2460_p13 }
  0xc1   : > { %p2463_p7 = pnand %p2462_p5, %p2456_p3 }
  0xc3   : > { %2466 = shalt.err (!%p2463_p7)
}
  0xc4   : > { %s2467_s16 = scalar_lea.vmem %s2890_s2, 768  ;;  %s2605_s13 = smov [#allocation2]  }
  0xc5   : > { %p2468_p10 = scmp.ne.s32.totalorder %s2890_s2, %s2467_s16  ;;  %s2472_s17 = sshll.u32 %s2605_s13, 4  ;;  %s2473_s17 = int_to_ptr.vmem [resolvable:$false] %s2472_s17 }
  0xc6   : > { %s2474_s6 = scalar_lea.vmem %s2473_s17, 1536  ;;  %p2475_p6 = scmp.lt.s32.totalorder %s2890_s2, %s2473_s17 }
  0xc7   : > { %p2470_p1 = pnand %p2468_p10, %p2454_p8  ;;  %p2476_p11 = scmp.lt.s32.totalorder %s2474_s6, %s2467_s16 }
  0xc9   : > { %p2471_p9 = pneg %p2470_p1  ;;  %p2477_p12 = por %p2476_p11, %p2475_p6 }
  0xcb   : > { %p2478_p13 = pnand %p2477_p12, %p2471_p9 }
  0xcd   : > { %2481 = shalt.err (!%p2478_p13)
}
  0xce   : > { %s2606_s4 = smov 384   ;;  %s2607_s8 = smov 24  }
  0xcf   : > { %2217 = dma.hbm_to_vmem [thread:$0]  (!%p2880_p4), %s2888_s15, 768, %s2890_s2, %s420_s11, %s2606_s4, %s2606_s4, %s2607_s8  }
  0xd0   : > { %s441_s9 = sand.u32 1, %s2594_s24   ;;  %s1748_s20 = sshll.u32 %s2873_s19, 4 }
  0xd1   : > { %s1774_s13 = sshll.u32 %s2594_s24, 8  ;;  %s445_s16 = scalar_lea.vmem [#allocation5], %s1748_s20 }
  0xd2   : > { %s452_s17 = sshll.u32 %s445_s16, 4  ;;  %s2926_s10 = scalar_lea.hbm %s3129_s1, %s1774_s13  ;;  %s2928_s17 = int_to_ptr.vmem [resolvable:$true] %s452_s17 }
  0xd3   : > { %s2930_s7 = scalar_lea.sflag [#allocation6], %s441_s9  ;;  %s2482_s23 = scalar_lea.hbm %s2926_s10, 256 }
  0xd4   : > { %p2483_p6 = scmp.ne.s32.totalorder %s2926_s10, %s2482_s23  ;;  %s2487_s0 = scalar_lea.hbm %s3129_s1, 512 }
  0xd5   : > { %p2488_p0 = scmp.lt.u32.totalorder %s2926_s10, %s3129_s1  ;;  %p2489_p5 = scmp.lt.u32.totalorder %s2487_s0, %s2482_s23 }
  0xd6   : > { %p2485_p9 = pnand %p2483_p6, %p2454_p8  ;;  %p2491_p10 = scmp.lt.u32.totalorder %s2482_s23, %s2926_s10 }
  0xd7   : > { %p2490_p7 = por %p2489_p5, %p2488_p0 }
  0xd8   : > { %p2486_p3 = pneg %p2485_p9 }
  0xd9   : > { %p2492_p1 = por %p2491_p10, %p2490_p7 }
  0xdb   : > { %p2493_p11 = pnand %p2492_p1, %p2486_p3 }
  0xdd   : > { %2496 = shalt.err (!%p2493_p11)
}
  0xde   : > { %s2497_s4 = scalar_lea.vmem %s2928_s17, 256  ;;  %s2608_s8 = smov [#allocation5]  }
  0xdf   : > { %p2498_p12 = scmp.ne.s32.totalorder %s2928_s17, %s2497_s4  ;;  %s2502_s9 = sshll.u32 %s2608_s8, 4  ;;  %s2503_s9 = int_to_ptr.vmem [resolvable:$false] %s2502_s9 }
  0xe0   : > { %s2504_s20 = scalar_lea.vmem %s2503_s9, 512  ;;  %p2505_p9 = scmp.lt.s32.totalorder %s2928_s17, %s2503_s9 }
  0xe1   : > { %p2500_p13 = pnand %p2498_p12, %p2454_p8  ;;  %p2506_p0 = scmp.lt.s32.totalorder %s2504_s20, %s2497_s4 }
  0xe3   : > { %p2501_p6 = pneg %p2500_p13  ;;  %p2507_p5 = por %p2506_p0, %p2505_p9 }
  0xe5   : > { %p2508_p7 = pnand %p2507_p5, %p2501_p6 }
  0xe7   : > { %2511 = shalt.err (!%p2508_p7)
}
  0xe8   : > { %2220 = dma.hbm_to_vmem [thread:$0]  (!%p2880_p4), %s2926_s10, 256, %s2928_s17, %s2930_s7, %s3174_s30, %s3174_s30, %s3173_s18  }
  0xe9   : > { %p3182_p8 = scmp.ne.s32.totalorder %s3164_s28, 0 }
  0xea   : > { %s2962_s23 = sand.u32 (!%p3182_p8), 1, %s2586_s22  }
  0xeb   : > { %464 = sbr.rel (%p3182_p8) target bundleno = 2379 (0x94b), region = 68  ;;  %s467_s16 = scalar_lea.sflag (!%p3182_p8), [#allocation3], %s2962_s23 }
  0xec   : > { %s2171_s13 = smul.u32 (!%p3182_p8), 48, %s2962_s23 }
  0xee   : > { %s2966_s6 = scalar_lea.vmem (!%p3182_p8), [#allocation2], %s2171_s13 }
  0xf2   : > { %2557 = dma.done.wait (%p2863_p2), %s467_s16, 768  }
  0xf3   : > { %2559 = vsyncadd (%p2863_p2), %s467_s16, 4294966528  ;;  %s475_s10 = sand.u32 1, %s2699_s27   ;;  %s1752_s28 = sshll.u32 %s2962_s23, 4 }
  0xf4   : > { %s476_s18 = scalar_lea.sflag [#allocation6], %s475_s10  ;;  %s2974_s30 = scalar_lea.vmem [#allocation5], %s1752_s28 }
  0xf5   : > { %2561 = dma.done.wait (%p2863_p2), %s476_s18, 256  }
  0xf6   : > { %2563 = vsyncadd (%p2863_p2), %s476_s18, 4294967040  ;;  %p3183_p4 = scmp.eq.s32.totalorder %s2699_s27, 0 }
  0xf8   : > { %2565 = dma.done.wait (%p3183_p4), [#allocation6], 8192   ;;  %p3184_p3 = pmov %p3183_p4 }
  0xfa   : > { %2567 = vsyncadd (%p3184_p3), [#allocation6], 4294959104  ;;  %p3185_p10 = pmov %p3184_p3 }
  0xfb   : > { %p3186_p1 = pmov %p3184_p3 }
  0xfc   : > { %2569 = dma.done.wait (%p3185_p10), [#allocation9], 12288  }
  0xfd   : > { %2571 = vsyncadd (%p3186_p1), [#allocation9], 4294955008  ;;  %p3187_p11 = pmov %p3186_p1 }
  0xfe   : > { %p3188_p12 = pmov %p3186_p1 }
  0xff   : > { %2573 = dma.done.wait (%p3187_p11), [#allocation12], 10240  }
 0x100   : > { %2575 = vsyncadd (%p3188_p12), [#allocation12], 4294957056  ;;  %v556_v0 = vld [vmem:[#allocation7 + $0x8] sm:$0xff]  ;;  %v558_v1 = vld [vmem:[#allocation7 + $0x18] sm:$0xff]  ;;  %vm981_vm0 = vcmask 130048   ;;  %s3189_s0 = sld [smem:[#allocation27_spill]] }
 0x101   : > { %v555_v2 = vld [vmem:[#allocation7] sm:$0xff]  ;;  %v1901_v3 = vpack.c.bf16 %v558_v1, %v556_v0  ;;  %v557_v4 = vld [vmem:[#allocation7 + $0x10] sm:$0xff]  ;;  %v560_v5 = vld [vmem:[#allocation7 + $0x28] sm:$0xff]  ;;  %s3190_s4 = sld [smem:[#allocation29_spill]]  ;;  %s1758_s20 = sshll.u32 %s2962_s23, 5 }
 0x102   : > { %v562_v6 = vld [vmem:[#allocation7 + $0x38] sm:$0xff]  ;;  %v1903_v7 = vpack.c.bf16 %v557_v4, %v555_v2  ;;  %v559_v9 = vld [vmem:[#allocation7 + $0x20] sm:$0xff]  ;;  %v561_v10 = vld [vmem:[#allocation7 + $0x30] sm:$0xff]  ;;  %s544_s13 = scalar_lea.vmem [#allocation14], %s1758_s20  ;;  %s3191_s28 = sld [smem:[#allocation31_spill]] }
 0x103   : > { %v1905_v8 = vpack.c.bf16 %v562_v6, %v560_v5  ;;  %v564_v11 = vld [vmem:[#allocation7 + $0x48] sm:$0xff]  ;;  %1902 = vmatprep.subr.bf16.mxu0 %v1901_v3  ;;  %v566_v12 = vld [vmem:[#allocation7 + $0x58] sm:$0xff]  ;;  %v1907_v13 = vpack.c.bf16 %v561_v10, %v559_v9  ;;  %v563_v15 = vld [vmem:[#allocation7 + $0x40] sm:$0xff]  ;;  %s1776_s18 = sshll.u32 %s2699_s27, 9  ;;  %s3192_s26 = sld [smem:[#allocation32_spill]] }
 0x104   : > { %1904 = vmatpush1.bf16.msra.mxu0 %v1903_v7  ;;  %v1909_v14 = vpack.c.bf16 %v566_v12, %v564_v11  ;;  %v565_v16 = vld [vmem:[#allocation7 + $0x50] sm:$0xff]  ;;  %v568_v17 = vld [vmem:[#allocation7 + $0x68] sm:$0xff]  ;;  %v570_v18 = vld [vmem:[#allocation7 + $0x78] sm:$0xff]  ;;  %s1580_s27 = scalar_lea.sflag [#allocation4], %s2962_s23  ;;  %p3193_p13 = scmp.ne.s32.totalorder %s3178_s14, 0 }
 0x105   : > { %1906 = vmatprep.subr.bf16.mxu0 %v1905_v8  ;;  %v1911_v19 = vpack.c.bf16 %v565_v16, %v563_v15  ;;  %v1913_v20 = vpack.c.bf16 %v570_v18, %v568_v17  ;;  %v567_v21 = vld [vmem:[#allocation7 + $0x60] sm:$0xff]  ;;  %v569_v22 = vld [vmem:[#allocation7 + $0x70] sm:$0xff]  ;;  %v572_v23 = vld [vmem:[#allocation7 + $0x88] sm:$0xff]  ;;  %s2610_s15 = smov [#allocation14]  }
 0x106   : > { %v574_v24 = vld [vmem:[#allocation7 + $0x98] sm:$0xff]  ;;  %v1915_v25 = vpack.c.bf16 %v569_v22, %v567_v21  ;;  %v571_v27 = vld [vmem:[#allocation7 + $0x80] sm:$0xff]  ;;  %v573_v28 = vld [vmem:[#allocation7 + $0x90] sm:$0xff] }
 0x107   : > { %v1917_v26 = vpack.c.bf16 %v574_v24, %v572_v23  ;;  %v576_v29 = vld [vmem:[#allocation7 + $0xa8] sm:$0xff]  ;;  %v578_v30 = vld [vmem:[#allocation7 + $0xb8] sm:$0xff]  ;;  %v1919_v31 = vpack.c.bf16 %v573_v28, %v571_v27  ;;  %v575_v33 = vld [vmem:[#allocation7 + $0xa0] sm:$0xff] }
 0x108   : > { %1908 = vmatpush1.bf16.msra.mxu0 %v1907_v13  ;;  %v1921_v32 = vpack.c.bf16 %v578_v30, %v576_v29  ;;  %v577_v34 = vld [vmem:[#allocation7 + $0xb0] sm:$0xff]  ;;  %v580_v35 = vld [vmem:[#allocation7 + $0xc8] sm:$0xff]  ;;  %v582_v36 = vld [vmem:[#allocation7 + $0xd8] sm:$0xff] }
 0x109   : > { %1910 = vmatprep.subr.bf16.mxu0 %v1909_v14  ;;  %v1923_v37 = vpack.c.bf16 %v577_v34, %v575_v33  ;;  %v1925_v38 = vpack.c.bf16 %v582_v36, %v580_v35  ;;  %v579_v39 = vld [vmem:[#allocation7 + $0xc0] sm:$0xff]  ;;  %v581_v40 = vld [vmem:[#allocation7 + $0xd0] sm:$0xff]  ;;  %v584_v42 = vld [vmem:[#allocation7 + $0xe8] sm:$0xff]  ;;  %s3081_s17 = scalar_lea.hbm %s3192_s26, %s1776_s18 }
 0x10a   : > { %v549_v41 = vld [vmem:[%s2966_s6 + $0x10] sm:$0xff]  ;;  %v586_v43 = vld [vmem:[#allocation7 + $0xf8] sm:$0xff]  ;;  %v729_v47 = vld [vmem:[#allocation8 + $0x88] sm:$0xff]  ;;  %v1927_v50 = vpack.c.bf16 %v581_v40, %v579_v39 }
 0x10b   : > { %695 = vmatprep.mubr.f32.mxu0 %v549_v41  ;;  %v728_v44 = vld [vmem:[#allocation8 + $0x80] sm:$0xff]  ;;  %v585_v46 = vld [vmem:[#allocation7 + $0xf0] sm:$0xff]  ;;  %v713_v49 = vld [vmem:[#allocation8 + $0x8] sm:$0xff]  ;;  %v1929_v56 = vpack.c.bf16 %v586_v43, %v584_v42 }
 0x10c   : > { %1912 = vmatpush1.bf16.msra.mxu0 %v1911_v19  ;;  %v583_v45 = vld [vmem:[#allocation7 + $0xe0] sm:$0xff]  ;;  %v1965_v51 = vpack.c.bf16 %v729_v47, %v728_v44  ;;  %v730_v53 = vld [vmem:[#allocation8 + $0x90] sm:$0xff]  ;;  %v731_v54 = vld [vmem:[#allocation8 + $0x98] sm:$0xff] }
 0x10d   : > { %1914 = vmatprep.subr.bf16.mxu0 %v1913_v20  ;;  %v712_v48 = vld [vmem:[#allocation8] sm:$0xff]  ;;  %v714_v55 = vld [vmem:[#allocation8 + $0x10] sm:$0xff]  ;;  %v1969_v57 = vpack.c.bf16 %v731_v54, %v730_v53  ;;  %v715_v58 = vld [vmem:[#allocation8 + $0x18] sm:$0xff]  ;;  %v1931_v0 = vpack.c.bf16 %v585_v46, %v583_v45 }
 0x10e   : > { %v1967_v52 = vpack.c.bf16 %v713_v49, %v712_v48  ;;  %v732_v59 = vld [vmem:[#allocation8 + $0xa0] sm:$0xff]  ;;  %v733_v60 = vld [vmem:[#allocation8 + $0xa8] sm:$0xff]  ;;  %v590_v62 = vld [vmem:[#allocation7 + $0x118] sm:$0xff]  ;;  %1966 = vmatprep.subr.bf16.mxu1 %v1965_v51  ;;  %v1971_v63 = vpack.c.bf16 %v715_v58, %v714_v55 }
 0x10f   : > { %v588_v61 = vld [vmem:[#allocation7 + $0x108] sm:$0xff]  ;;  %v587_v1 = vld [vmem:[#allocation7 + $0x100] sm:$0xff]  ;;  %v1973_v2 = vpack.c.bf16 %v733_v60, %v732_v59  ;;  %v589_v6 = vld [vmem:[#allocation7 + $0x110] sm:$0xff] }
 0x110   : > { %1916 = vmatpush1.bf16.msra.mxu0 %v1915_v25  ;;  %1968 = vmatpush3.bf16.msra.mxu1 %v1967_v52  ;;  %v716_v3 = vld [vmem:[#allocation8 + $0x20] sm:$0xff]  ;;  %v717_v4 = vld [vmem:[#allocation8 + $0x28] sm:$0xff]  ;;  %v1933_v5 = vpack.c.bf16 %v590_v62, %v588_v61  ;;  %v734_v7 = vld [vmem:[#allocation8 + $0xb0] sm:$0xff]  ;;  %v1935_v12 = vpack.c.bf16 %v589_v6, %v587_v1 }
 0x111   : > { %1918 = vmatprep.subr.bf16.mxu0 %v1917_v26  ;;  %1970 = vmatprep.subr.bf16.mxu1 %v1969_v57  ;;  %v735_v8 = vld [vmem:[#allocation8 + $0xb8] sm:$0xff]  ;;  %v592_v9 = vld [vmem:[#allocation7 + $0x128] sm:$0xff]  ;;  %v1975_v11 = vpack.c.bf16 %v717_v4, %v716_v3  ;;  %v718_v14 = vld [vmem:[#allocation8 + $0x30] sm:$0xff] }
 0x112   : > { %v594_v10 = vld [vmem:[#allocation7 + $0x138] sm:$0xff]  ;;  %v1977_v13 = vpack.c.bf16 %v735_v8, %v734_v7  ;;  %v591_v17 = vld [vmem:[#allocation7 + $0x120] sm:$0xff]  ;;  %v593_v18 = vld [vmem:[#allocation7 + $0x130] sm:$0xff] }
 0x113   : > { %v719_v15 = vld [vmem:[#allocation8 + $0x38] sm:$0xff]  ;;  %v1937_v16 = vpack.c.bf16 %v594_v10, %v592_v9  ;;  %v596_v19 = vld [vmem:[#allocation7 + $0x148] sm:$0xff]  ;;  %v1939_v22 = vpack.c.bf16 %v593_v18, %v591_v17  ;;  %v595_v24 = vld [vmem:[#allocation7 + $0x140] sm:$0xff] }
 0x114   : > { %1920 = vmatpush1.bf16.msra.mxu0 %v1919_v31  ;;  %1972 = vmatpush3.bf16.msra.mxu1 %v1971_v63  ;;  %v598_v20 = vld [vmem:[#allocation7 + $0x158] sm:$0xff]  ;;  %v1979_v21 = vpack.c.bf16 %v719_v15, %v718_v14  ;;  %v597_v25 = vld [vmem:[#allocation7 + $0x150] sm:$0xff]  ;;  %v600_v26 = vld [vmem:[#allocation7 + $0x168] sm:$0xff] }
 0x115   : > { %1922 = vmatprep.subr.bf16.mxu0 %v1921_v32  ;;  %1974 = vmatprep.subr.bf16.mxu1 %v1973_v2  ;;  %v1941_v23 = vpack.c.bf16 %v598_v20, %v596_v19  ;;  %v602_v27 = vld [vmem:[#allocation7 + $0x178] sm:$0xff]  ;;  %v1943_v28 = vpack.c.bf16 %v597_v25, %v595_v24  ;;  %v599_v30 = vld [vmem:[#allocation7 + $0x160] sm:$0xff]  ;;  %v601_v31 = vld [vmem:[#allocation7 + $0x170] sm:$0xff] }
 0x116   : > { %v1945_v29 = vpack.c.bf16 %v602_v27, %v600_v26  ;;  %v604_v32 = vld [vmem:[#allocation7 + $0x188] sm:$0xff]  ;;  %v606_v33 = vld [vmem:[#allocation7 + $0x198] sm:$0xff]  ;;  %v1947_v34 = vpack.c.bf16 %v601_v31, %v599_v30  ;;  %v603_v36 = vld [vmem:[#allocation7 + $0x180] sm:$0xff] }
 0x117   : > { %v1949_v35 = vpack.c.bf16 %v606_v33, %v604_v32  ;;  %v610_v39 = vld [vmem:[#allocation7 + $0x1b8] sm:$0xff]  ;;  %v607_v42 = vld [vmem:[#allocation7 + $0x1a0] sm:$0xff]  ;;  %v609_v43 = vld [vmem:[#allocation7 + $0x1b0] sm:$0xff] }
 0x118   : > { %1924 = vmatpush1.bf16.msra.mxu0 %v1923_v37  ;;  %1976 = vmatpush3.bf16.msra.mxu1 %v1975_v11  ;;  %v605_v37 = vld [vmem:[#allocation7 + $0x190] sm:$0xff]  ;;  %v612_v44 = vld [vmem:[#allocation7 + $0x1c8] sm:$0xff]  ;;  %v614_v45 = vld [vmem:[#allocation7 + $0x1d8] sm:$0xff]  ;;  %v1955_v46 = vpack.c.bf16 %v609_v43, %v607_v42 }
 0x119   : > { %1926 = vmatprep.subr.bf16.mxu0 %v1925_v38  ;;  %1978 = vmatprep.subr.bf16.mxu1 %v1977_v13  ;;  %v608_v38 = vld [vmem:[#allocation7 + $0x1a8] sm:$0xff]  ;;  %v1951_v40 = vpack.c.bf16 %v605_v37, %v603_v36  ;;  %v1957_v47 = vpack.c.bf16 %v614_v45, %v612_v44  ;;  %v611_v48 = vld [vmem:[#allocation7 + $0x1c0] sm:$0xff]  ;;  %v613_v49 = vld [vmem:[#allocation7 + $0x1d0] sm:$0xff] }
 0x11a   : > { %v1953_v41 = vpack.c.bf16 %v610_v39, %v608_v38  ;;  %v618_v51 = vld [vmem:[#allocation7 + $0x1f8] sm:$0xff]  ;;  %v1959_v52 = vpack.c.bf16 %v613_v49, %v611_v48  ;;  %v615_v54 = vld [vmem:[#allocation7 + $0x1e0] sm:$0xff]  ;;  %v617_v55 = vld [vmem:[#allocation7 + $0x1f0] sm:$0xff] }
 0x11b   : > { %v548_v57 = vld [vmem:[%s2966_s6 + $0x8] sm:$0xff]  ;;  %v551_v59 = vld [vmem:[%s2966_s6 + $0x20] sm:$0xff] }
 0x11c   : > { %1928 = vmatpush1.bf16.msra.mxu0 %v1927_v50  ;;  %1980 = vmatpush3.bf16.msra.mxu1 %v1979_v21  ;;  %v616_v50 = vld [vmem:[#allocation7 + $0x1e8] sm:$0xff]  ;;  %v736_v60 = vld [vmem:[#allocation8 + $0xc0] sm:$0xff]  ;;  %v738_v2 = vld [vmem:[#allocation8 + $0xd0] sm:$0xff] }
 0x11d   : > { %1930 = vmatprep.subr.bf16.mxu0 %v1929_v56  ;;  %v1961_v53 = vpack.c.bf16 %v618_v51, %v616_v50  ;;  %v1963_v56 = vpack.c.bf16 %v617_v55, %v615_v54  ;;  %v2995_v58 = vld [vmem:[%s2966_s6 + $0x28] sm:$0xff]  ;;  %v720_v63 = vld [vmem:[#allocation8 + $0x40] sm:$0xff]  ;;  %v742_v14 = vld [vmem:[#allocation8 + $0xf0] sm:$0xff] }
 0x11e   : > { %v737_v61 = vld [vmem:[#allocation8 + $0xc8] sm:$0xff]  ;;  %v739_v3 = vld [vmem:[#allocation8 + $0xd8] sm:$0xff]  ;;  %v740_v8 = vld [vmem:[#allocation8 + $0xe0] sm:$0xff] }
 0x11f   : > { %v1981_v62 = vpack.c.bf16 %v737_v61, %v736_v60  ;;  %v1985_v4 = vpack.c.bf16 %v739_v3, %v738_v2  ;;  %v723_v6 = vld [vmem:[#allocation8 + $0x58] sm:$0xff]  ;;  %v741_v9 = vld [vmem:[#allocation8 + $0xe8] sm:$0xff]  ;;  %v724_v11 = vld [vmem:[#allocation8 + $0x60] sm:$0xff] }
 0x120   : > { %1932 = vmatpush1.bf16.msra.mxu0 %v1931_v0  ;;  %v721_v0 = vld [vmem:[#allocation8 + $0x48] sm:$0xff]  ;;  %v1989_v10 = vpack.c.bf16 %v741_v9, %v740_v8  ;;  %v743_v15 = vld [vmem:[#allocation8 + $0xf8] sm:$0xff]  ;;  %v619_v26 = vld [vmem:[%s3131_s3] sm:$0x3] }
 0x121   : > { %1934 = vmatprep.subr.bf16.mxu0 %v1933_v5  ;;  %v1983_v1 = vpack.c.bf16 %v721_v0, %v720_v63  ;;  %1982 = vmatprep.subr.bf16.mxu1 %v1981_v62  ;;  %v722_v5 = vld [vmem:[#allocation8 + $0x50] sm:$0xff]  ;;  %v1993_v17 = vpack.c.bf16 %v743_v15, %v742_v14  ;;  %v727_v18 = vld [vmem:[#allocation8 + $0x78] sm:$0xff]  ;;  %v829_v20 = vld [vmem:[#allocation10 + $0x8] sm:$0xff] }
 0x122   : > { %v1987_v7 = vpack.c.bf16 %v723_v6, %v722_v5  ;;  %v831_v21 = vld [vmem:[#allocation10 + $0x18] sm:$0xff]  ;;  %v828_v38 = vld [vmem:[#allocation10] sm:$0xff]  ;;  %v830_v39 = vld [vmem:[#allocation10 + $0x10] sm:$0xff] }
 0x123   : > { %1984 = vmatpush3.bf16.msra.mxu1 %v1983_v1  ;;  %v1999_v42 = vpack.c.bf16 %v830_v39, %v828_v38  ;;  %v832_v45 = vld [vmem:[#allocation10 + $0x20] sm:$0xff]  ;;  %v837_v48 = vld [vmem:[#allocation10 + $0x48] sm:$0xff]  ;;  %v839_v49 = vld [vmem:[#allocation10 + $0x58] sm:$0xff] }
 0x124   : > { %1936 = vmatpush1.bf16.msra.mxu0 %v1935_v12  ;;  %1986 = vmatprep.subr.bf16.mxu1 %v1985_v4  ;;  %v725_v12 = vld [vmem:[#allocation8 + $0x68] sm:$0xff]  ;;  %v838_v54 = vld [vmem:[#allocation10 + $0x50] sm:$0xff]  ;;  %v840_v61 = vld [vmem:[#allocation10 + $0x60] sm:$0xff] }
 0x125   : > { %1938 = vmatprep.subr.bf16.mxu0 %v1937_v16  ;;  %v1991_v13 = vpack.c.bf16 %v725_v12, %v724_v11  ;;  %v726_v16 = vld [vmem:[#allocation8 + $0x70] sm:$0xff]  ;;  %v845_v63 = vld [vmem:[#allocation10 + $0x88] sm:$0xff]  ;;  %v847_v0 = vld [vmem:[#allocation10 + $0x98] sm:$0xff] }
 0x126   : > { %v1995_v19 = vpack.c.bf16 %v727_v18, %v726_v16  ;;  %v842_v62 = vld [vmem:[#allocation10 + $0x70] sm:$0xff]  ;;  %v2013_v2 = vpack.c.bf16 %v847_v0, %v845_v63  ;;  %v844_v3 = vld [vmem:[#allocation10 + $0x80] sm:$0xff]  ;;  %v849_v5 = vld [vmem:[#allocation10 + $0xa8] sm:$0xff] }
 0x127   : > { %1988 = vmatpush3.bf16.msra.mxu1 %v1987_v7  ;;  %v2011_v1 = vpack.c.bf16 %v842_v62, %v840_v61  ;;  %v846_v4 = vld [vmem:[#allocation10 + $0x90] sm:$0xff]  ;;  %v851_v6 = vld [vmem:[#allocation10 + $0xb8] sm:$0xff]  ;;  %v848_v9 = vld [vmem:[#allocation10 + $0xa0] sm:$0xff] }
 0x128   : > { %1940 = vmatpush1.bf16.msra.mxu0 %v1939_v22  ;;  %1990 = vmatprep.subr.bf16.mxu1 %v1989_v10  ;;  %v1997_v22 = vpack.c.bf16 %v831_v21, %v829_v20  ;;  %v2015_v7 = vpack.c.bf16 %v846_v4, %v844_v3  ;;  %v2017_v8 = vpack.c.bf16 %v851_v6, %v849_v5  ;;  %v850_v10 = vld [vmem:[#allocation10 + $0xb0] sm:$0xff]  ;;  %v853_v11 = vld [vmem:[#allocation10 + $0xc8] sm:$0xff]  ;;  %v855_v12 = vld [vmem:[#allocation10 + $0xd8] sm:$0xff] }
 0x129   : > { %1942 = vmatprep.subr.bf16.mxu0 %v1941_v23  ;;  %v621_v23 = vlaneseq  ;;  %v2021_v14 = vpack.c.bf16 %v855_v12, %v853_v11  ;;  %v852_v15 = vld [vmem:[#allocation10 + $0xc0] sm:$0xff]  ;;  %v854_v16 = vld [vmem:[#allocation10 + $0xd0] sm:$0xff]  ;;  %v859_v18 = vld [vmem:[#allocation10 + $0xf8] sm:$0xff] }
 0x12a   : > { %v856_v21 = vld [vmem:[#allocation10 + $0xe0] sm:$0xff]  ;;  %v871_v38 = vld [vmem:[#allocation10 + $0x158] sm:$0xff]  ;;  %v882_v61 = vld [vmem:[#allocation10 + $0x1b0] sm:$0xff] }
 0x12b   : > { %1992 = vmatpush3.bf16.msra.mxu1 %v1991_v13  ;;  %v622_v24 = vshrl.u32 %v621_v23, 7  ;;  %v2019_v13 = vpack.c.bf16 %v850_v10, %v848_v9  ;;  %v861_v23 = vld [vmem:[#allocation10 + $0x108] sm:$0xff]  ;;  %v887_v0 = vld [vmem:[#allocation10 + $0x1d8] sm:$0xff]  ;;  %v886_v3 = vld [vmem:[#allocation10 + $0x1d0] sm:$0xff] }
 0x12c   : > { %1944 = vmatpush1.bf16.msra.mxu0 %v1943_v28  ;;  %1994 = vmatprep.subr.bf16.mxu1 %v1993_v17  ;;  %v857_v17 = vld [vmem:[#allocation10 + $0xe8] sm:$0xff]  ;;  %v891_v6 = vld [vmem:[#allocation10 + $0x1f8] sm:$0xff]  ;;  %v890_v9 = vld [vmem:[#allocation10 + $0x1f0] sm:$0xff] }
 0x12d   : > { %1946 = vmatprep.subr.bf16.mxu0 %v1945_v29  ;;  %v2999_v25 = vsub.s32 0, %v622_v24  ;;  %v3004_v27 = vsub.s32 1, %v622_v24  ;;  %v2025_v20 = vpack.c.bf16 %v859_v18, %v857_v17  ;;  %v863_v24 = vld [vmem:[#allocation10 + $0x118] sm:$0xff]  ;;  %v885_v63 = vld [vmem:[#allocation10 + $0x1c8] sm:$0xff]  ;;  %v547_v10 = vld [vmem:[%s2966_s6] sm:$0xff] }
 0x12e   : > { %v889_v5 = vld [vmem:[#allocation10 + $0x1e8] sm:$0xff] }
 0x12f   : > { %1996 = vmatpush3.bf16.msra.mxu1 %v1995_v19  ;;  %v624_v28 = vrot.slane %v619_v26, %v2999_v25  ;;  %v628_v29 = vrot.slane %v619_v26, %v3004_v27  ;;  %v2023_v19 = vpack.c.bf16 %v854_v16, %v852_v15 }
 0x130   : > { %1948 = vmatpush1.bf16.msra.mxu0 %v1947_v34  ;;  %1998 = vmatprep.subr.bf16.mxu1 %v1997_v22  ;;  %v858_v22 = vld [vmem:[#allocation10 + $0xf0] sm:$0xff] }
 0x131   : > { %1950 = vmatprep.subr.bf16.mxu0 %v1949_v35  ;;  %v2027_v26 = vpack.c.bf16 %v858_v22, %v856_v21  ;;  %v550_v21 = vld [vmem:[%s2966_s6 + $0x18] sm:$0xff] }
 0x134   : > { %1952 = vmatpush1.bf16.msra.mxu0 %v1951_v40  ;;  %v833_v40 = vld [vmem:[#allocation10 + $0x28] sm:$0xff] }
 0x135   : > { %1954 = vmatprep.subr.bf16.mxu0 %v1953_v41  ;;  %v835_v41 = vld [vmem:[#allocation10 + $0x38] sm:$0xff] }
 0x136   : > { %v2001_v44 = vpack.c.bf16 %v835_v41, %v833_v40  ;;  %v868_v41 = vld [vmem:[#allocation10 + $0x140] sm:$0xff] }
 0x138   : > { %1956 = vmatpush1.bf16.msra.mxu0 %v1955_v46  ;;  %v834_v46 = vld [vmem:[#allocation10 + $0x30] sm:$0xff] }
 0x139   : > { %1958 = vmatprep.subr.bf16.mxu0 %v1957_v47  ;;  %v2003_v50 = vpack.c.bf16 %v834_v46, %v832_v45 }
 0x13c   : > { %1960 = vmatpush1.bf16.msra.mxu0 %v1959_v52  ;;  %v2005_v52 = vpack.c.bf16 %v839_v49, %v837_v48  ;;  %v874_v48 = vld [vmem:[#allocation10 + $0x170] sm:$0xff] }
 0x13d   : > { %1962 = vmatprep.subr.bf16.mxu0 %v1961_v53  ;;  %v836_v53 = vld [vmem:[#allocation10 + $0x40] sm:$0xff] }
 0x140   : > { %1964 = vmatpush1.bf16.msra.mxu0 %v1963_v56  ;;  %v841_v56 = vld [vmem:[#allocation10 + $0x68] sm:$0xff] }
 0x143   : > { %696 = vmatmul.mubr.f32.vlgmr.msra.gmra.mrb[0].mxu0 %v548_v57  ;;  %v843_v57 = vld [vmem:[#allocation10 + $0x78] sm:$0xff] }
 0x144   : > { %701 = vmatprep.mubr.f32.mxu0 %v2995_v58  ;;  %v2009_v60 = vpack.c.bf16 %v843_v57, %v841_v56  ;;  %v881_v56 = vld [vmem:[#allocation10 + $0x1a8] sm:$0xff]  ;;  %v883_v57 = vld [vmem:[#allocation10 + $0x1b8] sm:$0xff] }
 0x147   : > { %702 = vmatmul.mubr.f32.gmra.mrb[2].mxu0 %v551_v59  ;;  %v2007_v59 = vpack.c.bf16 %v838_v54, %v836_v53  ;;  %v876_v53 = vld [vmem:[#allocation10 + $0x180] sm:$0xff]  ;;  %v878_v54 = vld [vmem:[#allocation10 + $0x190] sm:$0xff] }
 0x216   : > { %v697_v30 = vpop.f32.mrb[0].mxu0 }
 0x217   : > { %v698_v31 = vadd.f32 %v697_v30, %v624_v28  ;;  %v699_v32 = vpop.f32.mrb[1].mxu0  ;;  %v862_v30 = vld [vmem:[#allocation10 + $0x110] sm:$0xff] }
 0x218   : > { %v700_v33 = vadd.f32 %v699_v32, %v628_v29  ;;  %v867_v32 = vld [vmem:[#allocation10 + $0x138] sm:$0xff] }
 0x21a   : > { %2283 = vtanh.f32 %v700_v33  ;;  %v703_v34 = vpop.f32.mrb[2].mxu0 }
 0x21b   : > { %2285 = vtanh.f32 %v698_v31  ;;  %v704_v35 = vadd.f32 %v703_v34, %v624_v28  ;;  %v705_v36 = vpop.f32.mrb[3].mxu0  ;;  %v2029_v28 = vpack.c.bf16 %v863_v24, %v861_v23  ;;  %v865_v31 = vld [vmem:[#allocation10 + $0x128] sm:$0xff]  ;;  %v3014_v24 = vld [vmem:[%s2974_s30] sm:$0xff] }
 0x21c   : > { %v706_v37 = vadd.f32 %v705_v36, %v628_v29  ;;  %v860_v29 = vld [vmem:[#allocation10 + $0x100] sm:$0xff]  ;;  %v2033_v34 = vpack.c.bf16 %v867_v32, %v865_v31  ;;  %v866_v36 = vld [vmem:[#allocation10 + $0x130] sm:$0xff]  ;;  %1849 = vmatprep.mubr.msk.f32.mxu0 %vm981_vm0, %v3014_v24 }
 0x21d   : > { %v2031_v33 = vpack.c.bf16 %v862_v30, %v860_v29 }
 0x21e   : > { %2287 = vtanh.f32 %v706_v37  ;;  %v869_v37 = vld [vmem:[#allocation10 + $0x148] sm:$0xff] }
 0x21f   : > { %2289 = vtanh.f32 %v704_v35  ;;  %v864_v35 = vld [vmem:[#allocation10 + $0x120] sm:$0xff]  ;;  %v2037_v40 = vpack.c.bf16 %v871_v38, %v869_v37 }
 0x220   : > { %v2035_v39 = vpack.c.bf16 %v866_v36, %v864_v35 }
 0x224   : > { %v2284_v43 = vpop.eup %2283 }
 0x225   : > { %v2286_v47 = vpop.eup %2285  ;;  %815 = vmatprep.mubr.f32.mxu1 %v2284_v43  ;;  %v873_v43 = vld [vmem:[#allocation10 + $0x168] sm:$0xff] }
 0x226   : > { %816 = vmatmul.mubr.f32.vlgmr.msra.gmra.mrb[0].mxu1 %v2286_v47  ;;  %v872_v47 = vld [vmem:[#allocation10 + $0x160] sm:$0xff] }
 0x227   : > { %2000 = vmatpush1.bf16.msra.mxu1 %v1999_v42  ;;  %v870_v42 = vld [vmem:[#allocation10 + $0x150] sm:$0xff]  ;;  %v2043_v49 = vpack.c.bf16 %v874_v48, %v872_v47  ;;  %v1076_v48 = vld [vmem:[#allocation11 + $0x48] sm:$0xff] }
 0x228   : > { %v2288_v51 = vpop.eup %2287  ;;  %2002 = vmatprep.subr.bf16.mxu1 %v2001_v44  ;;  %v875_v44 = vld [vmem:[#allocation10 + $0x178] sm:$0xff]  ;;  %v2039_v45 = vpack.c.bf16 %v870_v42, %v868_v41  ;;  %v1072_v41 = vld [vmem:[#allocation11 + $0x28] sm:$0xff]  ;;  %v1073_v47 = vld [vmem:[#allocation11 + $0x30] sm:$0xff] }
 0x229   : > { %v2290_v55 = vpop.eup %2289  ;;  %820 = vmatprep.mubr.f32.mxu1 %v2288_v51  ;;  %v2041_v46 = vpack.c.bf16 %v875_v44, %v873_v43  ;;  %v879_v51 = vld [vmem:[#allocation10 + $0x198] sm:$0xff] }
 0x22a   : > { %821 = vmatmul.mubr.f32.gmra.mrb[2].mxu1 %v2290_v55  ;;  %v2047_v55 = vpack.c.bf16 %v878_v54, %v876_v53  ;;  %v1074_v42 = vld [vmem:[#allocation11 + $0x38] sm:$0xff]  ;;  %v1077_v53 = vld [vmem:[#allocation11 + $0x50] sm:$0xff]  ;;  %v1080_v54 = vld [vmem:[#allocation11 + $0x68] sm:$0xff] }
 0x22b   : > { %2004 = vmatpush1.bf16.msra.mxu1 %v2003_v50  ;;  %v877_v50 = vld [vmem:[#allocation10 + $0x188] sm:$0xff]  ;;  %968 = vmatprep.mubr.f32.mxu1 %v547_v10 }
 0x22c   : > { %2006 = vmatprep.subr.bf16.mxu1 %v2005_v52  ;;  %v2045_v52 = vpack.c.bf16 %v879_v51, %v877_v50  ;;  %v3032_v43 = vld [vmem:[%s2974_s30 + $0x8] sm:$0xff]  ;;  %s1594_s30 = sshll.u32 %s544_s13, 4  ;;  %s3083_s30 = int_to_ptr.vmem [resolvable:$true] %s1594_s30 }
 0x22d   : > { %v1092_v10 = vld [vmem:[#allocation11 + $0xc8] sm:$0xff]  ;;  %s2512_s19 = scalar_lea.vmem %s3083_s30, 512 }
 0x22e   : > { %p2513_p2 = scmp.ne.s32.totalorder %s3083_s30, %s2512_s19 }
 0x22f   : > { %2008 = vmatpush1.bf16.msra.mxu1 %v2007_v59  ;;  %v2049_v59 = vpack.c.bf16 %v883_v57, %v881_v56 }
 0x230   : > { %2010 = vmatprep.subr.bf16.mxu1 %v2009_v60  ;;  %v880_v60 = vld [vmem:[#allocation10 + $0x1a0] sm:$0xff]  ;;  %p2514_p6 = pnand %p2513_p2, %p3193_p13 }
 0x231   : > { %v2051_v62 = vpack.c.bf16 %v882_v61, %v880_v60  ;;  %v1081_v60 = vld [vmem:[#allocation11 + $0x70] sm:$0xff]  ;;  %v1084_v61 = vld [vmem:[#allocation11 + $0x88] sm:$0xff] }
 0x232   : > { %p2515_p9 = pneg %p2514_p6 }
 0x233   : > { %2012 = vmatpush1.bf16.msra.mxu1 %v2011_v1  ;;  %v2053_v1 = vpack.c.bf16 %v887_v0, %v885_v63 }
 0x234   : > { %2014 = vmatprep.subr.bf16.mxu1 %v2013_v2  ;;  %v884_v2 = vld [vmem:[#allocation10 + $0x1c0] sm:$0xff] }
 0x235   : > { %v2055_v4 = vpack.c.bf16 %v886_v3, %v884_v2  ;;  %v1085_v2 = vld [vmem:[#allocation11 + $0x90] sm:$0xff] }
 0x237   : > { %2016 = vmatpush1.bf16.msra.mxu1 %v2015_v7  ;;  %v888_v7 = vld [vmem:[#allocation10 + $0x1e0] sm:$0xff] }
 0x238   : > { %2018 = vmatprep.subr.bf16.mxu1 %v2017_v8  ;;  %v2057_v8 = vpack.c.bf16 %v891_v6, %v889_v5  ;;  %v2059_v11 = vpack.c.bf16 %v890_v9, %v888_v7  ;;  %v1090_v5 = vld [vmem:[#allocation11 + $0xb8] sm:$0xff]  ;;  %v1087_v7 = vld [vmem:[#allocation11 + $0xa0] sm:$0xff] }
 0x23b   : > { %2020 = vmatpush1.bf16.msra.mxu1 %v2019_v13  ;;  %v1759_v13 = vld [vmem:[%s3133_s5] ss:$0 sm:$0xff] }
 0x23c   : > { %2022 = vmatprep.subr.bf16.mxu1 %v2021_v14 }
 0x23f   : > { %2024 = vmatpush1.bf16.msra.mxu1 %v2023_v19 }
 0x240   : > { %2026 = vmatprep.subr.bf16.mxu1 %v2025_v20 }
 0x243   : > { %2028 = vmatpush1.bf16.msra.mxu1 %v2027_v26  ;;  %v3023_v26 = vld [vmem:[%s3189_s0] sm:$0x3]  ;;  %s2516_s0 = sshll.u32 %s2610_s15, 4  ;;  %s2517_s0 = int_to_ptr.vmem [resolvable:$false] %s2516_s0 }
 0x244   : > { %2030 = vmatprep.subr.bf16.mxu1 %v2029_v28  ;;  %v901_v30 = vrot.slane %v3023_v26, %v3004_v27  ;;  %s2518_s2 = scalar_lea.vmem %s2517_s0, 1024  ;;  %p2519_p0 = scmp.lt.s32.totalorder %s3083_s30, %s2517_s0 }
 0x245   : > { %p2520_p5 = scmp.lt.s32.totalorder %s2518_s2, %s2512_s19 }
 0x247   : > { %2032 = vmatpush1.bf16.msra.mxu1 %v2031_v33  ;;  %v1068_v33 = vld [vmem:[#allocation11 + $0x8] sm:$0xff]  ;;  %p2521_p7 = por %p2520_p5, %p2519_p0 }
 0x248   : > { %2034 = vmatprep.subr.bf16.mxu1 %v2033_v34  ;;  %v1070_v34 = vld [vmem:[#allocation11 + $0x18] sm:$0xff] }
 0x249   : > { %v2065_v38 = vpack.c.bf16 %v1070_v34, %v1068_v33  ;;  %p2522_p8 = pnand %p2521_p7, %p2515_p9 }
 0x24b   : > { %2036 = vmatpush1.bf16.msra.mxu1 %v2035_v39  ;;  %v1067_v39 = vld [vmem:[#allocation11] sm:$0xff] }
 0x24c   : > { %2038 = vmatprep.subr.bf16.mxu1 %v2037_v40  ;;  %v1069_v40 = vld [vmem:[#allocation11 + $0x10] sm:$0xff] }
 0x24d   : > { %v2067_v44 = vpack.c.bf16 %v1069_v40, %v1067_v39  ;;  %v1272_v39 = vld [vmem:[#allocation11 + $0x110] sm:$0xff]  ;;  %v1275_v40 = vld [vmem:[#allocation11 + $0x128] sm:$0xff] }
 0x24f   : > { %2040 = vmatpush1.bf16.msra.mxu1 %v2039_v45  ;;  %v2069_v45 = vpack.c.bf16 %v1074_v42, %v1072_v41  ;;  %v1277_v41 = vld [vmem:[#allocation11 + $0x138] sm:$0xff] }
 0x250   : > { %2042 = vmatprep.subr.bf16.mxu1 %v2041_v46  ;;  %v1071_v46 = vld [vmem:[#allocation11 + $0x20] sm:$0xff] }
 0x251   : > { %v2071_v50 = vpack.c.bf16 %v1073_v47, %v1071_v46  ;;  %v1276_v46 = vld [vmem:[#allocation11 + $0x130] sm:$0xff]  ;;  %v1279_v47 = vld [vmem:[#allocation11 + $0x148] sm:$0xff] }
 0x253   : > { %2044 = vmatpush1.bf16.msra.mxu1 %v2043_v49  ;;  %v1078_v49 = vld [vmem:[#allocation11 + $0x58] sm:$0xff] }
 0x254   : > { %2046 = vmatprep.subr.bf16.mxu1 %v2045_v52  ;;  %v2073_v51 = vpack.c.bf16 %v1078_v49, %v1076_v48  ;;  %v1075_v52 = vld [vmem:[#allocation11 + $0x40] sm:$0xff]  ;;  %v1281_v48 = vld [vmem:[#allocation11 + $0x158] sm:$0xff] }
 0x255   : > { %v2075_v56 = vpack.c.bf16 %v1077_v53, %v1075_v52  ;;  %v1280_v52 = vld [vmem:[#allocation11 + $0x150] sm:$0xff]  ;;  %v1283_v53 = vld [vmem:[#allocation11 + $0x168] sm:$0xff] }
 0x257   : > { %2048 = vmatpush1.bf16.msra.mxu1 %v2047_v55  ;;  %v1082_v55 = vld [vmem:[#allocation11 + $0x78] sm:$0xff] }
 0x258   : > { %2050 = vmatprep.subr.bf16.mxu1 %v2049_v59  ;;  %v2077_v57 = vpack.c.bf16 %v1082_v55, %v1080_v54  ;;  %v1079_v59 = vld [vmem:[#allocation11 + $0x60] sm:$0xff]  ;;  %v1285_v54 = vld [vmem:[#allocation11 + $0x178] sm:$0xff] }
 0x259   : > { %v2079_v63 = vpack.c.bf16 %v1081_v60, %v1079_v59  ;;  %v1284_v59 = vld [vmem:[#allocation11 + $0x170] sm:$0xff] }
 0x25b   : > { %2052 = vmatpush1.bf16.msra.mxu1 %v2051_v62  ;;  %v1086_v62 = vld [vmem:[#allocation11 + $0x98] sm:$0xff] }
 0x25c   : > { %2054 = vmatprep.subr.bf16.mxu1 %v2053_v1  ;;  %v2081_v0 = vpack.c.bf16 %v1086_v62, %v1084_v61  ;;  %v1083_v1 = vld [vmem:[#allocation11 + $0x80] sm:$0xff] }
 0x25d   : > { %v2083_v3 = vpack.c.bf16 %v1085_v2, %v1083_v1  ;;  %v1099_v61 = vld [vmem:[%s3190_s4] sm:$0x3] }
 0x25f   : > { %2056 = vmatpush1.bf16.msra.mxu1 %v2055_v4  ;;  %v1088_v4 = vld [vmem:[#allocation11 + $0xa8] sm:$0xff] }
 0x260   : > { %2058 = vmatprep.subr.bf16.mxu1 %v2057_v8  ;;  %v2085_v6 = vpack.c.bf16 %v1090_v5, %v1088_v4  ;;  %v1089_v8 = vld [vmem:[#allocation11 + $0xb0] sm:$0xff] }
 0x261   : > { %v2087_v9 = vpack.c.bf16 %v1089_v8, %v1087_v7  ;;  %v1289_v7 = vld [vmem:[#allocation11 + $0x198] sm:$0xff] }
 0x263   : > { %2060 = vmatpush1.bf16.msra.mxu1 %v2059_v11  ;;  %v1094_v11 = vld [vmem:[#allocation11 + $0xd8] sm:$0xff] }
 0x2f9   : > { %v1809_v12 = vpop.f32.mrb[0].mxu1 }
 0x2fa   : > { %v1810_v14 = vpop.f32.mrb[1].mxu1 }
 0x2fb   : > { %v1811_v15 = vadd.f32 %v1810_v14, %v1809_v12  ;;  %v1091_v12 = vld [vmem:[#allocation11 + $0xc0] sm:$0xff]  ;;  %v1093_v14 = vld [vmem:[#allocation11 + $0xd0] sm:$0xff] }
 0x2fd   : > { %v818_v16 = vadd.f32 %v1811_v15, %v1759_v13  ;;  %v1812_v17 = vpop.f32.mrb[2].mxu1  ;;  %v1096_v15 = vld [vmem:[#allocation11 + $0xe8] sm:$0xff] }
 0x2fe   : > { %v1813_v18 = vpop.f32.mrb[3].mxu1 }
 0x2ff   : > { %2291 = vtanh.f32 %v818_v16  ;;  %v1814_v19 = vadd.f32 %v1813_v18, %v1812_v17  ;;  %v1098_v16 = vld [vmem:[#allocation11 + $0xf8] sm:$0xff]  ;;  %v2609_v17 = vmov 0.0   ;;  %v2091_v18 = vpack.c.bf16 %v1093_v14, %v1091_v12  ;;  %v1291_v12 = vld [vmem:[#allocation11 + $0x1a8] sm:$0xff] }
 0x301   : > { %v823_v20 = vadd.f32 %v1814_v19, %v1759_v13  ;;  %v2089_v13 = vpack.c.bf16 %v1094_v11, %v1092_v10  ;;  %v2093_v19 = vpack.c.bf16 %v1098_v16, %v1096_v15  ;;  %v1288_v10 = vld [vmem:[#allocation11 + $0x190] sm:$0xff]  ;;  %v1290_v15 = vld [vmem:[#allocation11 + $0x1a0] sm:$0xff] }
 0x302   : > { %v1292_v16 = vld [vmem:[#allocation11 + $0x1b0] sm:$0xff] }
 0x303   : > { %2293 = vtanh.f32 %v823_v20  ;;  %v1095_v20 = vld [vmem:[#allocation11 + $0xe0] sm:$0xff] }
 0x309   : > { %v2292_v22 = vpop.eup %2291 }
 0x30a   : > { %969 = vmatmul.mubr.f32.vlgmr.msra.gmra.mrb[4].mxu1 %v2292_v22 }
 0x30b   : > { %974 = vmatprep.mubr.f32.mxu1 %v550_v21  ;;  %v1097_v21 = vld [vmem:[#allocation11 + $0xf0] sm:$0xff] }
 0x30c   : > { %v2095_v22 = vpack.c.bf16 %v1097_v21, %v1095_v20  ;;  %v1297_v20 = vld [vmem:[#allocation11 + $0x1d8] sm:$0xff]  ;;  %v1294_v21 = vld [vmem:[#allocation11 + $0x1c0] sm:$0xff] }
 0x30d   : > { %v2294_v23 = vpop.eup %2293 }
 0x30e   : > { %975 = vmatmul.mubr.f32.gmra.mrb[6].mxu1 %v2294_v23  ;;  %v897_v23 = vrot.slane %v3023_v26, %v2999_v25  ;;  %v1271_v26 = vld [vmem:[#allocation11 + $0x108] sm:$0xff] }
 0x30f   : > { %1856 = vmatprep.mubr.msk.f32.mxu1 %vm981_vm0, %v3014_v24 }
 0x3dd   : > { %v3025_v28 = vpop.f32.mrb[4].mxu1 }
 0x3de   : > { %v972_v29 = vpop.f32.mrb[5].mxu1 }
 0x3df   : > { %v973_v35 = vadd.f32 %v972_v29, %v901_v30 }
 0x3e1   : > { %v3029_v31 = vpop.f32.mrb[6].mxu1 }
 0x3e2   : > { %v978_v32 = vpop.f32.mrb[7].mxu1  ;;  %v977_v29 = vadd.f32 %v3029_v31, %v897_v23  ;;  %v1270_v31 = vld [vmem:[#allocation11 + $0x100] sm:$0xff] }
 0x3e3   : > { %v979_v36 = vadd.f32 %v978_v32, %v901_v30  ;;  %v971_v30 = vadd.f32 %v3025_v28, %v897_v23  ;;  %v1273_v28 = vld [vmem:[#allocation11 + $0x118] sm:$0xff]  ;;  %v2103_v42 = vpack.c.bf16 %v1272_v39, %v1270_v31  ;;  %v1299_v23 = vld [vmem:[#allocation11 + $0x1e8] sm:$0xff] }
 0x3e5   : > { %v2061_v37 = vpack.c.bf16 %v979_v36, %v973_v35 }
 0x3e7   : > { %2062 = vmatprep.subr.bf16.mxu0 %v2061_v37 }
 0x3e8   : > { %2064 = vmatpush3.bf16.msra.mxu0 %v2061_v37 }
 0x3e9   : > { %2066 = vmatprep.subr.bf16.mxu0 %v2065_v38  ;;  %v2101_v38 = vpack.c.bf16 %v1273_v28, %v1271_v26  ;;  %v1104_v26 = vrot.slane %v1099_v61, %v2999_v25 }
 0x3eb   : > { %1850 = vmatmul.mubr.msk.f32.vlgmr.msra.gmra.mrb[4].mxu0 %vm981_vm0, %v3032_v43 }
 0x3ec   : > { %2068 = vmatpush1.bf16.msra.mxu0 %v2067_v44  ;;  %1175 = vmatprep.mubr.f32.mxu0 %v2609_v17  ;;  %v2105_v44 = vpack.c.bf16 %v1277_v41, %v1275_v40 }
 0x3ed   : > { %2070 = vmatprep.subr.bf16.mxu0 %v2069_v45  ;;  %v1274_v45 = vld [vmem:[#allocation11 + $0x120] sm:$0xff] }
 0x3ee   : > { %v2107_v49 = vpack.c.bf16 %v1276_v46, %v1274_v45 }
 0x3f0   : > { %2072 = vmatpush1.bf16.msra.mxu0 %v2071_v50  ;;  %v2109_v50 = vpack.c.bf16 %v1281_v48, %v1279_v47  ;;  %v1764_v47 = vld [vmem:[%s3190_s4 + $0x2] sm:$0x3] }
 0x3f1   : > { %2074 = vmatprep.subr.bf16.mxu0 %v2073_v51  ;;  %v1278_v51 = vld [vmem:[#allocation11 + $0x140] sm:$0xff] }
 0x3f2   : > { %v2111_v55 = vpack.c.bf16 %v1280_v52, %v1278_v51  ;;  %v1473_v51 = vld [vmem:[#allocation13] sm:$0xff]  ;;  %v1474_v52 = vld [vmem:[#allocation13 + $0x8] sm:$0xff] }
 0x3f4   : > { %2076 = vmatpush1.bf16.msra.mxu0 %v2075_v56  ;;  %v2113_v56 = vpack.c.bf16 %v1285_v54, %v1283_v53 }
 0x3f5   : > { %2078 = vmatprep.subr.bf16.mxu0 %v2077_v57  ;;  %v1282_v57 = vld [vmem:[#allocation11 + $0x160] sm:$0xff] }
 0x3f6   : > { %v2115_v60 = vpack.c.bf16 %v1284_v59, %v1282_v57  ;;  %v1475_v57 = vld [vmem:[#allocation13 + $0x10] sm:$0xff] }
 0x3f8   : > { %2080 = vmatpush1.bf16.msra.mxu0 %v2079_v63 }
 0x3f9   : > { %2082 = vmatprep.subr.bf16.mxu0 %v2081_v0  ;;  %v1108_v0 = vrot.slane %v1099_v61, %v3004_v27  ;;  %v1478_v61 = vld [vmem:[#allocation13 + $0x28] sm:$0xff] }
 0x3fc   : > { %2084 = vmatpush1.bf16.msra.mxu0 %v2083_v3 }
 0x3fd   : > { %2086 = vmatprep.subr.bf16.mxu0 %v2085_v6  ;;  %v1287_v6 = vld [vmem:[#allocation11 + $0x188] sm:$0xff] }
 0x3fe   : > { %v2117_v8 = vpack.c.bf16 %v1289_v7, %v1287_v6  ;;  %v1486_v7 = vld [vmem:[#allocation13 + $0x68] sm:$0xff] }
 0x400   : > { %2088 = vmatpush1.bf16.msra.mxu0 %v2087_v9  ;;  %v1286_v9 = vld [vmem:[#allocation11 + $0x180] sm:$0xff] }
 0x401   : > { %2090 = vmatprep.subr.bf16.mxu0 %v2089_v13  ;;  %v2119_v11 = vpack.c.bf16 %v1288_v10, %v1286_v9  ;;  %v1293_v13 = vld [vmem:[#allocation11 + $0x1b8] sm:$0xff] }
 0x402   : > { %v2121_v14 = vpack.c.bf16 %v1293_v13, %v1291_v12  ;;  %v1488_v10 = vld [vmem:[#allocation13 + $0x78] sm:$0xff]  ;;  %v1308_v12 = vrot.slane %v1764_v47, %v2999_v25  ;;  %v1767_v25 = vld [vmem:[%s3191_s28] ss:$0 sm:$0xff] }
 0x404   : > { %2092 = vmatpush1.bf16.msra.mxu0 %v2091_v18  ;;  %v2123_v18 = vpack.c.bf16 %v1292_v16, %v1290_v15 }
 0x405   : > { %2094 = vmatprep.subr.bf16.mxu0 %v2093_v19  ;;  %v1295_v19 = vld [vmem:[#allocation11 + $0x1c8] sm:$0xff] }
 0x408   : > { %2096 = vmatpush1.bf16.msra.mxu0 %v2095_v22  ;;  %v1296_v22 = vld [vmem:[#allocation11 + $0x1d0] sm:$0xff] }
 0x409   : > { %2102 = vmatprep.subr.bf16.mxu0 %v2101_v38 }
 0x4be   : > { %v1851_v32 = vpop.f32.mrb[4].mxu0 }
 0x4bf   : > { %v1064_v33 = vadd.f32 %v1851_v32, %v977_v29  ;;  %v1054_v34 = vpop.f32.mrb[5].mxu0  ;;  %v1301_v29 = vld [vmem:[#allocation11 + $0x1f8] sm:$0xff] }
 0x4c0   : > { %v1063_v35 = vadd.f32 %v1054_v34, %v971_v30  ;;  %v2127_v30 = vpack.c.bf16 %v1296_v22, %v1294_v21  ;;  %v2129_v32 = vpack.c.bf16 %v1301_v29, %v1299_v23  ;;  %v1300_v34 = vld [vmem:[#allocation11 + $0x1f0] sm:$0xff] }
 0x4c2   : > { %2295 = vtanh.f32 %v1063_v35 }
 0x4c3   : > { %2297 = vtanh.f32 %v1064_v33  ;;  %v1298_v33 = vld [vmem:[#allocation11 + $0x1e0] sm:$0xff] }
 0x4c4   : > { %v2131_v35 = vpack.c.bf16 %v1300_v34, %v1298_v33 }
 0x4cc   : > { %v3041_v36 = vpop.eup %2295 }
 0x4cd   : > { %1176 = vmatmul.mubr.f32.vlgmr.msra.gmra.mrb[6].mxu0 %v3041_v36  ;;  %v3045_v37 = vpop.eup %2297 }
 0x4ce   : > { %1181 = vmatprep.mubr.f32.mxu0 %v2609_v17  ;;  %2104 = vmatpush1.bf16.msra.mxu0 %v2103_v42 }
 0x4cf   : > { %2106 = vmatprep.subr.bf16.mxu0 %v2105_v44 }
 0x4d1   : > { %1182 = vmatmul.mubr.f32.gmra.mrb[8].mxu0 %v3045_v37 }
 0x4d2   : > { %1379 = vmatprep.mubr.f32.mxu0 %v2609_v17  ;;  %2108 = vmatpush1.bf16.msra.mxu0 %v2107_v49 }
 0x4d3   : > { %2110 = vmatprep.subr.bf16.mxu0 %v2109_v50 }
 0x4d6   : > { %2112 = vmatpush1.bf16.msra.mxu0 %v2111_v55 }
 0x4d7   : > { %2114 = vmatprep.subr.bf16.mxu0 %v2113_v56  ;;  %v2137_v56 = vpack.c.bf16 %v1474_v52, %v1473_v51 }
 0x4da   : > { %2116 = vmatpush1.bf16.msra.mxu0 %v2115_v60  ;;  %v1477_v60 = vld [vmem:[#allocation13 + $0x20] sm:$0xff] }
 0x4db   : > { %2118 = vmatprep.subr.bf16.mxu0 %v2117_v8  ;;  %v1487_v8 = vld [vmem:[#allocation13 + $0x70] sm:$0xff] }
 0x4de   : > { %2120 = vmatpush1.bf16.msra.mxu0 %v2119_v11  ;;  %v2165_v11 = vpack.c.bf16 %v1488_v10, %v1487_v8 }
 0x4df   : > { %2122 = vmatprep.subr.bf16.mxu0 %v2121_v14 }
 0x4e2   : > { %2124 = vmatpush1.bf16.msra.mxu0 %v2123_v18 }
 0x5a0   : > { %v1177_v62 = vpop.f32.mrb[6].mxu0 }
 0x5a1   : > { %v1179_v63 = vpop.f32.mrb[7].mxu0  ;;  %v1178_v31 = vadd.f32 %v1177_v62, %v1104_v26  ;;  %v1479_v62 = vld [vmem:[#allocation13 + $0x30] sm:$0xff] }
 0x5a2   : > { %v1180_v3 = vadd.f32 %v1179_v63, %v1108_v0  ;;  %v1480_v63 = vld [vmem:[#allocation13 + $0x38] sm:$0xff] }
 0x5a4   : > { %v1183_v1 = vpop.f32.mrb[8].mxu0 }
 0x5a5   : > { %v1185_v2 = vpop.f32.mrb[9].mxu0  ;;  %v1184_v28 = vadd.f32 %v1183_v1, %v1104_v26  ;;  %v1481_v1 = vld [vmem:[#allocation13 + $0x40] sm:$0xff] }
 0x5a6   : > { %v1186_v4 = vadd.f32 %v1185_v2, %v1108_v0  ;;  %v2149_v0 = vpack.c.bf16 %v1480_v63, %v1479_v62  ;;  %v1482_v2 = vld [vmem:[#allocation13 + $0x48] sm:$0xff]  ;;  %v2311_v26 = vld [vmem:[%s2966_s6 + $0x10] sm:$0xff] }
 0x5a8   : > { %v2097_v5 = vpack.c.bf16 %v1186_v4, %v1180_v3  ;;  %v2153_v3 = vpack.c.bf16 %v1482_v2, %v1481_v1  ;;  %v1483_v4 = vld [vmem:[#allocation13 + $0x50] sm:$0xff] }
 0x5aa   : > { %2098 = vmatprep.subr.bf16.mxu1 %v2097_v5 }
 0x5ab   : > { %2100 = vmatpush3.bf16.msra.mxu1 %v2097_v5  ;;  %v1484_v5 = vld [vmem:[#allocation13 + $0x58] sm:$0xff] }
 0x5ac   : > { %v2157_v6 = vpack.c.bf16 %v1484_v5, %v1483_v4 }
 0x5ae   : > { %1857 = vmatmul.mubr.msk.f32.vlgmr.msra.gmra.mrb[8].mxu1 %vm981_vm0, %v3032_v43 }
 0x5af   : > { %1863 = vmatprep.mubr.msk.f32.mxu1 %vm981_vm0, %v3014_v24  ;;  %v2125_v24 = vpack.c.bf16 %v1297_v20, %v1295_v19 }
 0x5b1   : > { %2126 = vmatprep.subr.bf16.mxu0 %v2125_v24 }
 0x5b2   : > { %2128 = vmatpush1.bf16.msra.mxu0 %v2127_v30 }
 0x5b3   : > { %2130 = vmatprep.subr.bf16.mxu0 %v2129_v32 }
 0x5b6   : > { %2132 = vmatpush1.bf16.msra.mxu0 %v2131_v35 }
 0x681   : > { %v1858_v38 = vpop.f32.mrb[8].mxu1 }
 0x682   : > { %v1264_v39 = vadd.f32 %v1858_v38, %v1184_v28  ;;  %v1254_v40 = vpop.f32.mrb[9].mxu1 }
 0x683   : > { %v1263_v41 = vadd.f32 %v1254_v40, %v1178_v31 }
 0x684   : > { %v1266_v44 = vadd.f32 %v3045_v37, %v1264_v39 }
 0x685   : > { %v1265_v42 = vadd.f32 %v3041_v36, %v1263_v41  ;;  %v1312_v36 = vrot.slane %v1764_v47, %v3004_v27  ;;  %v2145_v27 = vpack.c.bf16 %v1478_v61, %v1477_v60 }
 0x687   : > { %2299 = vtanh.f32 %v1265_v42 }
 0x688   : > { %2301 = vtanh.f32 %v1266_v44 }
 0x691   : > { %v3060_v45 = vpop.eup %2299 }
 0x692   : > { %1380 = vmatmul.mubr.f32.vlgmr.msra.gmra.mrb[10].mxu0 %v3060_v45  ;;  %v2302_v46 = vpop.eup %2301 }
 0x693   : > { %1385 = vmatprep.mubr.f32.mxu0 %v2609_v17  ;;  %v1476_v17 = vld [vmem:[#allocation13 + $0x18] sm:$0xff] }
 0x694   : > { %v2141_v59 = vpack.c.bf16 %v1476_v17, %v1475_v57 }
 0x696   : > { %1386 = vmatmul.mubr.f32.gmra.mrb[12].mxu0 %v2302_v46 }
 0x765   : > { %v1381_v48 = vpop.f32.mrb[10].mxu0 }
 0x766   : > { %v1383_v49 = vpop.f32.mrb[11].mxu0  ;;  %v1382_v14 = vadd.f32 %v1381_v48, %v1308_v12 }
 0x767   : > { %v1384_v53 = vadd.f32 %v1383_v49, %v1312_v36 }
 0x769   : > { %v1387_v50 = vpop.f32.mrb[12].mxu0 }
 0x76a   : > { %v1389_v37 = vpop.f32.mrb[13].mxu0  ;;  %v1388_v13 = vadd.f32 %v1387_v50, %v1308_v12 }
 0x76b   : > { %v1390_v54 = vadd.f32 %v1389_v37, %v1312_v36 }
 0x76d   : > { %v2133_v55 = vpack.c.bf16 %v1390_v54, %v1384_v53 }
 0x76f   : > { %2134 = vmatprep.subr.bf16.mxu1 %v2133_v55 }
 0x770   : > { %2136 = vmatpush3.bf16.msra.mxu1 %v2133_v55 }
 0x771   : > { %2138 = vmatprep.subr.bf16.mxu1 %v2137_v56 }
 0x773   : > { %1864 = vmatmul.mubr.msk.f32.vlgmr.msra.gmra.mrb[10].mxu1 %vm981_vm0, %v3032_v43  ;;  %v1485_v43 = vld [vmem:[#allocation13 + $0x60] sm:$0xff] }
 0x774   : > { %2140 = vmatpush3.bf16.msra.mxu1 %v2137_v56  ;;  %v2161_v9 = vpack.c.bf16 %v1486_v7, %v1485_v43 }
 0x775   : > { %2142 = vmatprep.subr.bf16.mxu1 %v2141_v59 }
 0x778   : > { %2144 = vmatpush3.bf16.msra.mxu1 %v2141_v59 }
 0x779   : > { %2146 = vmatprep.subr.bf16.mxu1 %v2145_v27 }
 0x77c   : > { %2148 = vmatpush3.bf16.msra.mxu1 %v2145_v27 }
 0x77d   : > { %2150 = vmatprep.subr.bf16.mxu1 %v2149_v0 }
 0x780   : > { %2152 = vmatpush3.bf16.msra.mxu1 %v2149_v0 }
 0x781   : > { %2154 = vmatprep.subr.bf16.mxu1 %v2153_v3 }
 0x784   : > { %2156 = vmatpush3.bf16.msra.mxu1 %v2153_v3 }
 0x785   : > { %2158 = vmatprep.subr.bf16.mxu1 %v2157_v6 }
 0x788   : > { %2160 = vmatpush3.bf16.msra.mxu1 %v2157_v6 }
 0x789   : > { %2162 = vmatprep.subr.bf16.mxu1 %v2161_v9 }
 0x78c   : > { %2164 = vmatpush3.bf16.msra.mxu1 %v2161_v9 }
 0x78d   : > { %2166 = vmatprep.subr.bf16.mxu1 %v2165_v11 }
 0x790   : > { %2168 = vmatpush3.bf16.msra.mxu1 %v2165_v11 }
 0x846   : > { %v1865_v15 = vpop.f32.mrb[10].mxu1 }
 0x847   : > { %v1468_v16 = vadd.f32 %v1865_v15, %v1388_v13  ;;  %v1458_v18 = vpop.f32.mrb[11].mxu1 }
 0x848   : > { %v1467_v19 = vadd.f32 %v1458_v18, %v1382_v14 }
 0x849   : > { %v1470_v20 = vadd.f32 %v2302_v46, %v1468_v16 }
 0x84a   : > { %v1469_v21 = vadd.f32 %v3060_v45, %v1467_v19 }
 0x84b   : > { %2303 = vtanh.f32 %v1470_v20 }
 0x84c   : > { %2305 = vtanh.f32 %v1469_v21 }
 0x855   : > { %v2304_v24 = vpop.eup %2303 }
 0x856   : > { %v2306_v22 = vpop.eup %2305  ;;  %1577 = vst [vmem:[%s544_s13 + $0x10] sm:$0xff] %v2304_v24 }
 0x857   : > { %1898 = vmatprep.mubr.f32.mxu1 %v2306_v22  ;;  %1575 = vst [vmem:[%s544_s13] sm:$0xff] %v2306_v22 }
 0x858   : > { %1899 = vmatmul.mubr.f32.vlgmr.msra.gmra.mrb[12].mxu1 %v2304_v24 }
 0x92b   : > { %v1900_v23 = vpop.f32.mrb[12].mxu1 }
 0x92c   : > { %v1568_v29 = vadd.f32 %v1900_v23, %v1767_v25  ;;  %v1562_v30 = vpop.f32.mrb[13].mxu1 }
 0x92d   : > { %v1563_v32 = vadd.f32 %v1767_v25, %v1562_v30 }
 0x92e   : > { %2307 = vtanh.f32 %v1568_v29 }
 0x92f   : > { %2309 = vtanh.f32 %v1563_v32 }
 0x938   : > { %v2308_v33 = vpop.eup %2307 }
 0x939   : > { %v2310_v34 = vpop.eup %2309  ;;  %v1574_v35 = vadd.f32 %v2308_v33, %v2995_v58 }
 0x93a   : > { %v1573_v28 = vadd.f32 %v2311_v26, %v2310_v34 }
 0x93b   : > { %1578 = vst [vmem:[%s544_s13 + $0x18] sm:$0xff] %v1574_v35 }
 0x93c   : > { %1576 = vst [vmem:[%s544_s13 + $0x8] sm:$0xff] %v1573_v28 }
 0x93d   : > { %2525 = shalt.err (!%p2522_p8)
}
 0x93e   : > { %s2526_s6 = scalar_lea.hbm %s3081_s17, 512  ;;  %s2530_s9 = scalar_lea.hbm %s3192_s26, 1024 }
 0x93f   : > { %p2527_p4 = scmp.ne.s32.totalorder %s3081_s17, %s2526_s6  ;;  %p2531_p1 = scmp.lt.u32.totalorder %s3081_s17, %s3192_s26 }
 0x940   : > { %p2532_p11 = scmp.lt.u32.totalorder %s2530_s9, %s2526_s6  ;;  %p2534_p2 = scmp.lt.u32.totalorder %s2526_s6, %s3081_s17 }
 0x941   : > { %p2528_p3 = pnand %p2527_p4, %p3193_p13 }
 0x942   : > { %p2533_p12 = por %p2532_p11, %p2531_p1 }
 0x943   : > { %p2529_p10 = pneg %p2528_p3 }
 0x944   : > { %p2535_p6 = por %p2534_p2, %p2533_p12 }
 0x946   : > { %p2536_p9 = pnand %p2535_p6, %p2529_p10 }
 0x948   : > { %2539 = shalt.err (!%p2536_p9)
}
 0x949   : > { %s2611_s16 = smov 256   ;;  %s2612_s10 = smov 16  }
 0x94a   : > { %2196 = dma.vmem_to_hbm [thread:$0]  (%p3193_p13), %s3083_s30, 512, %s3081_s17, %s1580_s27, %s2611_s16, %s2611_s16, %s2612_s10  }
 0x94b PF: > { %s1609_s28 = sand.u32 1, %s2582_s21   ;;  %p3194_p0 = scmp.ne.s32.totalorder %s3179_s29, 0 }
 0x94c   : > { %p3195_p5 = scmp.ge.s32.totalorder %s2594_s24, 2  ;;  %s1610_s18 = scalar_lea.sflag [#allocation4], %s1609_s28 }
 0x94e   : > { %p2222_p7 = pnand %p3195_p5, %p3194_p0 }
 0x950   : > { %2577 = dma.done.wait (!%p2222_p7), %s1610_s18, 512  }
 0x951   : > { %2579 = vsyncadd (!%p2222_p7), %s1610_s18, 4294966784  ;;  %s3196_s7 = sld [smem:[#allocation21_spill]]  ;;  %s3197_s23 = sld [smem:[#allocation22_spill]] }
 0x952   : > { %p30_p8 = scmp.ge.s32.totalorder %s2847_s25, 4   ;;  %s3198_s21 = smov %s2586_s22 }
 0x953   : > { %s3200_s24 = smov %s2847_s25 }
 0x954   :  { %32 = sbr.rel (!%p30_p8) target bundleno = 20 (0x14), region = 148 }
 0x957   : > { %s3199_s22 = smov %s3196_s7 }
 0x95b   :  { %1615 = vsyncpa [#allocation3], 1 }
 0x95c   :  { %1617 = vsyncpa [#allocation3 + $0x1], 1 }
 0x95d   :  { %1618 = vsyncpa [#allocation6], 1 }
 0x95e   :  { %1620 = vsyncpa [#allocation6 + $0x1], 1 }
 0x95f   :  { %1621 = vsyncpa [#allocation9], 1 }
 0x960   :  { %1622 = vsyncpa [#allocation12], 1 }
 0x961   :  { %1623 = vsyncpa [#allocation4], 1 }
 0x962   :  { %1625 = vsyncpa [#allocation4 + $0x1], 1 }

// kernel: tpu_custom_call.1
= control target key start
LH: loop header
LB: loop body
LE: loop exit
PB: predicated region body
PF: predicated region fallthrough
CT: control target
= control target key end

     0   :  { %s3128_s0 = inlined_call_operand.hbm [shape: f32[4,8,384], index: 0, kind: input, shape index: {}]   ;;  %s3129_s1 = inlined_call_operand.hbm [shape: f32[2,16,16], index: 1, kind: input, shape index: {}]   ;;  %s3130_s2 = inlined_call_operand.hbm [shape: f32[256,256], index: 2, kind: input, shape index: {}]   ;;  %s3131_s3 = inlined_call_operand.vmem [shape: f32[1,256], index: 3, kind: input, shape index: {}]   ;;  %s3132_s4 = inlined_call_operand.hbm [shape: f32[256,128], index: 4, kind: input, shape index: {}]   ;;  %s3133_s5 = inlined_call_operand.vmem [shape: f32[1,128], index: 5, kind: input, shape index: {}]   ;;  %s3134_s6 = inlined_call_operand.hbm [shape: f32[256,256], index: 6, kind: input, shape index: {}]   ;;  %s3135_s7 = inlined_call_operand.vmem [shape: f32[1,256], index: 7, kind: input, shape index: {}]   ;;  %s3136_s8 = inlined_call_operand.hbm [shape: f32[2,128,256], index: 8, kind: input, shape index: {}]   ;;  %s3137_s9 = inlined_call_operand.vmem [shape: f32[2,1,256], index: 9, kind: input, shape index: {}]   ;;  %s3138_s10 = inlined_call_operand.hbm [shape: f32[128,128], index: 10, kind: input, shape index: {}]   ;;  %s3139_s11 = inlined_call_operand.vmem [shape: f32[1,128], index: 11, kind: input, shape index: {}]   ;;  %s3140_s12 = inlined_call_operand.hbm [shape: f32[4,8,256], index: 12, kind: output, shape index: {}]  }
   0x1   :  { %3153 = sst [smem:[#allocation23_spill]] %s3128_s0 }
   0x2   :  { %3154 = sst [smem:[#allocation24_spill]] %s3130_s2 }
   0x3   :  { %3155 = sst [smem:[#allocation25_spill]] %s3132_s4 }
   0x4   :  { %3156 = sst [smem:[#allocation26_spill]] %s3134_s6 }
   0x5   :  { %3157 = sst [smem:[#allocation27_spill]] %s3135_s7 }
   0x6   :  { %3158 = sst [smem:[#allocation28_spill]] %s3136_s8 }
   0x7   :  { %3159 = sst [smem:[#allocation29_spill]] %s3137_s9 }
   0x8   :  { %3160 = sst [smem:[#allocation30_spill]] %s3138_s10 }
   0x9   :  { %3161 = sst [smem:[#allocation31_spill]] %s3139_s11 }
   0xa   :  { %3162 = sst [smem:[#allocation32_spill]] %s3140_s12 }
   0xb   :  { %17 = vsyncpa [#allocation3], 0 }
   0xc   :  { %19 = vsyncpa [#allocation3 + $0x1], 0 }
   0xd   :  { %20 = vsyncpa [#allocation6], 0 }
   0xe   :  { %22 = vsyncpa [#allocation6 + $0x1], 0 }
   0xf   :  { %23 = vsyncpa [#allocation9], 0 }
  0x10   :  { %24 = vsyncpa [#allocation12], 0 }
  0x11   :  { %25 = vsyncpa [#allocation4], 0 }
  0x12   :  { %27 = vsyncpa [#allocation4 + $0x1], 0  ;;  %s2678_s21 = smov 0   ;;  %s2680_s22 = smov 0  }
  0x13   :  { %s2682_s23 = smov 0   ;;  %s2684_s24 = smov 0  }
  0x14 LB: > { %3163 = sst [smem:[#allocation21_spill]] %s2590_s23  ;;  %s2596_s25 = smov [#allocation7]   ;;  %s2594_s24 = sphi %s2684_s24, %s3200_s24   ;;  %s2590_s23 = sphi %s2682_s23, %s3197_s23   ;;  %s2586_s22 = sphi %s2680_s22, %s3199_s22   ;;  %s2582_s21 = sphi %s2678_s21, %s3198_s21  }
  0x15   : > { %s338_s26 = sshll.u32 %s2596_s25, 4  ;;  %s2699_s27 = sadd.s32 4294967295, %s2594_s24   ;;  %s2704_s26 = int_to_ptr.vmem [resolvable:$true] %s338_s26 }
  0x16   : > { %p1738_p0 = scmp.ge.s32.totalorder %s2594_s24, 1  ;;  %p3145_p1 = scmp.eq.s32.totalorder %s2699_s27, 0 }
  0x17   : > { %p326_p2 = scmp.lt.s32.totalorder %s2594_s24, 3  ;;  %s2597_s29 = smov [#allocation8]  }
  0x18   : > { %s354_s30 = sshll.u32 %s2597_s29, 4  ;;  %s2598_s14 = smov [#allocation11]   ;;  %s2719_s30 = int_to_ptr.vmem [resolvable:$true] %s354_s30 }
  0x19   : > { %p2706_p3 = pnand %p1738_p0, %p326_p2  ;;  %s2721_s15 = sshll.u32 %s2598_s14, 4  ;;  %s387_s15 = int_to_ptr.vmem [resolvable:$true] %s2721_s15 }
  0x1a   : > { %s3166_s2 = sld [smem:[#allocation24_spill]] }
  0x1b   : > { %s3164_s28 = scalar_select %p2706_p3, 1, 0 }
  0x1c   : > { %p2198_p5 = pneg %p2706_p3 }
  0x1e   : > { %p2715_p6 = pnand %p2198_p5, %p3145_p1 }
  0x20   : > { %s2312_s18 = scalar_lea.hbm %s3166_s2, 8192  ;;  %p2731_p8 = pneg %p2715_p6 }
  0x21   : > { %p2313_p7 = scmp.ne.s32.totalorder %s3166_s2, %s2312_s18  ;;  %p2319_p11 = scmp.lt.u32.totalorder %s2312_s18, %s3166_s2 }
  0x23   : > { %p2315_p9 = pnand %p2731_p8, %p2313_p7 }
  0x25   : > { %p2316_p10 = pneg %p2315_p9 }
  0x27   : > { %p2321_p12 = pnand %p2319_p11, %p2316_p10 }
  0x29   : > { %2324 = shalt.err (!%p2321_p12)
}
  0x2a   : > { %s2325_s16 = scalar_lea.vmem %s2704_s26, 8192  ;;  %p2333_p5 = scmp.lt.s32.totalorder %s2704_s26, %s2704_s26 }
  0x2b   : > { %p2326_p13 = scmp.ne.s32.totalorder %s2704_s26, %s2325_s16  ;;  %p2334_p4 = scmp.lt.s32.totalorder %s2325_s16, %s2325_s16 }
  0x2d   : > { %p2328_p0 = pnand %p2326_p13, %p2731_p8  ;;  %p2335_p7 = por %p2334_p4, %p2333_p5 }
  0x2f   : > { %p2329_p2 = pneg %p2328_p0 }
  0x31   : > { %p2336_p9 = pnand %p2335_p7, %p2329_p2 }
  0x33   : > { %2339 = shalt.err (!%p2336_p9)
}
  0x34   : > { %s3143_s17 = smov 256   ;;  %s2600_s18 = smov 16  }
  0x35   : > { %2201 = dma.hbm_to_vmem [thread:$0]  (!%p2715_p6), %s3166_s2, 8192, %s2704_s26, [#allocation6], %s3143_s17, %s3143_s17, %s2600_s18  }
  0x36   : > { %s3168_s4 = sld [smem:[#allocation25_spill]] }
  0x3c   : > { %s2340_s16 = scalar_lea.hbm %s3168_s4, 4096 }
  0x3d   : > { %p2341_p4 = scmp.ne.s32.totalorder %s3168_s4, %s2340_s16  ;;  %p2347_p12 = scmp.lt.u32.totalorder %s2340_s16, %s3168_s4 }
  0x3f   : > { %p2343_p10 = pnand %p2341_p4, %p2731_p8 }
  0x41   : > { %p2344_p11 = pneg %p2343_p10 }
  0x43   : > { %p2349_p13 = pnand %p2347_p12, %p2344_p11 }
  0x45   : > { %2352 = shalt.err (!%p2349_p13)
}
  0x46   : > { %s2353_s26 = scalar_lea.vmem %s2719_s30, 4096  ;;  %p2361_p7 = scmp.lt.s32.totalorder %s2719_s30, %s2719_s30 }
  0x47   : > { %p2354_p0 = scmp.ne.s32.totalorder %s2719_s30, %s2353_s26  ;;  %p2362_p9 = scmp.lt.s32.totalorder %s2353_s26, %s2353_s26 }
  0x49   : > { %p2356_p2 = pnand %p2354_p0, %p2731_p8  ;;  %p2363_p4 = por %p2362_p9, %p2361_p7 }
  0x4b   : > { %p2357_p5 = pneg %p2356_p2 }
  0x4d   : > { %p2364_p10 = pnand %p2363_p4, %p2357_p5 }
  0x4f   : > { %2367 = shalt.err (!%p2364_p10)
}
  0x50   : > { %s3147_s11 = smov 128   ;;  %s3149_s7 = smov 8  }
  0x51   : > { %2204 = dma.hbm_to_vmem [thread:$0]  (!%p2715_p6), %s3168_s4, 4096, %s2719_s30, [#allocation9], %s3147_s11, %s3147_s11, %s3149_s7  }
  0x52   : > { %s3169_s8 = sld [smem:[#allocation28_spill]] }
  0x58   : > { %s2368_s29 = scalar_lea.hbm %s3169_s8, 8192 }
  0x59   : > { %p2369_p11 = scmp.ne.s32.totalorder %s3169_s8, %s2368_s29  ;;  %p2375_p0 = scmp.lt.u32.totalorder %s2368_s29, %s3169_s8 }
  0x5b   : > { %p2371_p12 = pnand %p2369_p11, %p2731_p8 }
  0x5d   : > { %p2372_p13 = pneg %p2371_p12 }
  0x5f   : > { %p2377_p2 = pnand %p2375_p0, %p2372_p13 }
  0x61   : > { %2380 = shalt.err (!%p2377_p2)
}
  0x62   : > { %s2381_s9 = scalar_lea.vmem %s387_s15, 8192  ;;  %p2389_p4 = scmp.lt.s32.totalorder %s387_s15, %s387_s15 }
  0x63   : > { %p2382_p5 = scmp.ne.s32.totalorder %s387_s15, %s2381_s9  ;;  %p2390_p10 = scmp.lt.s32.totalorder %s2381_s9, %s2381_s9 }
  0x65   : > { %p2384_p7 = pnand %p2382_p5, %p2731_p8  ;;  %p2391_p1 = por %p2390_p10, %p2389_p4 }
  0x67   : > { %p2385_p9 = pneg %p2384_p7 }
  0x69   : > { %p2392_p3 = pnand %p2391_p1, %p2385_p9 }
  0x6b   : > { %2395 = shalt.err (!%p2392_p3)
}
  0x6c   : > { %s3170_s30 = smov 256   ;;  %s2603_s19 = smov [#allocation10]  }
  0x6d   : > { %2210 = dma.hbm_to_vmem [thread:$0]  (!%p2715_p6), %s3169_s8, 8192, %s387_s15, [#allocation12], %s3170_s30, %s3170_s30, %s2600_s18  }
  0x6e   : > { %s370_s20 = sshll.u32 %s2603_s19, 4  ;;  %s2604_s29 = smov [#allocation13]   ;;  %s371_s20 = int_to_ptr.vmem [resolvable:$true] %s370_s20 }
  0x6f   : > { %s402_s14 = sshll.u32 %s2604_s29, 4  ;;  %s3171_s6 = sld [smem:[#allocation26_spill]]  ;;  %s403_s14 = int_to_ptr.vmem [resolvable:$true] %s402_s14 }
  0x75   : > { %s2396_s9 = scalar_lea.hbm %s3171_s6, 8192 }
  0x76   : > { %p2397_p1 = scmp.ne.s32.totalorder %s3171_s6, %s2396_s9  ;;  %p2403_p12 = scmp.lt.u32.totalorder %s2396_s9, %s3171_s6 }
  0x78   : > { %p2399_p3 = pnand %p2397_p1, %p2731_p8 }
  0x7a   : > { %p2400_p11 = pneg %p2399_p3 }
  0x7c   : > { %p2405_p13 = pnand %p2403_p12, %p2400_p11 }
  0x7e   : > { %2408 = shalt.err (!%p2405_p13)
}
  0x7f   : > { %s2409_s15 = scalar_lea.vmem %s371_s20, 8192  ;;  %p2417_p7 = scmp.lt.s32.totalorder %s371_s20, %s371_s20 }
  0x80   : > { %p2410_p0 = scmp.ne.s32.totalorder %s371_s20, %s2409_s15  ;;  %p2418_p9 = scmp.lt.s32.totalorder %s2409_s15, %s2409_s15 }
  0x82   : > { %p2412_p2 = pnand %p2410_p0, %p2731_p8  ;;  %p2419_p4 = por %p2418_p9, %p2417_p7 }
  0x84   : > { %p2413_p5 = pneg %p2412_p2 }
  0x86   : > { %p2420_p10 = pnand %p2419_p4, %p2413_p5 }
  0x88   : > { %2423 = shalt.err (!%p2420_p10)
}
  0x89   : > { %2207 = dma.hbm_to_vmem [thread:$0]  (!%p2715_p6), %s3171_s6, 8192, %s371_s20, [#allocation9], %s3170_s30, %s3170_s30, %s2600_s18  }
  0x8a   : > { %s3172_s10 = sld [smem:[#allocation30_spill]] }
  0x90   : > { %s2424_s19 = scalar_lea.hbm %s3172_s10, 2048 }
  0x91   : > { %p2425_p1 = scmp.ne.s32.totalorder %s3172_s10, %s2424_s19  ;;  %p2431_p12 = scmp.lt.u32.totalorder %s2424_s19, %s3172_s10 }
  0x93   : > { %p2427_p3 = pnand %p2425_p1, %p2731_p8 }
  0x95   : > { %p2428_p11 = pneg %p2427_p3 }
  0x97   : > { %p2433_p13 = pnand %p2431_p12, %p2428_p11 }
  0x99   : > { %2436 = shalt.err (!%p2433_p13)
}
  0x9a   : > { %s2437_s17 = scalar_lea.vmem %s403_s14, 2048  ;;  %p2445_p7 = scmp.lt.s32.totalorder %s403_s14, %s403_s14 }
  0x9b   : > { %p2438_p0 = scmp.ne.s32.totalorder %s403_s14, %s2437_s17  ;;  %p2446_p9 = scmp.lt.s32.totalorder %s2437_s17, %s2437_s17 }
  0x9d   : > { %p2440_p2 = pnand %p2438_p0, %p2731_p8  ;;  %p2447_p4 = por %p2446_p9, %p2445_p7 }
  0x9f   : > { %p2441_p5 = pneg %p2440_p2 }
  0xa1   : > { %p2448_p10 = pnand %p2447_p4, %p2441_p5 }
  0xa3   : > { %2451 = shalt.err (!%p2448_p10)
}
  0xa4   : > { %s3173_s18 = smov 8   ;;  %s3174_s30 = smov 128  }
  0xa5   : > { %2213 = dma.hbm_to_vmem [thread:$0]  (!%p2715_p6), %s3172_s10, 2048, %s403_s14, [#allocation12], %s3174_s30, %s3174_s30, %s3173_s18  }
  0xa6   : > { %s1737_s13 = sadd.s32 4294967294, %s2594_s24   ;;  %s2847_s25 = sadd.s32 1, %s2594_s24  }
  0xa7   : > { %s40_s2 = sadd.s32 1, %s2590_s23  ;;  %s37_s11 = ssub.s32 %s2594_s24, %s2847_s25 }
  0xa8   : > { %p47_p8 = scmp.ne.s32.totalorder %s2590_s23, %s2586_s22  ;;  %p38_p1 = scmp.eq.s32.totalorder %s37_s11, 0 }
  0xa9   : > { %p48_p3 = scmp.eq.s32.totalorder %s2594_s24, 0  ;;  %p53_p11 = scmp.ne.s32.totalorder %s2586_s22, %s2582_s21 }
  0xaa   : > { %p313_p12 = scmp.eq.s32.totalorder %s2699_s27, 1  ;;  %p3176_p0 = scmp.eq.s32.totalorder %s2699_s27, 0 }
  0xab   : > { %s2859_s7 = scalar_select %p38_p1, %s2590_s23, %s40_s2  }
  0xac   : > { %p49_p13 = por %p48_p3, %p47_p8  ;;  %p2863_p2 = por %p3176_p0, %p53_p11 }
  0xad   : > { %3175 = sst [smem:[#allocation22_spill]] %s2859_s7  ;;  %p2867_p6 = por %p313_p12, %p47_p8 }
  0xae   : > { %p319_p5 = scmp.eq.s32.totalorder %s1737_s13, 1  ;;  %p2230_p7 = scmp.lt.s32.totalorder %s2594_s24, 2 }
  0xaf   : > { %s3178_s14 = scalar_select %p2867_p6, 1, 0 }
  0xb0   : > { %s2873_s19 = sand.u32 1, %s2590_s23   ;;  %p2875_p9 = por %p319_p5, %p53_p11 }
  0xb1   : > { %s2169_s16 = smul.u32 48, %s2873_s19  ;;  %p2880_p4 = pnand %p2230_p7, %p49_p13 }
  0xb2   : > { %s3179_s29 = scalar_select %p2875_p9, 1, 0 }
  0xb3   : > { %s2170_s9 = smul.u32 768, %s2594_s24  ;;  %s3181_s0 = sld [smem:[#allocation23_spill]] }
  0xb4   : > { %s423_s13 = scalar_lea.vmem [#allocation2], %s2169_s16  ;;  %s420_s11 = scalar_lea.sflag [#allocation3], %s2873_s19 }
  0xb5   : > { %s431_s2 = sshll.u32 %s423_s13, 4  ;;  %p2454_p8 = pneg %p2880_p4  ;;  %s2890_s2 = int_to_ptr.vmem [resolvable:$true] %s431_s2 }
  0xb9   : > { %s2888_s15 = scalar_lea.hbm %s3181_s0, %s2170_s9  ;;  %s2457_s20 = scalar_lea.hbm %s3181_s0, 1536 }
  0xba   : > { %s2452_s4 = scalar_lea.hbm %s2888_s15, 768  ;;  %p2458_p11 = scmp.lt.u32.totalorder %s2888_s15, %s3181_s0 }
  0xbb   : > { %p2453_p10 = scmp.ne.s32.totalorder %s2888_s15, %s2452_s4  ;;  %p2459_p12 = scmp.lt.u32.totalorder %s2457_s20, %s2452_s4 }
  0xbc   : > { %p2461_p0 = scmp.lt.u32.totalorder %s2452_s4, %s2888_s15 }
  0xbd   : > { %p2455_p1 = pnand %p2454_p8, %p2453_p10  ;;  %p2460_p13 = por %p2459_p12, %p2458_p11 }
  0xbf   : > { %p2456_p3 = pneg %p2455_p1  ;;  %p2462_p5 = por %p2461_p0, %p2460_p13 }
  0xc1   : > { %p2463_p7 = pnand %p2462_p5, %p2456_p3 }
  0xc3   : > { %2466 = shalt.err (!%p2463_p7)
}
  0xc4   : > { %s2467_s16 = scalar_lea.vmem %s2890_s2, 768  ;;  %s2605_s13 = smov [#allocation2]  }
  0xc5   : > { %p2468_p10 = scmp.ne.s32.totalorder %s2890_s2, %s2467_s16  ;;  %s2472_s17 = sshll.u32 %s2605_s13, 4  ;;  %s2473_s17 = int_to_ptr.vmem [resolvable:$false] %s2472_s17 }
  0xc6   : > { %s2474_s6 = scalar_lea.vmem %s2473_s17, 1536  ;;  %p2475_p6 = scmp.lt.s32.totalorder %s2890_s2, %s2473_s17 }
  0xc7   : > { %p2470_p1 = pnand %p2468_p10, %p2454_p8  ;;  %p2476_p11 = scmp.lt.s32.totalorder %s2474_s6, %s2467_s16 }
  0xc9   : > { %p2471_p9 = pneg %p2470_p1  ;;  %p2477_p12 = por %p2476_p11, %p2475_p6 }
  0xcb   : > { %p2478_p13 = pnand %p2477_p12, %p2471_p9 }
  0xcd   : > { %2481 = shalt.err (!%p2478_p13)
}
  0xce   : > { %s2606_s4 = smov 384   ;;  %s2607_s8 = smov 24  }
  0xcf   : > { %2217 = dma.hbm_to_vmem [thread:$0]  (!%p2880_p4), %s2888_s15, 768, %s2890_s2, %s420_s11, %s2606_s4, %s2606_s4, %s2607_s8  }
  0xd0   : > { %s441_s9 = sand.u32 1, %s2594_s24   ;;  %s1748_s20 = sshll.u32 %s2873_s19, 4 }
  0xd1   : > { %s1774_s13 = sshll.u32 %s2594_s24, 8  ;;  %s445_s16 = scalar_lea.vmem [#allocation5], %s1748_s20 }
  0xd2   : > { %s452_s17 = sshll.u32 %s445_s16, 4  ;;  %s2926_s10 = scalar_lea.hbm %s3129_s1, %s1774_s13  ;;  %s2928_s17 = int_to_ptr.vmem [resolvable:$true] %s452_s17 }
  0xd3   : > { %s2930_s7 = scalar_lea.sflag [#allocation6], %s441_s9  ;;  %s2482_s23 = scalar_lea.hbm %s2926_s10, 256 }
  0xd4   : > { %p2483_p6 = scmp.ne.s32.totalorder %s2926_s10, %s2482_s23  ;;  %s2487_s0 = scalar_lea.hbm %s3129_s1, 512 }
  0xd5   : > { %p2488_p0 = scmp.lt.u32.totalorder %s2926_s10, %s3129_s1  ;;  %p2489_p5 = scmp.lt.u32.totalorder %s2487_s0, %s2482_s23 }
  0xd6   : > { %p2485_p9 = pnand %p2483_p6, %p2454_p8  ;;  %p2491_p10 = scmp.lt.u32.totalorder %s2482_s23, %s2926_s10 }
  0xd7   : > { %p2490_p7 = por %p2489_p5, %p2488_p0 }
  0xd8   : > { %p2486_p3 = pneg %p2485_p9 }
  0xd9   : > { %p2492_p1 = por %p2491_p10, %p2490_p7 }
  0xdb   : > { %p2493_p11 = pnand %p2492_p1, %p2486_p3 }
  0xdd   : > { %2496 = shalt.err (!%p2493_p11)
}
  0xde   : > { %s2497_s4 = scalar_lea.vmem %s2928_s17, 256  ;;  %s2608_s8 = smov [#allocation5]  }
  0xdf   : > { %p2498_p12 = scmp.ne.s32.totalorder %s2928_s17, %s2497_s4  ;;  %s2502_s9 = sshll.u32 %s2608_s8, 4  ;;  %s2503_s9 = int_to_ptr.vmem [resolvable:$false] %s2502_s9 }
  0xe0   : > { %s2504_s20 = scalar_lea.vmem %s2503_s9, 512  ;;  %p2505_p9 = scmp.lt.s32.totalorder %s2928_s17, %s2503_s9 }
  0xe1   : > { %p2500_p13 = pnand %p2498_p12, %p2454_p8  ;;  %p2506_p0 = scmp.lt.s32.totalorder %s2504_s20, %s2497_s4 }
  0xe3   : > { %p2501_p6 = pneg %p2500_p13  ;;  %p2507_p5 = por %p2506_p0, %p2505_p9 }
  0xe5   : > { %p2508_p7 = pnand %p2507_p5, %p2501_p6 }
  0xe7   : > { %2511 = shalt.err (!%p2508_p7)
}
  0xe8   : > { %2220 = dma.hbm_to_vmem [thread:$0]  (!%p2880_p4), %s2926_s10, 256, %s2928_s17, %s2930_s7, %s3174_s30, %s3174_s30, %s3173_s18  }
  0xe9   : > { %p3182_p8 = scmp.ne.s32.totalorder %s3164_s28, 0 }
  0xea   : > { %s2962_s23 = sand.u32 (!%p3182_p8), 1, %s2586_s22  }
  0xeb   : > { %464 = sbr.rel (%p3182_p8) target bundleno = 2379 (0x94b), region = 68  ;;  %s467_s16 = scalar_lea.sflag (!%p3182_p8), [#allocation3], %s2962_s23 }
  0xec   : > { %s2171_s13 = smul.u32 (!%p3182_p8), 48, %s2962_s23 }
  0xee   : > { %s2966_s6 = scalar_lea.vmem (!%p3182_p8), [#allocation2], %s2171_s13 }
  0xf2   : > { %2557 = dma.done.wait (%p2863_p2), %s467_s16, 768  }
  0xf3   : > { %2559 = vsyncadd (%p2863_p2), %s467_s16, 4294966528  ;;  %s475_s10 = sand.u32 1, %s2699_s27   ;;  %s1752_s28 = sshll.u32 %s2962_s23, 4 }
  0xf4   : > { %s476_s18 = scalar_lea.sflag [#allocation6], %s475_s10  ;;  %s2974_s30 = scalar_lea.vmem [#allocation5], %s1752_s28 }
  0xf5   : > { %2561 = dma.done.wait (%p2863_p2), %s476_s18, 256  }
  0xf6   : > { %2563 = vsyncadd (%p2863_p2), %s476_s18, 4294967040  ;;  %p3183_p4 = scmp.eq.s32.totalorder %s2699_s27, 0 }
  0xf8   : > { %2565 = dma.done.wait (%p3183_p4), [#allocation6], 8192   ;;  %p3184_p3 = pmov %p3183_p4 }
  0xfa   : > { %2567 = vsyncadd (%p3184_p3), [#allocation6], 4294959104  ;;  %p3185_p10 = pmov %p3184_p3 }
  0xfb   : > { %p3186_p1 = pmov %p3184_p3 }
  0xfc   : > { %2569 = dma.done.wait (%p3185_p10), [#allocation9], 12288  }
  0xfd   : > { %2571 = vsyncadd (%p3186_p1), [#allocation9], 4294955008  ;;  %p3187_p11 = pmov %p3186_p1 }
  0xfe   : > { %p3188_p12 = pmov %p3186_p1 }
  0xff   : > { %2573 = dma.done.wait (%p3187_p11), [#allocation12], 10240  }
 0x100   : > { %2575 = vsyncadd (%p3188_p12), [#allocation12], 4294957056  ;;  %v556_v0 = vld [vmem:[#allocation7 + $0x8] sm:$0xff]  ;;  %v558_v1 = vld [vmem:[#allocation7 + $0x18] sm:$0xff]  ;;  %vm981_vm0 = vcmask 130048   ;;  %s3189_s0 = sld [smem:[#allocation27_spill]] }
 0x101   : > { %v555_v2 = vld [vmem:[#allocation7] sm:$0xff]  ;;  %v1901_v3 = vpack.c.bf16 %v558_v1, %v556_v0  ;;  %v557_v4 = vld [vmem:[#allocation7 + $0x10] sm:$0xff]  ;;  %v560_v5 = vld [vmem:[#allocation7 + $0x28] sm:$0xff]  ;;  %s3190_s4 = sld [smem:[#allocation29_spill]]  ;;  %s1758_s20 = sshll.u32 %s2962_s23, 5 }
 0x102   : > { %v562_v6 = vld [vmem:[#allocation7 + $0x38] sm:$0xff]  ;;  %v1903_v7 = vpack.c.bf16 %v557_v4, %v555_v2  ;;  %v559_v9 = vld [vmem:[#allocation7 + $0x20] sm:$0xff]  ;;  %v561_v10 = vld [vmem:[#allocation7 + $0x30] sm:$0xff]  ;;  %s544_s13 = scalar_lea.vmem [#allocation14], %s1758_s20  ;;  %s3191_s28 = sld [smem:[#allocation31_spill]] }
 0x103   : > { %v1905_v8 = vpack.c.bf16 %v562_v6, %v560_v5  ;;  %v564_v11 = vld [vmem:[#allocation7 + $0x48] sm:$0xff]  ;;  %1902 = vmatprep.subr.bf16.mxu0 %v1901_v3  ;;  %v566_v12 = vld [vmem:[#allocation7 + $0x58] sm:$0xff]  ;;  %v1907_v13 = vpack.c.bf16 %v561_v10, %v559_v9  ;;  %v563_v15 = vld [vmem:[#allocation7 + $0x40] sm:$0xff]  ;;  %s1776_s18 = sshll.u32 %s2699_s27, 9  ;;  %s3192_s26 = sld [smem:[#allocation32_spill]] }
 0x104   : > { %1904 = vmatpush1.bf16.msra.mxu0 %v1903_v7  ;;  %v1909_v14 = vpack.c.bf16 %v566_v12, %v564_v11  ;;  %v565_v16 = vld [vmem:[#allocation7 + $0x50] sm:$0xff]  ;;  %v568_v17 = vld [vmem:[#allocation7 + $0x68] sm:$0xff]  ;;  %v570_v18 = vld [vmem:[#allocation7 + $0x78] sm:$0xff]  ;;  %s1580_s27 = scalar_lea.sflag [#allocation4], %s2962_s23  ;;  %p3193_p13 = scmp.ne.s32.totalorder %s3178_s14, 0 }
 0x105   : > { %1906 = vmatprep.subr.bf16.mxu0 %v1905_v8  ;;  %v1911_v19 = vpack.c.bf16 %v565_v16, %v563_v15  ;;  %v1913_v20 = vpack.c.bf16 %v570_v18, %v568_v17  ;;  %v567_v21 = vld [vmem:[#allocation7 + $0x60] sm:$0xff]  ;;  %v569_v22 = vld [vmem:[#allocation7 + $0x70] sm:$0xff]  ;;  %v572_v23 = vld [vmem:[#allocation7 + $0x88] sm:$0xff]  ;;  %s2610_s15 = smov [#allocation14]  }
 0x106   : > { %v574_v24 = vld [vmem:[#allocation7 + $0x98] sm:$0xff]  ;;  %v1915_v25 = vpack.c.bf16 %v569_v22, %v567_v21  ;;  %v571_v27 = vld [vmem:[#allocation7 + $0x80] sm:$0xff]  ;;  %v573_v28 = vld [vmem:[#allocation7 + $0x90] sm:$0xff] }
 0x107   : > { %v1917_v26 = vpack.c.bf16 %v574_v24, %v572_v23  ;;  %v576_v29 = vld [vmem:[#allocation7 + $0xa8] sm:$0xff]  ;;  %v578_v30 = vld [vmem:[#allocation7 + $0xb8] sm:$0xff]  ;;  %v1919_v31 = vpack.c.bf16 %v573_v28, %v571_v27  ;;  %v575_v33 = vld [vmem:[#allocation7 + $0xa0] sm:$0xff] }
 0x108   : > { %1908 = vmatpush1.bf16.msra.mxu0 %v1907_v13  ;;  %v1921_v32 = vpack.c.bf16 %v578_v30, %v576_v29  ;;  %v577_v34 = vld [vmem:[#allocation7 + $0xb0] sm:$0xff]  ;;  %v580_v35 = vld [vmem:[#allocation7 + $0xc8] sm:$0xff]  ;;  %v582_v36 = vld [vmem:[#allocation7 + $0xd8] sm:$0xff] }
 0x109   : > { %1910 = vmatprep.subr.bf16.mxu0 %v1909_v14  ;;  %v1923_v37 = vpack.c.bf16 %v577_v34, %v575_v33  ;;  %v1925_v38 = vpack.c.bf16 %v582_v36, %v580_v35  ;;  %v579_v39 = vld [vmem:[#allocation7 + $0xc0] sm:$0xff]  ;;  %v581_v40 = vld [vmem:[#allocation7 + $0xd0] sm:$0xff]  ;;  %v584_v42 = vld [vmem:[#allocation7 + $0xe8] sm:$0xff]  ;;  %s3081_s17 = scalar_lea.hbm %s3192_s26, %s1776_s18 }
 0x10a   : > { %v549_v41 = vld [vmem:[%s2966_s6 + $0x10] sm:$0xff]  ;;  %v586_v43 = vld [vmem:[#allocation7 + $0xf8] sm:$0xff]  ;;  %v729_v47 = vld [vmem:[#allocation8 + $0x88] sm:$0xff]  ;;  %v1927_v50 = vpack.c.bf16 %v581_v40, %v579_v39 }
 0x10b   : > { %695 = vmatprep.mubr.f32.mxu0 %v549_v41  ;;  %v728_v44 = vld [vmem:[#allocation8 + $0x80] sm:$0xff]  ;;  %v585_v46 = vld [vmem:[#allocation7 + $0xf0] sm:$0xff]  ;;  %v713_v49 = vld [vmem:[#allocation8 + $0x8] sm:$0xff]  ;;  %v1929_v56 = vpack.c.bf16 %v586_v43, %v584_v42 }
 0x10c   : > { %1912 = vmatpush1.bf16.msra.mxu0 %v1911_v19  ;;  %v583_v45 = vld [vmem:[#allocation7 + $0xe0] sm:$0xff]  ;;  %v1965_v51 = vpack.c.bf16 %v729_v47, %v728_v44  ;;  %v730_v53 = vld [vmem:[#allocation8 + $0x90] sm:$0xff]  ;;  %v731_v54 = vld [vmem:[#allocation8 + $0x98] sm:$0xff] }
 0x10d   : > { %1914 = vmatprep.subr.bf16.mxu0 %v1913_v20  ;;  %v712_v48 = vld [vmem:[#allocation8] sm:$0xff]  ;;  %v714_v55 = vld [vmem:[#allocation8 + $0x10] sm:$0xff]  ;;  %v1969_v57 = vpack.c.bf16 %v731_v54, %v730_v53  ;;  %v715_v58 = vld [vmem:[#allocation8 + $0x18] sm:$0xff]  ;;  %v1931_v0 = vpack.c.bf16 %v585_v46, %v583_v45 }
 0x10e   : > { %v1967_v52 = vpack.c.bf16 %v713_v49, %v712_v48  ;;  %v732_v59 = vld [vmem:[#allocation8 + $0xa0] sm:$0xff]  ;;  %v733_v60 = vld [vmem:[#allocation8 + $0xa8] sm:$0xff]  ;;  %v590_v62 = vld [vmem:[#allocation7 + $0x118] sm:$0xff]  ;;  %1966 = vmatprep.subr.bf16.mxu1 %v1965_v51  ;;  %v1971_v63 = vpack.c.bf16 %v715_v58, %v714_v55 }
 0x10f   : > { %v588_v61 = vld [vmem:[#allocation7 + $0x108] sm:$0xff]  ;;  %v587_v1 = vld [vmem:[#allocation7 + $0x100] sm:$0xff]  ;;  %v1973_v2 = vpack.c.bf16 %v733_v60, %v732_v59  ;;  %v589_v6 = vld [vmem:[#allocation7 + $0x110] sm:$0xff] }
 0x110   : > { %1916 = vmatpush1.bf16.msra.mxu0 %v1915_v25  ;;  %1968 = vmatpush3.bf16.msra.mxu1 %v1967_v52  ;;  %v716_v3 = vld [vmem:[#allocation8 + $0x20] sm:$0xff]  ;;  %v717_v4 = vld [vmem:[#allocation8 + $0x28] sm:$0xff]  ;;  %v1933_v5 = vpack.c.bf16 %v590_v62, %v588_v61  ;;  %v734_v7 = vld [vmem:[#allocation8 + $0xb0] sm:$0xff]  ;;  %v1935_v12 = vpack.c.bf16 %v589_v6, %v587_v1 }
 0x111   : > { %1918 = vmatprep.subr.bf16.mxu0 %v1917_v26  ;;  %1970 = vmatprep.subr.bf16.mxu1 %v1969_v57  ;;  %v735_v8 = vld [vmem:[#allocation8 + $0xb8] sm:$0xff]  ;;  %v592_v9 = vld [vmem:[#allocation7 + $0x128] sm:$0xff]  ;;  %v1975_v11 = vpack.c.bf16 %v717_v4, %v716_v3  ;;  %v718_v14 = vld [vmem:[#allocation8 + $0x30] sm:$0xff] }
 0x112   : > { %v594_v10 = vld [vmem:[#allocation7 + $0x138] sm:$0xff]  ;;  %v1977_v13 = vpack.c.bf16 %v735_v8, %v734_v7  ;;  %v591_v17 = vld [vmem:[#allocation7 + $0x120] sm:$0xff]  ;;  %v593_v18 = vld [vmem:[#allocation7 + $0x130] sm:$0xff] }
 0x113   : > { %v719_v15 = vld [vmem:[#allocation8 + $0x38] sm:$0xff]  ;;  %v1937_v16 = vpack.c.bf16 %v594_v10, %v592_v9  ;;  %v596_v19 = vld [vmem:[#allocation7 + $0x148] sm:$0xff]  ;;  %v1939_v22 = vpack.c.bf16 %v593_v18, %v591_v17  ;;  %v595_v24 = vld [vmem:[#allocation7 + $0x140] sm:$0xff] }
 0x114   : > { %1920 = vmatpush1.bf16.msra.mxu0 %v1919_v31  ;;  %1972 = vmatpush3.bf16.msra.mxu1 %v1971_v63  ;;  %v598_v20 = vld [vmem:[#allocation7 + $0x158] sm:$0xff]  ;;  %v1979_v21 = vpack.c.bf16 %v719_v15, %v718_v14  ;;  %v597_v25 = vld [vmem:[#allocation7 + $0x150] sm:$0xff]  ;;  %v600_v26 = vld [vmem:[#allocation7 + $0x168] sm:$0xff] }
 0x115   : > { %1922 = vmatprep.subr.bf16.mxu0 %v1921_v32  ;;  %1974 = vmatprep.subr.bf16.mxu1 %v1973_v2  ;;  %v1941_v23 = vpack.c.bf16 %v598_v20, %v596_v19  ;;  %v602_v27 = vld [vmem:[#allocation7 + $0x178] sm:$0xff]  ;;  %v1943_v28 = vpack.c.bf16 %v597_v25, %v595_v24  ;;  %v599_v30 = vld [vmem:[#allocation7 + $0x160] sm:$0xff]  ;;  %v601_v31 = vld [vmem:[#allocation7 + $0x170] sm:$0xff] }
 0x116   : > { %v1945_v29 = vpack.c.bf16 %v602_v27, %v600_v26  ;;  %v604_v32 = vld [vmem:[#allocation7 + $0x188] sm:$0xff]  ;;  %v606_v33 = vld [vmem:[#allocation7 + $0x198] sm:$0xff]  ;;  %v1947_v34 = vpack.c.bf16 %v601_v31, %v599_v30  ;;  %v603_v36 = vld [vmem:[#allocation7 + $0x180] sm:$0xff] }
 0x117   : > { %v1949_v35 = vpack.c.bf16 %v606_v33, %v604_v32  ;;  %v610_v39 = vld [vmem:[#allocation7 + $0x1b8] sm:$0xff]  ;;  %v607_v42 = vld [vmem:[#allocation7 + $0x1a0] sm:$0xff]  ;;  %v609_v43 = vld [vmem:[#allocation7 + $0x1b0] sm:$0xff] }
 0x118   : > { %1924 = vmatpush1.bf16.msra.mxu0 %v1923_v37  ;;  %1976 = vmatpush3.bf16.msra.mxu1 %v1975_v11  ;;  %v605_v37 = vld [vmem:[#allocation7 + $0x190] sm:$0xff]  ;;  %v612_v44 = vld [vmem:[#allocation7 + $0x1c8] sm:$0xff]  ;;  %v614_v45 = vld [vmem:[#allocation7 + $0x1d8] sm:$0xff]  ;;  %v1955_v46 = vpack.c.bf16 %v609_v43, %v607_v42 }
 0x119   : > { %1926 = vmatprep.subr.bf16.mxu0 %v1925_v38  ;;  %1978 = vmatprep.subr.bf16.mxu1 %v1977_v13  ;;  %v608_v38 = vld [vmem:[#allocation7 + $0x1a8] sm:$0xff]  ;;  %v1951_v40 = vpack.c.bf16 %v605_v37, %v603_v36  ;;  %v1957_v47 = vpack.c.bf16 %v614_v45, %v612_v44  ;;  %v611_v48 = vld [vmem:[#allocation7 + $0x1c0] sm:$0xff]  ;;  %v613_v49 = vld [vmem:[#allocation7 + $0x1d0] sm:$0xff] }
 0x11a   : > { %v1953_v41 = vpack.c.bf16 %v610_v39, %v608_v38  ;;  %v618_v51 = vld [vmem:[#allocation7 + $0x1f8] sm:$0xff]  ;;  %v1959_v52 = vpack.c.bf16 %v613_v49, %v611_v48  ;;  %v615_v54 = vld [vmem:[#allocation7 + $0x1e0] sm:$0xff]  ;;  %v617_v55 = vld [vmem:[#allocation7 + $0x1f0] sm:$0xff] }
 0x11b   : > { %v548_v57 = vld [vmem:[%s2966_s6 + $0x8] sm:$0xff]  ;;  %v551_v59 = vld [vmem:[%s2966_s6 + $0x20] sm:$0xff] }
 0x11c   : > { %1928 = vmatpush1.bf16.msra.mxu0 %v1927_v50  ;;  %1980 = vmatpush3.bf16.msra.mxu1 %v1979_v21  ;;  %v616_v50 = vld [vmem:[#allocation7 + $0x1e8] sm:$0xff]  ;;  %v736_v60 = vld [vmem:[#allocation8 + $0xc0] sm:$0xff]  ;;  %v738_v2 = vld [vmem:[#allocation8 + $0xd0] sm:$0xff] }
 0x11d   : > { %1930 = vmatprep.subr.bf16.mxu0 %v1929_v56  ;;  %v1961_v53 = vpack.c.bf16 %v618_v51, %v616_v50  ;;  %v1963_v56 = vpack.c.bf16 %v617_v55, %v615_v54  ;;  %v2995_v58 = vld [vmem:[%s2966_s6 + $0x28] sm:$0xff]  ;;  %v720_v63 = vld [vmem:[#allocation8 + $0x40] sm:$0xff]  ;;  %v742_v14 = vld [vmem:[#allocation8 + $0xf0] sm:$0xff] }
 0x11e   : > { %v737_v61 = vld [vmem:[#allocation8 + $0xc8] sm:$0xff]  ;;  %v739_v3 = vld [vmem:[#allocation8 + $0xd8] sm:$0xff]  ;;  %v740_v8 = vld [vmem:[#allocation8 + $0xe0] sm:$0xff] }
 0x11f   : > { %v1981_v62 = vpack.c.bf16 %v737_v61, %v736_v60  ;;  %v1985_v4 = vpack.c.bf16 %v739_v3, %v738_v2  ;;  %v723_v6 = vld [vmem:[#allocation8 + $0x58] sm:$0xff]  ;;  %v741_v9 = vld [vmem:[#allocation8 + $0xe8] sm:$0xff]  ;;  %v724_v11 = vld [vmem:[#allocation8 + $0x60] sm:$0xff] }
 0x120   : > { %1932 = vmatpush1.bf16.msra.mxu0 %v1931_v0  ;;  %v721_v0 = vld [vmem:[#allocation8 + $0x48] sm:$0xff]  ;;  %v1989_v10 = vpack.c.bf16 %v741_v9, %v740_v8  ;;  %v743_v15 = vld [vmem:[#allocation8 + $0xf8] sm:$0xff]  ;;  %v619_v26 = vld [vmem:[%s3131_s3] sm:$0x3] }
 0x121   : > { %1934 = vmatprep.subr.bf16.mxu0 %v1933_v5  ;;  %v1983_v1 = vpack.c.bf16 %v721_v0, %v720_v63  ;;  %1982 = vmatprep.subr.bf16.mxu1 %v1981_v62  ;;  %v722_v5 = vld [vmem:[#allocation8 + $0x50] sm:$0xff]  ;;  %v1993_v17 = vpack.c.bf16 %v743_v15, %v742_v14  ;;  %v727_v18 = vld [vmem:[#allocation8 + $0x78] sm:$0xff]  ;;  %v829_v20 = vld [vmem:[#allocation10 + $0x8] sm:$0xff] }
 0x122   : > { %v1987_v7 = vpack.c.bf16 %v723_v6, %v722_v5  ;;  %v831_v21 = vld [vmem:[#allocation10 + $0x18] sm:$0xff]  ;;  %v828_v38 = vld [vmem:[#allocation10] sm:$0xff]  ;;  %v830_v39 = vld [vmem:[#allocation10 + $0x10] sm:$0xff] }
 0x123   : > { %1984 = vmatpush3.bf16.msra.mxu1 %v1983_v1  ;;  %v1999_v42 = vpack.c.bf16 %v830_v39, %v828_v38  ;;  %v832_v45 = vld [vmem:[#allocation10 + $0x20] sm:$0xff]  ;;  %v837_v48 = vld [vmem:[#allocation10 + $0x48] sm:$0xff]  ;;  %v839_v49 = vld [vmem:[#allocation10 + $0x58] sm:$0xff] }
 0x124   : > { %1936 = vmatpush1.bf16.msra.mxu0 %v1935_v12  ;;  %1986 = vmatprep.subr.bf16.mxu1 %v1985_v4  ;;  %v725_v12 = vld [vmem:[#allocation8 + $0x68] sm:$0xff]  ;;  %v838_v54 = vld [vmem:[#allocation10 + $0x50] sm:$0xff]  ;;  %v840_v61 = vld [vmem:[#allocation10 + $0x60] sm:$0xff] }
 0x125   : > { %1938 = vmatprep.subr.bf16.mxu0 %v1937_v16  ;;  %v1991_v13 = vpack.c.bf16 %v725_v12, %v724_v11  ;;  %v726_v16 = vld [vmem:[#allocation8 + $0x70] sm:$0xff]  ;;  %v845_v63 = vld [vmem:[#allocation10 + $0x88] sm:$0xff]  ;;  %v847_v0 = vld [vmem:[#allocation10 + $0x98] sm:$0xff] }
 0x126   : > { %v1995_v19 = vpack.c.bf16 %v727_v18, %v726_v16  ;;  %v842_v62 = vld [vmem:[#allocation10 + $0x70] sm:$0xff]  ;;  %v2013_v2 = vpack.c.bf16 %v847_v0, %v845_v63  ;;  %v844_v3 = vld [vmem:[#allocation10 + $0x80] sm:$0xff]  ;;  %v849_v5 = vld [vmem:[#allocation10 + $0xa8] sm:$0xff] }
 0x127   : > { %1988 = vmatpush3.bf16.msra.mxu1 %v1987_v7  ;;  %v2011_v1 = vpack.c.bf16 %v842_v62, %v840_v61  ;;  %v846_v4 = vld [vmem:[#allocation10 + $0x90] sm:$0xff]  ;;  %v851_v6 = vld [vmem:[#allocation10 + $0xb8] sm:$0xff]  ;;  %v848_v9 = vld [vmem:[#allocation10 + $0xa0] sm:$0xff] }
 0x128   : > { %1940 = vmatpush1.bf16.msra.mxu0 %v1939_v22  ;;  %1990 = vmatprep.subr.bf16.mxu1 %v1989_v10  ;;  %v1997_v22 = vpack.c.bf16 %v831_v21, %v829_v20  ;;  %v2015_v7 = vpack.c.bf16 %v846_v4, %v844_v3  ;;  %v2017_v8 = vpack.c.bf16 %v851_v6, %v849_v5  ;;  %v850_v10 = vld [vmem:[#allocation10 + $0xb0] sm:$0xff]  ;;  %v853_v11 = vld [vmem:[#allocation10 + $0xc8] sm:$0xff]  ;;  %v855_v12 = vld [vmem:[#allocation10 + $0xd8] sm:$0xff] }
 0x129   : > { %1942 = vmatprep.subr.bf16.mxu0 %v1941_v23  ;;  %v621_v23 = vlaneseq  ;;  %v2021_v14 = vpack.c.bf16 %v855_v12, %v853_v11  ;;  %v852_v15 = vld [vmem:[#allocation10 + $0xc0] sm:$0xff]  ;;  %v854_v16 = vld [vmem:[#allocation10 + $0xd0] sm:$0xff]  ;;  %v859_v18 = vld [vmem:[#allocation10 + $0xf8] sm:$0xff] }
 0x12a   : > { %v856_v21 = vld [vmem:[#allocation10 + $0xe0] sm:$0xff]  ;;  %v871_v38 = vld [vmem:[#allocation10 + $0x158] sm:$0xff]  ;;  %v882_v61 = vld [vmem:[#allocation10 + $0x1b0] sm:$0xff] }
 0x12b   : > { %1992 = vmatpush3.bf16.msra.mxu1 %v1991_v13  ;;  %v622_v24 = vshrl.u32 %v621_v23, 7  ;;  %v2019_v13 = vpack.c.bf16 %v850_v10, %v848_v9  ;;  %v861_v23 = vld [vmem:[#allocation10 + $0x108] sm:$0xff]  ;;  %v887_v0 = vld [vmem:[#allocation10 + $0x1d8] sm:$0xff]  ;;  %v886_v3 = vld [vmem:[#allocation10 + $0x1d0] sm:$0xff] }
 0x12c   : > { %1944 = vmatpush1.bf16.msra.mxu0 %v1943_v28  ;;  %1994 = vmatprep.subr.bf16.mxu1 %v1993_v17  ;;  %v857_v17 = vld [vmem:[#allocation10 + $0xe8] sm:$0xff]  ;;  %v891_v6 = vld [vmem:[#allocation10 + $0x1f8] sm:$0xff]  ;;  %v890_v9 = vld [vmem:[#allocation10 + $0x1f0] sm:$0xff] }
 0x12d   : > { %1946 = vmatprep.subr.bf16.mxu0 %v1945_v29  ;;  %v2999_v25 = vsub.s32 0, %v622_v24  ;;  %v3004_v27 = vsub.s32 1, %v622_v24  ;;  %v2025_v20 = vpack.c.bf16 %v859_v18, %v857_v17  ;;  %v863_v24 = vld [vmem:[#allocation10 + $0x118] sm:$0xff]  ;;  %v885_v63 = vld [vmem:[#allocation10 + $0x1c8] sm:$0xff]  ;;  %v547_v10 = vld [vmem:[%s2966_s6] sm:$0xff] }
 0x12e   : > { %v889_v5 = vld [vmem:[#allocation10 + $0x1e8] sm:$0xff] }
 0x12f   : > { %1996 = vmatpush3.bf16.msra.mxu1 %v1995_v19  ;;  %v624_v28 = vrot.slane %v619_v26, %v2999_v25  ;;  %v628_v29 = vrot.slane %v619_v26, %v3004_v27  ;;  %v2023_v19 = vpack.c.bf16 %v854_v16, %v852_v15 }
 0x130   : > { %1948 = vmatpush1.bf16.msra.mxu0 %v1947_v34  ;;  %1998 = vmatprep.subr.bf16.mxu1 %v1997_v22  ;;  %v858_v22 = vld [vmem:[#allocation10 + $0xf0] sm:$0xff] }
 0x131   : > { %1950 = vmatprep.subr.bf16.mxu0 %v1949_v35  ;;  %v2027_v26 = vpack.c.bf16 %v858_v22, %v856_v21  ;;  %v550_v21 = vld [vmem:[%s2966_s6 + $0x18] sm:$0xff] }
 0x134   : > { %1952 = vmatpush1.bf16.msra.mxu0 %v1951_v40  ;;  %v833_v40 = vld [vmem:[#allocation10 + $0x28] sm:$0xff] }
 0x135   : > { %1954 = vmatprep.subr.bf16.mxu0 %v1953_v41  ;;  %v835_v41 = vld [vmem:[#allocation10 + $0x38] sm:$0xff] }
 0x136   : > { %v2001_v44 = vpack.c.bf16 %v835_v41, %v833_v40  ;;  %v868_v41 = vld [vmem:[#allocation10 + $0x140] sm:$0xff] }
 0x138   : > { %1956 = vmatpush1.bf16.msra.mxu0 %v1955_v46  ;;  %v834_v46 = vld [vmem:[#allocation10 + $0x30] sm:$0xff] }
 0x139   : > { %1958 = vmatprep.subr.bf16.mxu0 %v1957_v47  ;;  %v2003_v50 = vpack.c.bf16 %v834_v46, %v832_v45 }
 0x13c   : > { %1960 = vmatpush1.bf16.msra.mxu0 %v1959_v52  ;;  %v2005_v52 = vpack.c.bf16 %v839_v49, %v837_v48  ;;  %v874_v48 = vld [vmem:[#allocation10 + $0x170] sm:$0xff] }
 0x13d   : > { %1962 = vmatprep.subr.bf16.mxu0 %v1961_v53  ;;  %v836_v53 = vld [vmem:[#allocation10 + $0x40] sm:$0xff] }
 0x140   : > { %1964 = vmatpush1.bf16.msra.mxu0 %v1963_v56  ;;  %v841_v56 = vld [vmem:[#allocation10 + $0x68] sm:$0xff] }
 0x143   : > { %696 = vmatmul.mubr.f32.vlgmr.msra.gmra.mrb[0].mxu0 %v548_v57  ;;  %v843_v57 = vld [vmem:[#allocation10 + $0x78] sm:$0xff] }
 0x144   : > { %701 = vmatprep.mubr.f32.mxu0 %v2995_v58  ;;  %v2009_v60 = vpack.c.bf16 %v843_v57, %v841_v56  ;;  %v881_v56 = vld [vmem:[#allocation10 + $0x1a8] sm:$0xff]  ;;  %v883_v57 = vld [vmem:[#allocation10 + $0x1b8] sm:$0xff] }
 0x147   : > { %702 = vmatmul.mubr.f32.gmra.mrb[2].mxu0 %v551_v59  ;;  %v2007_v59 = vpack.c.bf16 %v838_v54, %v836_v53  ;;  %v876_v53 = vld [vmem:[#allocation10 + $0x180] sm:$0xff]  ;;  %v878_v54 = vld [vmem:[#allocation10 + $0x190] sm:$0xff] }
 0x216   : > { %v697_v30 = vpop.f32.mrb[0].mxu0 }
 0x217   : > { %v698_v31 = vadd.f32 %v697_v30, %v624_v28  ;;  %v699_v32 = vpop.f32.mrb[1].mxu0  ;;  %v862_v30 = vld [vmem:[#allocation10 + $0x110] sm:$0xff] }
 0x218   : > { %v700_v33 = vadd.f32 %v699_v32, %v628_v29  ;;  %v867_v32 = vld [vmem:[#allocation10 + $0x138] sm:$0xff] }
 0x21a   : > { %2283 = vtanh.f32 %v700_v33  ;;  %v703_v34 = vpop.f32.mrb[2].mxu0 }
 0x21b   : > { %2285 = vtanh.f32 %v698_v31  ;;  %v704_v35 = vadd.f32 %v703_v34, %v624_v28  ;;  %v705_v36 = vpop.f32.mrb[3].mxu0  ;;  %v2029_v28 = vpack.c.bf16 %v863_v24, %v861_v23  ;;  %v865_v31 = vld [vmem:[#allocation10 + $0x128] sm:$0xff]  ;;  %v3014_v24 = vld [vmem:[%s2974_s30] sm:$0xff] }
 0x21c   : > { %v706_v37 = vadd.f32 %v705_v36, %v628_v29  ;;  %v860_v29 = vld [vmem:[#allocation10 + $0x100] sm:$0xff]  ;;  %v2033_v34 = vpack.c.bf16 %v867_v32, %v865_v31  ;;  %v866_v36 = vld [vmem:[#allocation10 + $0x130] sm:$0xff]  ;;  %1849 = vmatprep.mubr.msk.f32.mxu0 %vm981_vm0, %v3014_v24 }
 0x21d   : > { %v2031_v33 = vpack.c.bf16 %v862_v30, %v860_v29 }
 0x21e   : > { %2287 = vtanh.f32 %v706_v37  ;;  %v869_v37 = vld [vmem:[#allocation10 + $0x148] sm:$0xff] }
 0x21f   : > { %2289 = vtanh.f32 %v704_v35  ;;  %v864_v35 = vld [vmem:[#allocation10 + $0x120] sm:$0xff]  ;;  %v2037_v40 = vpack.c.bf16 %v871_v38, %v869_v37 }
 0x220   : > { %v2035_v39 = vpack.c.bf16 %v866_v36, %v864_v35 }
 0x224   : > { %v2284_v43 = vpop.eup %2283 }
 0x225   : > { %v2286_v47 = vpop.eup %2285  ;;  %815 = vmatprep.mubr.f32.mxu1 %v2284_v43  ;;  %v873_v43 = vld [vmem:[#allocation10 + $0x168] sm:$0xff] }
 0x226   : > { %816 = vmatmul.mubr.f32.vlgmr.msra.gmra.mrb[0].mxu1 %v2286_v47  ;;  %v872_v47 = vld [vmem:[#allocation10 + $0x160] sm:$0xff] }
 0x227   : > { %2000 = vmatpush1.bf16.msra.mxu1 %v1999_v42  ;;  %v870_v42 = vld [vmem:[#allocation10 + $0x150] sm:$0xff]  ;;  %v2043_v49 = vpack.c.bf16 %v874_v48, %v872_v47  ;;  %v1076_v48 = vld [vmem:[#allocation11 + $0x48] sm:$0xff] }
 0x228   : > { %v2288_v51 = vpop.eup %2287  ;;  %2002 = vmatprep.subr.bf16.mxu1 %v2001_v44  ;;  %v875_v44 = vld [vmem:[#allocation10 + $0x178] sm:$0xff]  ;;  %v2039_v45 = vpack.c.bf16 %v870_v42, %v868_v41  ;;  %v1072_v41 = vld [vmem:[#allocation11 + $0x28] sm:$0xff]  ;;  %v1073_v47 = vld [vmem:[#allocation11 + $0x30] sm:$0xff] }
 0x229   : > { %v2290_v55 = vpop.eup %2289  ;;  %820 = vmatprep.mubr.f32.mxu1 %v2288_v51  ;;  %v2041_v46 = vpack.c.bf16 %v875_v44, %v873_v43  ;;  %v879_v51 = vld [vmem:[#allocation10 + $0x198] sm:$0xff] }
 0x22a   : > { %821 = vmatmul.mubr.f32.gmra.mrb[2].mxu1 %v2290_v55  ;;  %v2047_v55 = vpack.c.bf16 %v878_v54, %v876_v53  ;;  %v1074_v42 = vld [vmem:[#allocation11 + $0x38] sm:$0xff]  ;;  %v1077_v53 = vld [vmem:[#allocation11 + $0x50] sm:$0xff]  ;;  %v1080_v54 = vld [vmem:[#allocation11 + $0x68] sm:$0xff] }
 0x22b   : > { %2004 = vmatpush1.bf16.msra.mxu1 %v2003_v50  ;;  %v877_v50 = vld [vmem:[#allocation10 + $0x188] sm:$0xff]  ;;  %968 = vmatprep.mubr.f32.mxu1 %v547_v10 }
 0x22c   : > { %2006 = vmatprep.subr.bf16.mxu1 %v2005_v52  ;;  %v2045_v52 = vpack.c.bf16 %v879_v51, %v877_v50  ;;  %v3032_v43 = vld [vmem:[%s2974_s30 + $0x8] sm:$0xff]  ;;  %s1594_s30 = sshll.u32 %s544_s13, 4  ;;  %s3083_s30 = int_to_ptr.vmem [resolvable:$true] %s1594_s30 }
 0x22d   : > { %v1092_v10 = vld [vmem:[#allocation11 + $0xc8] sm:$0xff]  ;;  %s2512_s19 = scalar_lea.vmem %s3083_s30, 512 }
 0x22e   : > { %p2513_p2 = scmp.ne.s32.totalorder %s3083_s30, %s2512_s19 }
 0x22f   : > { %2008 = vmatpush1.bf16.msra.mxu1 %v2007_v59  ;;  %v2049_v59 = vpack.c.bf16 %v883_v57, %v881_v56 }
 0x230   : > { %2010 = vmatprep.subr.bf16.mxu1 %v2009_v60  ;;  %v880_v60 = vld [vmem:[#allocation10 + $0x1a0] sm:$0xff]  ;;  %p2514_p6 = pnand %p2513_p2, %p3193_p13 }
 0x231   : > { %v2051_v62 = vpack.c.bf16 %v882_v61, %v880_v60  ;;  %v1081_v60 = vld [vmem:[#allocation11 + $0x70] sm:$0xff]  ;;  %v1084_v61 = vld [vmem:[#allocation11 + $0x88] sm:$0xff] }
 0x232   : > { %p2515_p9 = pneg %p2514_p6 }
 0x233   : > { %2012 = vmatpush1.bf16.msra.mxu1 %v2011_v1  ;;  %v2053_v1 = vpack.c.bf16 %v887_v0, %v885_v63 }
 0x234   : > { %2014 = vmatprep.subr.bf16.mxu1 %v2013_v2  ;;  %v884_v2 = vld [vmem:[#allocation10 + $0x1c0] sm:$0xff] }
 0x235   : > { %v2055_v4 = vpack.c.bf16 %v886_v3, %v884_v2  ;;  %v1085_v2 = vld [vmem:[#allocation11 + $0x90] sm:$0xff] }
 0x237   : > { %2016 = vmatpush1.bf16.msra.mxu1 %v2015_v7  ;;  %v888_v7 = vld [vmem:[#allocation10 + $0x1e0] sm:$0xff] }
 0x238   : > { %2018 = vmatprep.subr.bf16.mxu1 %v2017_v8  ;;  %v2057_v8 = vpack.c.bf16 %v891_v6, %v889_v5  ;;  %v2059_v11 = vpack.c.bf16 %v890_v9, %v888_v7  ;;  %v1090_v5 = vld [vmem:[#allocation11 + $0xb8] sm:$0xff]  ;;  %v1087_v7 = vld [vmem:[#allocation11 + $0xa0] sm:$0xff] }
 0x23b   : > { %2020 = vmatpush1.bf16.msra.mxu1 %v2019_v13  ;;  %v1759_v13 = vld [vmem:[%s3133_s5] ss:$0 sm:$0xff] }
 0x23c   : > { %2022 = vmatprep.subr.bf16.mxu1 %v2021_v14 }
 0x23f   : > { %2024 = vmatpush1.bf16.msra.mxu1 %v2023_v19 }
 0x240   : > { %2026 = vmatprep.subr.bf16.mxu1 %v2025_v20 }
 0x243   : > { %2028 = vmatpush1.bf16.msra.mxu1 %v2027_v26  ;;  %v3023_v26 = vld [vmem:[%s3189_s0] sm:$0x3]  ;;  %s2516_s0 = sshll.u32 %s2610_s15, 4  ;;  %s2517_s0 = int_to_ptr.vmem [resolvable:$false] %s2516_s0 }
 0x244   : > { %2030 = vmatprep.subr.bf16.mxu1 %v2029_v28  ;;  %v901_v30 = vrot.slane %v3023_v26, %v3004_v27  ;;  %s2518_s2 = scalar_lea.vmem %s2517_s0, 1024  ;;  %p2519_p0 = scmp.lt.s32.totalorder %s3083_s30, %s2517_s0 }
 0x245   : > { %p2520_p5 = scmp.lt.s32.totalorder %s2518_s2, %s2512_s19 }
 0x247   : > { %2032 = vmatpush1.bf16.msra.mxu1 %v2031_v33  ;;  %v1068_v33 = vld [vmem:[#allocation11 + $0x8] sm:$0xff]  ;;  %p2521_p7 = por %p2520_p5, %p2519_p0 }
 0x248   : > { %2034 = vmatprep.subr.bf16.mxu1 %v2033_v34  ;;  %v1070_v34 = vld [vmem:[#allocation11 + $0x18] sm:$0xff] }
 0x249   : > { %v2065_v38 = vpack.c.bf16 %v1070_v34, %v1068_v33  ;;  %p2522_p8 = pnand %p2521_p7, %p2515_p9 }
 0x24b   : > { %2036 = vmatpush1.bf16.msra.mxu1 %v2035_v39  ;;  %v1067_v39 = vld [vmem:[#allocation11] sm:$0xff] }
 0x24c   : > { %2038 = vmatprep.subr.bf16.mxu1 %v2037_v40  ;;  %v1069_v40 = vld [vmem:[#allocation11 + $0x10] sm:$0xff] }
 0x24d   : > { %v2067_v44 = vpack.c.bf16 %v1069_v40, %v1067_v39  ;;  %v1272_v39 = vld [vmem:[#allocation11 + $0x110] sm:$0xff]  ;;  %v1275_v40 = vld [vmem:[#allocation11 + $0x128] sm:$0xff] }
 0x24f   : > { %2040 = vmatpush1.bf16.msra.mxu1 %v2039_v45  ;;  %v2069_v45 = vpack.c.bf16 %v1074_v42, %v1072_v41  ;;  %v1277_v41 = vld [vmem:[#allocation11 + $0x138] sm:$0xff] }
 0x250   : > { %2042 = vmatprep.subr.bf16.mxu1 %v2041_v46  ;;  %v1071_v46 = vld [vmem:[#allocation11 + $0x20] sm:$0xff] }
 0x251   : > { %v2071_v50 = vpack.c.bf16 %v1073_v47, %v1071_v46  ;;  %v1276_v46 = vld [vmem:[#allocation11 + $0x130] sm:$0xff]  ;;  %v1279_v47 = vld [vmem:[#allocation11 + $0x148] sm:$0xff] }
 0x253   : > { %2044 = vmatpush1.bf16.msra.mxu1 %v2043_v49  ;;  %v1078_v49 = vld [vmem:[#allocation11 + $0x58] sm:$0xff] }
 0x254   : > { %2046 = vmatprep.subr.bf16.mxu1 %v2045_v52  ;;  %v2073_v51 = vpack.c.bf16 %v1078_v49, %v1076_v48  ;;  %v1075_v52 = vld [vmem:[#allocation11 + $0x40] sm:$0xff]  ;;  %v1281_v48 = vld [vmem:[#allocation11 + $0x158] sm:$0xff] }
 0x255   : > { %v2075_v56 = vpack.c.bf16 %v1077_v53, %v1075_v52  ;;  %v1280_v52 = vld [vmem:[#allocation11 + $0x150] sm:$0xff]  ;;  %v1283_v53 = vld [vmem:[#allocation11 + $0x168] sm:$0xff] }
 0x257   : > { %2048 = vmatpush1.bf16.msra.mxu1 %v2047_v55  ;;  %v1082_v55 = vld [vmem:[#allocation11 + $0x78] sm:$0xff] }
 0x258   : > { %2050 = vmatprep.subr.bf16.mxu1 %v2049_v59  ;;  %v2077_v57 = vpack.c.bf16 %v1082_v55, %v1080_v54  ;;  %v1079_v59 = vld [vmem:[#allocation11 + $0x60] sm:$0xff]  ;;  %v1285_v54 = vld [vmem:[#allocation11 + $0x178] sm:$0xff] }
 0x259   : > { %v2079_v63 = vpack.c.bf16 %v1081_v60, %v1079_v59  ;;  %v1284_v59 = vld [vmem:[#allocation11 + $0x170] sm:$0xff] }
 0x25b   : > { %2052 = vmatpush1.bf16.msra.mxu1 %v2051_v62  ;;  %v1086_v62 = vld [vmem:[#allocation11 + $0x98] sm:$0xff] }
 0x25c   : > { %2054 = vmatprep.subr.bf16.mxu1 %v2053_v1  ;;  %v2081_v0 = vpack.c.bf16 %v1086_v62, %v1084_v61  ;;  %v1083_v1 = vld [vmem:[#allocation11 + $0x80] sm:$0xff] }
 0x25d   : > { %v2083_v3 = vpack.c.bf16 %v1085_v2, %v1083_v1  ;;  %v1099_v61 = vld [vmem:[%s3190_s4] sm:$0x3] }
 0x25f   : > { %2056 = vmatpush1.bf16.msra.mxu1 %v2055_v4  ;;  %v1088_v4 = vld [vmem:[#allocation11 + $0xa8] sm:$0xff] }
 0x260   : > { %2058 = vmatprep.subr.bf16.mxu1 %v2057_v8  ;;  %v2085_v6 = vpack.c.bf16 %v1090_v5, %v1088_v4  ;;  %v1089_v8 = vld [vmem:[#allocation11 + $0xb0] sm:$0xff] }
 0x261   : > { %v2087_v9 = vpack.c.bf16 %v1089_v8, %v1087_v7  ;;  %v1289_v7 = vld [vmem:[#allocation11 + $0x198] sm:$0xff] }
 0x263   : > { %2060 = vmatpush1.bf16.msra.mxu1 %v2059_v11  ;;  %v1094_v11 = vld [vmem:[#allocation11 + $0xd8] sm:$0xff] }
 0x2f9   : > { %v1809_v12 = vpop.f32.mrb[0].mxu1 }
 0x2fa   : > { %v1810_v14 = vpop.f32.mrb[1].mxu1 }
 0x2fb   : > { %v1811_v15 = vadd.f32 %v1810_v14, %v1809_v12  ;;  %v1091_v12 = vld [vmem:[#allocation11 + $0xc0] sm:$0xff]  ;;  %v1093_v14 = vld [vmem:[#allocation11 + $0xd0] sm:$0xff] }
 0x2fd   : > { %v818_v16 = vadd.f32 %v1811_v15, %v1759_v13  ;;  %v1812_v17 = vpop.f32.mrb[2].mxu1  ;;  %v1096_v15 = vld [vmem:[#allocation11 + $0xe8] sm:$0xff] }
 0x2fe   : > { %v1813_v18 = vpop.f32.mrb[3].mxu1 }
 0x2ff   : > { %2291 = vtanh.f32 %v818_v16  ;;  %v1814_v19 = vadd.f32 %v1813_v18, %v1812_v17  ;;  %v1098_v16 = vld [vmem:[#allocation11 + $0xf8] sm:$0xff]  ;;  %v2609_v17 = vmov 0.0   ;;  %v2091_v18 = vpack.c.bf16 %v1093_v14, %v1091_v12  ;;  %v1291_v12 = vld [vmem:[#allocation11 + $0x1a8] sm:$0xff] }
 0x301   : > { %v823_v20 = vadd.f32 %v1814_v19, %v1759_v13  ;;  %v2089_v13 = vpack.c.bf16 %v1094_v11, %v1092_v10  ;;  %v2093_v19 = vpack.c.bf16 %v1098_v16, %v1096_v15  ;;  %v1288_v10 = vld [vmem:[#allocation11 + $0x190] sm:$0xff]  ;;  %v1290_v15 = vld [vmem:[#allocation11 + $0x1a0] sm:$0xff] }
 0x302   : > { %v1292_v16 = vld [vmem:[#allocation11 + $0x1b0] sm:$0xff] }
 0x303   : > { %2293 = vtanh.f32 %v823_v20  ;;  %v1095_v20 = vld [vmem:[#allocation11 + $0xe0] sm:$0xff] }
 0x309   : > { %v2292_v22 = vpop.eup %2291 }
 0x30a   : > { %969 = vmatmul.mubr.f32.vlgmr.msra.gmra.mrb[4].mxu1 %v2292_v22 }
 0x30b   : > { %974 = vmatprep.mubr.f32.mxu1 %v550_v21  ;;  %v1097_v21 = vld [vmem:[#allocation11 + $0xf0] sm:$0xff] }
 0x30c   : > { %v2095_v22 = vpack.c.bf16 %v1097_v21, %v1095_v20  ;;  %v1297_v20 = vld [vmem:[#allocation11 + $0x1d8] sm:$0xff]  ;;  %v1294_v21 = vld [vmem:[#allocation11 + $0x1c0] sm:$0xff] }
 0x30d   : > { %v2294_v23 = vpop.eup %2293 }
 0x30e   : > { %975 = vmatmul.mubr.f32.gmra.mrb[6].mxu1 %v2294_v23  ;;  %v897_v23 = vrot.slane %v3023_v26, %v2999_v25  ;;  %v1271_v26 = vld [vmem:[#allocation11 + $0x108] sm:$0xff] }
 0x30f   : > { %1856 = vmatprep.mubr.msk.f32.mxu1 %vm981_vm0, %v3014_v24 }
 0x3dd   : > { %v3025_v28 = vpop.f32.mrb[4].mxu1 }
 0x3de   : > { %v972_v29 = vpop.f32.mrb[5].mxu1 }
 0x3df   : > { %v973_v35 = vadd.f32 %v972_v29, %v901_v30 }
 0x3e1   : > { %v3029_v31 = vpop.f32.mrb[6].mxu1 }
 0x3e2   : > { %v978_v32 = vpop.f32.mrb[7].mxu1  ;;  %v977_v29 = vadd.f32 %v3029_v31, %v897_v23  ;;  %v1270_v31 = vld [vmem:[#allocation11 + $0x100] sm:$0xff] }
 0x3e3   : > { %v979_v36 = vadd.f32 %v978_v32, %v901_v30  ;;  %v971_v30 = vadd.f32 %v3025_v28, %v897_v23  ;;  %v1273_v28 = vld [vmem:[#allocation11 + $0x118] sm:$0xff]  ;;  %v2103_v42 = vpack.c.bf16 %v1272_v39, %v1270_v31  ;;  %v1299_v23 = vld [vmem:[#allocation11 + $0x1e8] sm:$0xff] }
 0x3e5   : > { %v2061_v37 = vpack.c.bf16 %v979_v36, %v973_v35 }
 0x3e7   : > { %2062 = vmatprep.subr.bf16.mxu0 %v2061_v37 }
 0x3e8   : > { %2064 = vmatpush3.bf16.msra.mxu0 %v2061_v37 }
 0x3e9   : > { %2066 = vmatprep.subr.bf16.mxu0 %v2065_v38  ;;  %v2101_v38 = vpack.c.bf16 %v1273_v28, %v1271_v26  ;;  %v1104_v26 = vrot.slane %v1099_v61, %v2999_v25 }
 0x3eb   : > { %1850 = vmatmul.mubr.msk.f32.vlgmr.msra.gmra.mrb[4].mxu0 %vm981_vm0, %v3032_v43 }
 0x3ec   : > { %2068 = vmatpush1.bf16.msra.mxu0 %v2067_v44  ;;  %1175 = vmatprep.mubr.f32.mxu0 %v2609_v17  ;;  %v2105_v44 = vpack.c.bf16 %v1277_v41, %v1275_v40 }
 0x3ed   : > { %2070 = vmatprep.subr.bf16.mxu0 %v2069_v45  ;;  %v1274_v45 = vld [vmem:[#allocation11 + $0x120] sm:$0xff] }
 0x3ee   : > { %v2107_v49 = vpack.c.bf16 %v1276_v46, %v1274_v45 }
 0x3f0   : > { %2072 = vmatpush1.bf16.msra.mxu0 %v2071_v50  ;;  %v2109_v50 = vpack.c.bf16 %v1281_v48, %v1279_v47  ;;  %v1764_v47 = vld [vmem:[%s3190_s4 + $0x2] sm:$0x3] }
 0x3f1   : > { %2074 = vmatprep.subr.bf16.mxu0 %v2073_v51  ;;  %v1278_v51 = vld [vmem:[#allocation11 + $0x140] sm:$0xff] }
 0x3f2   : > { %v2111_v55 = vpack.c.bf16 %v1280_v52, %v1278_v51  ;;  %v1473_v51 = vld [vmem:[#allocation13] sm:$0xff]  ;;  %v1474_v52 = vld [vmem:[#allocation13 + $0x8] sm:$0xff] }
 0x3f4   : > { %2076 = vmatpush1.bf16.msra.mxu0 %v2075_v56  ;;  %v2113_v56 = vpack.c.bf16 %v1285_v54, %v1283_v53 }
 0x3f5   : > { %2078 = vmatprep.subr.bf16.mxu0 %v2077_v57  ;;  %v1282_v57 = vld [vmem:[#allocation11 + $0x160] sm:$0xff] }
 0x3f6   : > { %v2115_v60 = vpack.c.bf16 %v1284_v59, %v1282_v57  ;;  %v1475_v57 = vld [vmem:[#allocation13 + $0x10] sm:$0xff] }
 0x3f8   : > { %2080 = vmatpush1.bf16.msra.mxu0 %v2079_v63 }
 0x3f9   : > { %2082 = vmatprep.subr.bf16.mxu0 %v2081_v0  ;;  %v1108_v0 = vrot.slane %v1099_v61, %v3004_v27  ;;  %v1478_v61 = vld [vmem:[#allocation13 + $0x28] sm:$0xff] }
 0x3fc   : > { %2084 = vmatpush1.bf16.msra.mxu0 %v2083_v3 }
 0x3fd   : > { %2086 = vmatprep.subr.bf16.mxu0 %v2085_v6  ;;  %v1287_v6 = vld [vmem:[#allocation11 + $0x188] sm:$0xff] }
 0x3fe   : > { %v2117_v8 = vpack.c.bf16 %v1289_v7, %v1287_v6  ;;  %v1486_v7 = vld [vmem:[#allocation13 + $0x68] sm:$0xff] }
 0x400   : > { %2088 = vmatpush1.bf16.msra.mxu0 %v2087_v9  ;;  %v1286_v9 = vld [vmem:[#allocation11 + $0x180] sm:$0xff] }
 0x401   : > { %2090 = vmatprep.subr.bf16.mxu0 %v2089_v13  ;;  %v2119_v11 = vpack.c.bf16 %v1288_v10, %v1286_v9  ;;  %v1293_v13 = vld [vmem:[#allocation11 + $0x1b8] sm:$0xff] }
 0x402   : > { %v2121_v14 = vpack.c.bf16 %v1293_v13, %v1291_v12  ;;  %v1488_v10 = vld [vmem:[#allocation13 + $0x78] sm:$0xff]  ;;  %v1308_v12 = vrot.slane %v1764_v47, %v2999_v25  ;;  %v1767_v25 = vld [vmem:[%s3191_s28] ss:$0 sm:$0xff] }
 0x404   : > { %2092 = vmatpush1.bf16.msra.mxu0 %v2091_v18  ;;  %v2123_v18 = vpack.c.bf16 %v1292_v16, %v1290_v15 }
 0x405   : > { %2094 = vmatprep.subr.bf16.mxu0 %v2093_v19  ;;  %v1295_v19 = vld [vmem:[#allocation11 + $0x1c8] sm:$0xff] }
 0x408   : > { %2096 = vmatpush1.bf16.msra.mxu0 %v2095_v22  ;;  %v1296_v22 = vld [vmem:[#allocation11 + $0x1d0] sm:$0xff] }
 0x409   : > { %2102 = vmatprep.subr.bf16.mxu0 %v2101_v38 }
 0x4be   : > { %v1851_v32 = vpop.f32.mrb[4].mxu0 }
 0x4bf   : > { %v1064_v33 = vadd.f32 %v1851_v32, %v977_v29  ;;  %v1054_v34 = vpop.f32.mrb[5].mxu0  ;;  %v1301_v29 = vld [vmem:[#allocation11 + $0x1f8] sm:$0xff] }
 0x4c0   : > { %v1063_v35 = vadd.f32 %v1054_v34, %v971_v30  ;;  %v2127_v30 = vpack.c.bf16 %v1296_v22, %v1294_v21  ;;  %v2129_v32 = vpack.c.bf16 %v1301_v29, %v1299_v23  ;;  %v1300_v34 = vld [vmem:[#allocation11 + $0x1f0] sm:$0xff] }
 0x4c2   : > { %2295 = vtanh.f32 %v1063_v35 }
 0x4c3   : > { %2297 = vtanh.f32 %v1064_v33  ;;  %v1298_v33 = vld [vmem:[#allocation11 + $0x1e0] sm:$0xff] }
 0x4c4   : > { %v2131_v35 = vpack.c.bf16 %v1300_v34, %v1298_v33 }
 0x4cc   : > { %v3041_v36 = vpop.eup %2295 }
 0x4cd   : > { %1176 = vmatmul.mubr.f32.vlgmr.msra.gmra.mrb[6].mxu0 %v3041_v36  ;;  %v3045_v37 = vpop.eup %2297 }
 0x4ce   : > { %1181 = vmatprep.mubr.f32.mxu0 %v2609_v17  ;;  %2104 = vmatpush1.bf16.msra.mxu0 %v2103_v42 }
 0x4cf   : > { %2106 = vmatprep.subr.bf16.mxu0 %v2105_v44 }
 0x4d1   : > { %1182 = vmatmul.mubr.f32.gmra.mrb[8].mxu0 %v3045_v37 }
 0x4d2   : > { %1379 = vmatprep.mubr.f32.mxu0 %v2609_v17  ;;  %2108 = vmatpush1.bf16.msra.mxu0 %v2107_v49 }
 0x4d3   : > { %2110 = vmatprep.subr.bf16.mxu0 %v2109_v50 }
 0x4d6   : > { %2112 = vmatpush1.bf16.msra.mxu0 %v2111_v55 }
 0x4d7   : > { %2114 = vmatprep.subr.bf16.mxu0 %v2113_v56  ;;  %v2137_v56 = vpack.c.bf16 %v1474_v52, %v1473_v51 }
 0x4da   : > { %2116 = vmatpush1.bf16.msra.mxu0 %v2115_v60  ;;  %v1477_v60 = vld [vmem:[#allocation13 + $0x20] sm:$0xff] }
 0x4db   : > { %2118 = vmatprep.subr.bf16.mxu0 %v2117_v8  ;;  %v1487_v8 = vld [vmem:[#allocation13 + $0x70] sm:$0xff] }
 0x4de   : > { %2120 = vmatpush1.bf16.msra.mxu0 %v2119_v11  ;;  %v2165_v11 = vpack.c.bf16 %v1488_v10, %v1487_v8 }
 0x4df   : > { %2122 = vmatprep.subr.bf16.mxu0 %v2121_v14 }
 0x4e2   : > { %2124 = vmatpush1.bf16.msra.mxu0 %v2123_v18 }
 0x5a0   : > { %v1177_v62 = vpop.f32.mrb[6].mxu0 }
 0x5a1   : > { %v1179_v63 = vpop.f32.mrb[7].mxu0  ;;  %v1178_v31 = vadd.f32 %v1177_v62, %v1104_v26  ;;  %v1479_v62 = vld [vmem:[#allocation13 + $0x30] sm:$0xff] }
 0x5a2   : > { %v1180_v3 = vadd.f32 %v1179_v63, %v1108_v0  ;;  %v1480_v63 = vld [vmem:[#allocation13 + $0x38] sm:$0xff] }
 0x5a4   : > { %v1183_v1 = vpop.f32.mrb[8].mxu0 }
 0x5a5   : > { %v1185_v2 = vpop.f32.mrb[9].mxu0  ;;  %v1184_v28 = vadd.f32 %v1183_v1, %v1104_v26  ;;  %v1481_v1 = vld [vmem:[#allocation13 + $0x40] sm:$0xff] }
 0x5a6   : > { %v1186_v4 = vadd.f32 %v1185_v2, %v1108_v0  ;;  %v2149_v0 = vpack.c.bf16 %v1480_v63, %v1479_v62  ;;  %v1482_v2 = vld [vmem:[#allocation13 + $0x48] sm:$0xff]  ;;  %v2311_v26 = vld [vmem:[%s2966_s6 + $0x10] sm:$0xff] }
 0x5a8   : > { %v2097_v5 = vpack.c.bf16 %v1186_v4, %v1180_v3  ;;  %v2153_v3 = vpack.c.bf16 %v1482_v2, %v1481_v1  ;;  %v1483_v4 = vld [vmem:[#allocation13 + $0x50] sm:$0xff] }
 0x5aa   : > { %2098 = vmatprep.subr.bf16.mxu1 %v2097_v5 }
 0x5ab   : > { %2100 = vmatpush3.bf16.msra.mxu1 %v2097_v5  ;;  %v1484_v5 = vld [vmem:[#allocation13 + $0x58] sm:$0xff] }
 0x5ac   : > { %v2157_v6 = vpack.c.bf16 %v1484_v5, %v1483_v4 }
 0x5ae   : > { %1857 = vmatmul.mubr.msk.f32.vlgmr.msra.gmra.mrb[8].mxu1 %vm981_vm0, %v3032_v43 }
 0x5af   : > { %1863 = vmatprep.mubr.msk.f32.mxu1 %vm981_vm0, %v3014_v24  ;;  %v2125_v24 = vpack.c.bf16 %v1297_v20, %v1295_v19 }
 0x5b1   : > { %2126 = vmatprep.subr.bf16.mxu0 %v2125_v24 }
 0x5b2   : > { %2128 = vmatpush1.bf16.msra.mxu0 %v2127_v30 }
 0x5b3   : > { %2130 = vmatprep.subr.bf16.mxu0 %v2129_v32 }
 0x5b6   : > { %2132 = vmatpush1.bf16.msra.mxu0 %v2131_v35 }
 0x681   : > { %v1858_v38 = vpop.f32.mrb[8].mxu1 }
 0x682   : > { %v1264_v39 = vadd.f32 %v1858_v38, %v1184_v28  ;;  %v1254_v40 = vpop.f32.mrb[9].mxu1 }
 0x683   : > { %v1263_v41 = vadd.f32 %v1254_v40, %v1178_v31 }
 0x684   : > { %v1266_v44 = vadd.f32 %v3045_v37, %v1264_v39 }
 0x685   : > { %v1265_v42 = vadd.f32 %v3041_v36, %v1263_v41  ;;  %v1312_v36 = vrot.slane %v1764_v47, %v3004_v27  ;;  %v2145_v27 = vpack.c.bf16 %v1478_v61, %v1477_v60 }
 0x687   : > { %2299 = vtanh.f32 %v1265_v42 }
 0x688   : > { %2301 = vtanh.f32 %v1266_v44 }
 0x691   : > { %v3060_v45 = vpop.eup %2299 }
 0x692   : > { %1380 = vmatmul.mubr.f32.vlgmr.msra.gmra.mrb[10].mxu0 %v3060_v45  ;;  %v2302_v46 = vpop.eup %2301 }
 0x693   : > { %1385 = vmatprep.mubr.f32.mxu0 %v2609_v17  ;;  %v1476_v17 = vld [vmem:[#allocation13 + $0x18] sm:$0xff] }
 0x694   : > { %v2141_v59 = vpack.c.bf16 %v1476_v17, %v1475_v57 }
 0x696   : > { %1386 = vmatmul.mubr.f32.gmra.mrb[12].mxu0 %v2302_v46 }
 0x765   : > { %v1381_v48 = vpop.f32.mrb[10].mxu0 }
 0x766   : > { %v1383_v49 = vpop.f32.mrb[11].mxu0  ;;  %v1382_v14 = vadd.f32 %v1381_v48, %v1308_v12 }
 0x767   : > { %v1384_v53 = vadd.f32 %v1383_v49, %v1312_v36 }
 0x769   : > { %v1387_v50 = vpop.f32.mrb[12].mxu0 }
 0x76a   : > { %v1389_v37 = vpop.f32.mrb[13].mxu0  ;;  %v1388_v13 = vadd.f32 %v1387_v50, %v1308_v12 }
 0x76b   : > { %v1390_v54 = vadd.f32 %v1389_v37, %v1312_v36 }
 0x76d   : > { %v2133_v55 = vpack.c.bf16 %v1390_v54, %v1384_v53 }
 0x76f   : > { %2134 = vmatprep.subr.bf16.mxu1 %v2133_v55 }
 0x770   : > { %2136 = vmatpush3.bf16.msra.mxu1 %v2133_v55 }
 0x771   : > { %2138 = vmatprep.subr.bf16.mxu1 %v2137_v56 }
 0x773   : > { %1864 = vmatmul.mubr.msk.f32.vlgmr.msra.gmra.mrb[10].mxu1 %vm981_vm0, %v3032_v43  ;;  %v1485_v43 = vld [vmem:[#allocation13 + $0x60] sm:$0xff] }
 0x774   : > { %2140 = vmatpush3.bf16.msra.mxu1 %v2137_v56  ;;  %v2161_v9 = vpack.c.bf16 %v1486_v7, %v1485_v43 }
 0x775   : > { %2142 = vmatprep.subr.bf16.mxu1 %v2141_v59 }
 0x778   : > { %2144 = vmatpush3.bf16.msra.mxu1 %v2141_v59 }
 0x779   : > { %2146 = vmatprep.subr.bf16.mxu1 %v2145_v27 }
 0x77c   : > { %2148 = vmatpush3.bf16.msra.mxu1 %v2145_v27 }
 0x77d   : > { %2150 = vmatprep.subr.bf16.mxu1 %v2149_v0 }
 0x780   : > { %2152 = vmatpush3.bf16.msra.mxu1 %v2149_v0 }
 0x781   : > { %2154 = vmatprep.subr.bf16.mxu1 %v2153_v3 }
 0x784   : > { %2156 = vmatpush3.bf16.msra.mxu1 %v2153_v3 }
 0x785   : > { %2158 = vmatprep.subr.bf16.mxu1 %v2157_v6 }
 0x788   : > { %2160 = vmatpush3.bf16.msra.mxu1 %v2157_v6 }
 0x789   : > { %2162 = vmatprep.subr.bf16.mxu1 %v2161_v9 }
 0x78c   : > { %2164 = vmatpush3.bf16.msra.mxu1 %v2161_v9 }
 0x78d   : > { %2166 = vmatprep.subr.bf16.mxu1 %v2165_v11 }
 0x790   : > { %2168 = vmatpush3.bf16.msra.mxu1 %v2165_v11 }
 0x846   : > { %v1865_v15 = vpop.f32.mrb[10].mxu1 }
 0x847   : > { %v1468_v16 = vadd.f32 %v1865_v15, %v1388_v13  ;;  %v1458_v18 = vpop.f32.mrb[11].mxu1 }
 0x848   : > { %v1467_v19 = vadd.f32 %v1458_v18, %v1382_v14 }
 0x849   : > { %v1470_v20 = vadd.f32 %v2302_v46, %v1468_v16 }
 0x84a   : > { %v1469_v21 = vadd.f32 %v3060_v45, %v1467_v19 }
 0x84b   : > { %2303 = vtanh.f32 %v1470_v20 }
 0x84c   : > { %2305 = vtanh.f32 %v1469_v21 }
 0x855   : > { %v2304_v24 = vpop.eup %2303 }
 0x856   : > { %v2306_v22 = vpop.eup %2305  ;;  %1577 = vst [vmem:[%s544_s13 + $0x10] sm:$0xff] %v2304_v24 }
 0x857   : > { %1898 = vmatprep.mubr.f32.mxu1 %v2306_v22  ;;  %1575 = vst [vmem:[%s544_s13] sm:$0xff] %v2306_v22 }
 0x858   : > { %1899 = vmatmul.mubr.f32.vlgmr.msra.gmra.mrb[12].mxu1 %v2304_v24 }
 0x92b   : > { %v1900_v23 = vpop.f32.mrb[12].mxu1 }
 0x92c   : > { %v1568_v29 = vadd.f32 %v1900_v23, %v1767_v25  ;;  %v1562_v30 = vpop.f32.mrb[13].mxu1 }
 0x92d   : > { %v1563_v32 = vadd.f32 %v1767_v25, %v1562_v30 }
 0x92e   : > { %2307 = vtanh.f32 %v1568_v29 }
 0x92f   : > { %2309 = vtanh.f32 %v1563_v32 }
 0x938   : > { %v2308_v33 = vpop.eup %2307 }
 0x939   : > { %v2310_v34 = vpop.eup %2309  ;;  %v1574_v35 = vadd.f32 %v2308_v33, %v2995_v58 }
 0x93a   : > { %v1573_v28 = vadd.f32 %v2311_v26, %v2310_v34 }
 0x93b   : > { %1578 = vst [vmem:[%s544_s13 + $0x18] sm:$0xff] %v1574_v35 }
 0x93c   : > { %1576 = vst [vmem:[%s544_s13 + $0x8] sm:$0xff] %v1573_v28 }
 0x93d   : > { %2525 = shalt.err (!%p2522_p8)
}
 0x93e   : > { %s2526_s6 = scalar_lea.hbm %s3081_s17, 512  ;;  %s2530_s9 = scalar_lea.hbm %s3192_s26, 1024 }
 0x93f   : > { %p2527_p4 = scmp.ne.s32.totalorder %s3081_s17, %s2526_s6  ;;  %p2531_p1 = scmp.lt.u32.totalorder %s3081_s17, %s3192_s26 }
 0x940   : > { %p2532_p11 = scmp.lt.u32.totalorder %s2530_s9, %s2526_s6  ;;  %p2534_p2 = scmp.lt.u32.totalorder %s2526_s6, %s3081_s17 }
 0x941   : > { %p2528_p3 = pnand %p2527_p4, %p3193_p13 }
 0x942   : > { %p2533_p12 = por %p2532_p11, %p2531_p1 }
 0x943   : > { %p2529_p10 = pneg %p2528_p3 }
 0x944   : > { %p2535_p6 = por %p2534_p2, %p2533_p12 }
 0x946   : > { %p2536_p9 = pnand %p2535_p6, %p2529_p10 }
 0x948   : > { %2539 = shalt.err (!%p2536_p9)
}
 0x949   : > { %s2611_s16 = smov 256   ;;  %s2612_s10 = smov 16  }
 0x94a   : > { %2196 = dma.vmem_to_hbm [thread:$0]  (%p3193_p13), %s3083_s30, 512, %s3081_s17, %s1580_s27, %s2611_s16, %s2611_s16, %s2612_s10  }
 0x94b PF: > { %s1609_s28 = sand.u32 1, %s2582_s21   ;;  %p3194_p0 = scmp.ne.s32.totalorder %s3179_s29, 0 }
 0x94c   : > { %p3195_p5 = scmp.ge.s32.totalorder %s2594_s24, 2  ;;  %s1610_s18 = scalar_lea.sflag [#allocation4], %s1609_s28 }
 0x94e   : > { %p2222_p7 = pnand %p3195_p5, %p3194_p0 }
 0x950   : > { %2577 = dma.done.wait (!%p2222_p7), %s1610_s18, 512  }
 0x951   : > { %2579 = vsyncadd (!%p2222_p7), %s1610_s18, 4294966784  ;;  %s3196_s7 = sld [smem:[#allocation21_spill]]  ;;  %s3197_s23 = sld [smem:[#allocation22_spill]] }
 0x952   : > { %p30_p8 = scmp.ge.s32.totalorder %s2847_s25, 4   ;;  %s3198_s21 = smov %s2586_s22 }
 0x953   : > { %s3200_s24 = smov %s2847_s25 }
 0x954   :  { %32 = sbr.rel (!%p30_p8) target bundleno = 20 (0x14), region = 148 }
 0x957   : > { %s3199_s22 = smov %s3196_s7 }
 0x95b   :  { %1615 = vsyncpa [#allocation3], 1 }
 0x95c   :  { %1617 = vsyncpa [#allocation3 + $0x1], 1 }
 0x95d   :  { %1618 = vsyncpa [#allocation6], 1 }
 0x95e   :  { %1620 = vsyncpa [#allocation6 + $0x1], 1 }
 0x95f   :  { %1621 = vsyncpa [#allocation9], 1 }
 0x960   :  { %1622 = vsyncpa [#allocation12], 1 }
 0x961   :  { %1623 = vsyncpa [#allocation4], 1 }
 0x962   :  { %1625 = vsyncpa [#allocation4 + $0x1], 1 }

</bundles_post_ra>
